<compile_context>
chip_gen: v7x
topology: tpu7x:2x2x1
jax: 0.10.0
libtpu: 0.0.40
codegen_flags: <defaults>
</compile_context>

<pallas_src>
import jax
import jax.numpy as jnp
from jax.experimental import pallas as pl
from jax.experimental.pallas import tpu as pltpu

EPS = 1e-5


def make_aspp_kernel(N, Hout, Wout, Cin, Cout, rate):
    """Whole-problem fused kernel (everything fits in VMEM at these shapes)."""
    rows = N * Hout * Wout
    inv_cnt = 1.0 / float(rows)

    def kernel(x_ref, w9_ref, g1_ref, b1_ref, pw_ref, g2_ref, b2_ref, o_ref):
        # x_ref : (N, Hp, Wp, Cin)  f32  channels-on-lanes (NHWC), padded
        # w9_ref: (9, Cin)          f32  depthwise taps, [kh*3+kw, c]
        # pw_ref: (Cin, Cout)       bf16 dense pointwise weight
        # g*/b* : (1, C)            f32  BN gamma/beta
        # o_ref : (rows, Cout)      f32  lane-dense output slab

        # ---- depthwise dilated 3x3 conv (groups=Cin, VALID, no bias) ----
        # Static (kh, kw) ref slices: H/W shifts are plain address offsets with
        # C on lanes.  First tap initializes the accumulator (no zeros+add).
        w9 = w9_ref[...]
        acc = None
        for kh in range(3):
            h0 = kh * rate
            for kw in range(3):
                w0 = kw * rate
                xs = x_ref[:, h0:h0 + Hout, w0:w0 + Wout, :]       # (N,Hout,Wout,Cin)
                t = kh * 3 + kw
                wrow = w9[t:t + 1, :].reshape(1, 1, 1, Cin)        # per-lane weights
                term = xs * wrow
                acc = term if acc is None else acc + term

        # Collapse leading dims; lanes (Cin) untouched, layout-preserving here.
        y = acc.reshape(rows, Cin)

        # ---- BN1 (training-mode batch stats, two-pass) + ReLU ----
        m1 = jnp.sum(y, axis=0, keepdims=True) * inv_cnt           # (1, Cin)
        yc = y - m1
        v1 = jnp.sum(yc * yc, axis=0, keepdims=True) * inv_cnt     # biased variance
        sc1 = g1_ref[...] * jax.lax.rsqrt(v1 + EPS)                # (1, Cin)
        y = jnp.maximum(yc * sc1 + b1_ref[...], 0.0)

        # ---- pointwise 1x1 conv: dense (rows,Cin)x(Cin,Cout) bf16 MXU matmul ----
        z = jnp.dot(y.astype(jnp.bfloat16), pw_ref[...],
                    preferred_element_type=jnp.float32)            # (rows, Cout) f32

        # ---- BN2 (two-pass) + ReLU, lane-dense store ----
        m2 = jnp.sum(z, axis=0, keepdims=True) * inv_cnt           # (1, Cout)
        zc = z - m2
        v2 = jnp.sum(zc * zc, axis=0, keepdims=True) * inv_cnt
        sc2 = g2_ref[...] * jax.lax.rsqrt(v2 + EPS)
        o_ref[...] = jnp.maximum(zc * sc2 + b2_ref[...], 0.0)

    return kernel


def aspp_forward(x_nchw, dw_khkwc, g1, b1, pw_cin_cout, g2, b2, *, rate, padding="fixed"):
    """x_nchw: (N, Cin, H, W). Returns (N, Cout, Hout, Wout)."""
    N, Cin, H, W = x_nchw.shape
    Cout = pw_cin_cout.shape[1]
    k = 3

    if padding == "fixed":
        k_eff = k + (k - 1) * (rate - 1)
        pad_total = k_eff - 1
        pad_beg = pad_total // 2
        pad_end = pad_total - pad_beg
        xp = jnp.pad(
            x_nchw,
            ((0, 0), (0, 0), (pad_beg, pad_end), (pad_beg, pad_end)),
            mode="reflect",   # matches the spec's fixed_padding (F.pad mode='reflect')
        )
    else:  # 'same' -> conv1 has zero padding=1
        xp = jnp.pad(x_nchw, ((0, 0), (0, 0), (1, 1), (1, 1)))

    Hp, Wp = xp.shape[2], xp.shape[3]
    Hout = Hp - rate * (k - 1)
    Wout = Wp - rate * (k - 1)

    # Channels-on-lanes NHWC slab.
    # TODO(synk): at production the backbone should hand over NHWC (ideally bf16)
    # directly so this transpose/pack never touches HBM.
    x_nhwc = jnp.transpose(xp, (0, 2, 3, 1)).astype(jnp.float32)

    w9 = dw_khkwc.reshape(9, Cin).astype(jnp.float32)              # (9, Cin)
    pw_bf16 = pw_cin_cout.astype(jnp.bfloat16)                     # (Cin, Cout)

    kernel = make_aspp_kernel(N, Hout, Wout, Cin, Cout, rate)
    vmem = pl.BlockSpec(memory_space=pltpu.MemorySpace.VMEM)

    out_slab = pl.pallas_call(
        kernel,
        out_shape=jax.ShapeDtypeStruct((N * Hout * Wout, Cout), jnp.float32),
        in_specs=[vmem] * 7,
        out_specs=vmem,
        compiler_params=pltpu.CompilerParams(vmem_limit_bytes=32 * 1024 * 1024),
    )(x_nhwc, w9, g1, b1, pw_bf16, g2, b2)

    out = out_slab.reshape(N, Hout, Wout, Cout)
    return jnp.transpose(out, (0, 3, 1, 2))  # back to NCHW


def init_params(key, in_dims, out_dims):
    """Deterministic kaiming-normal conv weights; BN gamma=1, beta=0."""
    k_dw, k_pw = jax.random.split(key)
    # conv1: torch shape (in_dims, 1, 3, 3), fan_in = 9
    dw = jax.random.normal(k_dw, (in_dims, 1, 3, 3), jnp.float32) * jnp.sqrt(2.0 / 9.0)
    dw_khkwc = jnp.transpose(dw[:, 0], (1, 2, 0))                  # (3, 3, Cin)
    # pointwise: torch shape (out_dims, in_dims, 1, 1), fan_in = in_dims
    pw = jax.random.normal(k_pw, (out_dims, in_dims, 1, 1), jnp.float32) * jnp.sqrt(
        2.0 / in_dims
    )
    pw_cin_cout = jnp.transpose(pw[:, :, 0, 0], (1, 0))            # (Cin, Cout)
    g1 = jnp.ones((1, in_dims), jnp.float32)
    b1 = jnp.zeros((1, in_dims), jnp.float32)
    g2 = jnp.ones((1, out_dims), jnp.float32)
    b2 = jnp.zeros((1, out_dims), jnp.float32)
    return dw_khkwc, g1, b1, pw_cin_cout, g2, b2


def ref_forward(x_nchw, dw_khkwc, g1, b1, pw_cin_cout, g2, b2, *, rate, padding="fixed"):
    """Pure-JAX f32 reference (mirrors the PyTorch module in training mode)."""
    N, Cin, H, W = x_nchw.shape
    k = 3
    if padding == "fixed":
        k_eff = k + (k - 1) * (rate - 1)
        pad_total = k_eff - 1
        pad_beg = pad_total // 2
        pad_end = pad_total - pad_beg
        xp = jnp.pad(x_nchw, ((0, 0), (0, 0), (pad_beg, pad_end), (pad_beg, pad_end)),
                     mode="reflect")
    else:
        xp = jnp.pad(x_nchw, ((0, 0), (0, 0), (1, 1), (1, 1)))
    Hp, Wp = xp.shape[2], xp.shape[3]
    Hout, Wout = Hp - rate * 2, Wp - rate * 2
    x = jnp.transpose(xp, (0, 2, 3, 1)).astype(jnp.float32)
    acc = jnp.zeros((N, Hout, Wout, Cin), jnp.float32)
    for kh in range(3):
        for kw in range(3):
            acc = acc + (x[:, kh * rate:kh * rate + Hout,
                           kw * rate:kw * rate + Wout, :] * dw_khkwc[kh, kw])
    y = acc.reshape(-1, Cin)
    m1 = jnp.mean(y, axis=0)
    v1 = jnp.mean((y - m1) ** 2, axis=0)
    y = jnp.maximum((y - m1) * (g1[0] / jnp.sqrt(v1 + EPS)) + b1[0], 0.0)
    z = y @ pw_cin_cout
    m2 = jnp.mean(z, axis=0)
    v2 = jnp.mean((z - m2) ** 2, axis=0)
    z = jnp.maximum((z - m2) * (g2[0] / jnp.sqrt(v2 + EPS)) + b2[0], 0.0)
    Cout = pw_cin_cout.shape[1]
    return jnp.transpose(z.reshape(N, Hout, Wout, Cout), (0, 3, 1, 2))


if __name__ == "__main__":
    key = jax.random.PRNGKey(0)
    k_x1, k_p1, k_x2, k_p2 = jax.random.split(key, 4)

    # --- Config 1: 'fixed' (reflect) padding, dilated, lane-dense channels ---
    N, Cin, H, W = 2, 128, 16, 16
    Cout, rate = 128, 2
    x = jax.random.normal(k_x1, (N, Cin, H, W), jnp.float32)
    params = init_params(k_p1, Cin, Cout)

    out = aspp_forward(x, *params, rate=rate, padding="fixed")
    jax.block_until_ready(out)
    assert out.shape == (N, Cout, H, W), out.shape
    ref = ref_forward(x, *params, rate=rate, padding="fixed")
    err = float(jnp.max(jnp.abs(out - ref)))
    assert jnp.allclose(out, ref, atol=1e-1, rtol=5e-2), err  # loose: bf16 MXU matmul

    # --- Config 2: 'same' (zero) padding path, rate=1 (as in last_conv ASPPs) ---
    N2, Cin2, H2, W2 = 2, 128, 8, 8
    Cout2, rate2 = 128, 1
    x2 = jax.random.normal(k_x2, (N2, Cin2, H2, W2), jnp.float32)
    params2 = init_params(k_p2, Cin2, Cout2)

    out2 = aspp_forward(x2, *params2, rate=rate2, padding="same")
    jax.block_until_ready(out2)
    assert out2.shape == (N2, Cout2, H2, W2), out2.shape
    ref2 = ref_forward(x2, *params2, rate=rate2, padding="same")
    err2 = float(jnp.max(jnp.abs(out2 - ref2)))
    assert jnp.allclose(out2, ref2, atol=1e-1, rtol=5e-2), err2

    print("KERNEL_OK")
</pallas_src>

<mosaic_0001>
module attributes {stable_mosaic.version = 11 : i64} {
  func.func @kernel(%arg0: memref<2x20x20x128xf32, #tpu.memory_space<vmem>>, %arg1: memref<9x128xf32, #tpu.memory_space<vmem>>, %arg2: memref<1x128xf32, #tpu.memory_space<vmem>>, %arg3: memref<1x128xf32, #tpu.memory_space<vmem>>, %arg4: memref<128x128xbf16, #tpu.memory_space<vmem>>, %arg5: memref<1x128xf32, #tpu.memory_space<vmem>>, %arg6: memref<1x128xf32, #tpu.memory_space<vmem>>, %arg7: memref<512x128xf32, #tpu.memory_space<vmem>>) attributes {dimension_semantics = [], scalar_prefetch = 0 : i64, scratch_operands = 0 : i64, tpu.core_type = #tpu.core_type<tc>} {
    %c0 = arith.constant 0 : index
    %c0_0 = arith.constant 0 : index
    %0 = vector.load %arg1[%c0, %c0_0] : memref<9x128xf32, #tpu.memory_space<vmem>>, vector<9x128xf32>
    %c0_1 = arith.constant 0 : index
    %c0_2 = arith.constant 0 : index
    %c0_3 = arith.constant 0 : index
    %c0_4 = arith.constant 0 : index
    %1 = vector.load %arg0[%c0_1, %c0_2, %c0_3, %c0_4] : memref<2x20x20x128xf32, #tpu.memory_space<vmem>>, vector<2x16x16x128xf32>
    %2 = vector.extract_strided_slice %0 {offsets = [0, 0], sizes = [1, 128], strides = [1, 1]} : vector<9x128xf32> to vector<1x128xf32>
    %3 = vector.shape_cast %2 : vector<1x128xf32> to vector<1x1x1x128xf32>
    %4 = vector.broadcast %3 : vector<1x1x1x128xf32> to vector<2x16x16x128xf32>
    %5 = arith.mulf %1, %4 : vector<2x16x16x128xf32>
    %c0_5 = arith.constant 0 : index
    %c0_6 = arith.constant 0 : index
    %c2 = arith.constant 2 : index
    %c0_7 = arith.constant 0 : index
    %6 = vector.load %arg0[%c0_5, %c0_6, %c2, %c0_7] : memref<2x20x20x128xf32, #tpu.memory_space<vmem>>, vector<2x16x16x128xf32>
    %7 = vector.extract_strided_slice %0 {offsets = [1, 0], sizes = [1, 128], strides = [1, 1]} : vector<9x128xf32> to vector<1x128xf32>
    %8 = vector.shape_cast %7 : vector<1x128xf32> to vector<1x1x1x128xf32>
    %9 = vector.broadcast %8 : vector<1x1x1x128xf32> to vector<2x16x16x128xf32>
    %10 = arith.mulf %6, %9 : vector<2x16x16x128xf32>
    %11 = arith.addf %5, %10 : vector<2x16x16x128xf32>
    %c0_8 = arith.constant 0 : index
    %c0_9 = arith.constant 0 : index
    %c4 = arith.constant 4 : index
    %c0_10 = arith.constant 0 : index
    %12 = vector.load %arg0[%c0_8, %c0_9, %c4, %c0_10] : memref<2x20x20x128xf32, #tpu.memory_space<vmem>>, vector<2x16x16x128xf32>
    %13 = vector.extract_strided_slice %0 {offsets = [2, 0], sizes = [1, 128], strides = [1, 1]} : vector<9x128xf32> to vector<1x128xf32>
    %14 = vector.shape_cast %13 : vector<1x128xf32> to vector<1x1x1x128xf32>
    %15 = vector.broadcast %14 : vector<1x1x1x128xf32> to vector<2x16x16x128xf32>
    %16 = arith.mulf %12, %15 : vector<2x16x16x128xf32>
    %17 = arith.addf %11, %16 : vector<2x16x16x128xf32>
    %c0_11 = arith.constant 0 : index
    %c2_12 = arith.constant 2 : index
    %c0_13 = arith.constant 0 : index
    %c0_14 = arith.constant 0 : index
    %18 = vector.load %arg0[%c0_11, %c2_12, %c0_13, %c0_14] : memref<2x20x20x128xf32, #tpu.memory_space<vmem>>, vector<2x16x16x128xf32>
    %19 = vector.extract_strided_slice %0 {offsets = [3, 0], sizes = [1, 128], strides = [1, 1]} : vector<9x128xf32> to vector<1x128xf32>
    %20 = vector.shape_cast %19 : vector<1x128xf32> to vector<1x1x1x128xf32>
    %21 = vector.broadcast %20 : vector<1x1x1x128xf32> to vector<2x16x16x128xf32>
    %22 = arith.mulf %18, %21 : vector<2x16x16x128xf32>
    %23 = arith.addf %17, %22 : vector<2x16x16x128xf32>
    %c0_15 = arith.constant 0 : index
    %c2_16 = arith.constant 2 : index
    %c2_17 = arith.constant 2 : index
    %c0_18 = arith.constant 0 : index
    %24 = vector.load %arg0[%c0_15, %c2_16, %c2_17, %c0_18] : memref<2x20x20x128xf32, #tpu.memory_space<vmem>>, vector<2x16x16x128xf32>
    %25 = vector.extract_strided_slice %0 {offsets = [4, 0], sizes = [1, 128], strides = [1, 1]} : vector<9x128xf32> to vector<1x128xf32>
    %26 = vector.shape_cast %25 : vector<1x128xf32> to vector<1x1x1x128xf32>
    %27 = vector.broadcast %26 : vector<1x1x1x128xf32> to vector<2x16x16x128xf32>
    %28 = arith.mulf %24, %27 : vector<2x16x16x128xf32>
    %29 = arith.addf %23, %28 : vector<2x16x16x128xf32>
    %c0_19 = arith.constant 0 : index
    %c2_20 = arith.constant 2 : index
    %c4_21 = arith.constant 4 : index
    %c0_22 = arith.constant 0 : index
    %30 = vector.load %arg0[%c0_19, %c2_20, %c4_21, %c0_22] : memref<2x20x20x128xf32, #tpu.memory_space<vmem>>, vector<2x16x16x128xf32>
    %31 = vector.extract_strided_slice %0 {offsets = [5, 0], sizes = [1, 128], strides = [1, 1]} : vector<9x128xf32> to vector<1x128xf32>
    %32 = vector.shape_cast %31 : vector<1x128xf32> to vector<1x1x1x128xf32>
    %33 = vector.broadcast %32 : vector<1x1x1x128xf32> to vector<2x16x16x128xf32>
    %34 = arith.mulf %30, %33 : vector<2x16x16x128xf32>
    %35 = arith.addf %29, %34 : vector<2x16x16x128xf32>
    %c0_23 = arith.constant 0 : index
    %c4_24 = arith.constant 4 : index
    %c0_25 = arith.constant 0 : index
    %c0_26 = arith.constant 0 : index
    %36 = vector.load %arg0[%c0_23, %c4_24, %c0_25, %c0_26] : memref<2x20x20x128xf32, #tpu.memory_space<vmem>>, vector<2x16x16x128xf32>
    %37 = vector.extract_strided_slice %0 {offsets = [6, 0], sizes = [1, 128], strides = [1, 1]} : vector<9x128xf32> to vector<1x128xf32>
    %38 = vector.shape_cast %37 : vector<1x128xf32> to vector<1x1x1x128xf32>
    %39 = vector.broadcast %38 : vector<1x1x1x128xf32> to vector<2x16x16x128xf32>
    %40 = arith.mulf %36, %39 : vector<2x16x16x128xf32>
    %41 = arith.addf %35, %40 : vector<2x16x16x128xf32>
    %c0_27 = arith.constant 0 : index
    %c4_28 = arith.constant 4 : index
    %c2_29 = arith.constant 2 : index
    %c0_30 = arith.constant 0 : index
    %42 = vector.load %arg0[%c0_27, %c4_28, %c2_29, %c0_30] : memref<2x20x20x128xf32, #tpu.memory_space<vmem>>, vector<2x16x16x128xf32>
    %43 = vector.extract_strided_slice %0 {offsets = [7, 0], sizes = [1, 128], strides = [1, 1]} : vector<9x128xf32> to vector<1x128xf32>
    %44 = vector.shape_cast %43 : vector<1x128xf32> to vector<1x1x1x128xf32>
    %45 = vector.broadcast %44 : vector<1x1x1x128xf32> to vector<2x16x16x128xf32>
    %46 = arith.mulf %42, %45 : vector<2x16x16x128xf32>
    %47 = arith.addf %41, %46 : vector<2x16x16x128xf32>
    %c0_31 = arith.constant 0 : index
    %c4_32 = arith.constant 4 : index
    %c4_33 = arith.constant 4 : index
    %c0_34 = arith.constant 0 : index
    %48 = vector.load %arg0[%c0_31, %c4_32, %c4_33, %c0_34] : memref<2x20x20x128xf32, #tpu.memory_space<vmem>>, vector<2x16x16x128xf32>
    %49 = vector.extract_strided_slice %0 {offsets = [8, 0], sizes = [1, 128], strides = [1, 1]} : vector<9x128xf32> to vector<1x128xf32>
    %50 = vector.shape_cast %49 : vector<1x128xf32> to vector<1x1x1x128xf32>
    %51 = vector.broadcast %50 : vector<1x1x1x128xf32> to vector<2x16x16x128xf32>
    %52 = arith.mulf %48, %51 : vector<2x16x16x128xf32>
    %53 = arith.addf %47, %52 : vector<2x16x16x128xf32>
    %54 = vector.shape_cast %53 : vector<2x16x16x128xf32> to vector<512x128xf32>
    %cst = arith.constant dense<0.000000e+00> : vector<128xf32>
    %55 = vector.multi_reduction <add>, %54, %cst [0] : vector<512x128xf32> to vector<128xf32>
    %56 = vector.shape_cast %55 : vector<128xf32> to vector<1x128xf32>
    %cst_35 = arith.constant 0.001953125 : f32
    %57 = vector.broadcast %cst_35 : f32 to vector<1x128xf32>
    %58 = arith.mulf %56, %57 : vector<1x128xf32>
    %59 = vector.broadcast %58 : vector<1x128xf32> to vector<512x128xf32>
    %60 = arith.subf %54, %59 : vector<512x128xf32>
    %61 = arith.mulf %60, %60 : vector<512x128xf32>
    %cst_36 = arith.constant dense<0.000000e+00> : vector<128xf32>
    %62 = vector.multi_reduction <add>, %61, %cst_36 [0] : vector<512x128xf32> to vector<128xf32>
    %63 = vector.shape_cast %62 : vector<128xf32> to vector<1x128xf32>
    %cst_37 = arith.constant 0.001953125 : f32
    %64 = vector.broadcast %cst_37 : f32 to vector<1x128xf32>
    %65 = arith.mulf %63, %64 : vector<1x128xf32>
    %c0_38 = arith.constant 0 : index
    %c0_39 = arith.constant 0 : index
    %66 = vector.load %arg2[%c0_38, %c0_39] : memref<1x128xf32, #tpu.memory_space<vmem>>, vector<1x128xf32>
    %cst_40 = arith.constant 9.99999974E-6 : f32
    %67 = vector.broadcast %cst_40 : f32 to vector<1x128xf32>
    %68 = arith.addf %65, %67 : vector<1x128xf32>
    %69 = math.rsqrt %68 : vector<1x128xf32>
    %70 = arith.mulf %66, %69 : vector<1x128xf32>
    %71 = vector.broadcast %70 : vector<1x128xf32> to vector<512x128xf32>
    %72 = arith.mulf %60, %71 : vector<512x128xf32>
    %c0_41 = arith.constant 0 : index
    %c0_42 = arith.constant 0 : index
    %73 = vector.load %arg3[%c0_41, %c0_42] : memref<1x128xf32, #tpu.memory_space<vmem>>, vector<1x128xf32>
    %74 = vector.broadcast %73 : vector<1x128xf32> to vector<512x128xf32>
    %75 = arith.addf %72, %74 : vector<512x128xf32>
    %cst_43 = arith.constant 0.000000e+00 : f32
    %76 = vector.broadcast %cst_43 : f32 to vector<512x128xf32>
    %77 = arith.maximumf %75, %76 : vector<512x128xf32>
    %78 = arith.truncf %77 : vector<512x128xf32> to vector<512x128xbf16>
    %c0_44 = arith.constant 0 : index
    %c0_45 = arith.constant 0 : index
    %79 = vector.load %arg4[%c0_44, %c0_45] : memref<128x128xbf16, #tpu.memory_space<vmem>>, vector<128x128xbf16>
    %cst_46 = arith.constant dense<0.000000e+00> : vector<512x128xf32>
    %80 = tpu.matmul %78, %79, %cst_46 {dimension_numbers = #tpu.dot_dimension_numbers<[1], [0], [0], [1], [0, 0, 1, 1], [], []>} : vector<512x128xbf16>, vector<128x128xbf16>, vector<512x128xf32> -> vector<512x128xf32>
    %cst_47 = arith.constant dense<0.000000e+00> : vector<128xf32>
    %81 = vector.multi_reduction <add>, %80, %cst_47 [0] : vector<512x128xf32> to vector<128xf32>
    %82 = vector.shape_cast %81 : vector<128xf32> to vector<1x128xf32>
    %cst_48 = arith.constant 0.001953125 : f32
    %83 = vector.broadcast %cst_48 : f32 to vector<1x128xf32>
    %84 = arith.mulf %82, %83 : vector<1x128xf32>
    %85 = vector.broadcast %84 : vector<1x128xf32> to vector<512x128xf32>
    %86 = arith.subf %80, %85 : vector<512x128xf32>
    %87 = arith.mulf %86, %86 : vector<512x128xf32>
    %cst_49 = arith.constant dense<0.000000e+00> : vector<128xf32>
    %88 = vector.multi_reduction <add>, %87, %cst_49 [0] : vector<512x128xf32> to vector<128xf32>
    %89 = vector.shape_cast %88 : vector<128xf32> to vector<1x128xf32>
    %cst_50 = arith.constant 0.001953125 : f32
    %90 = vector.broadcast %cst_50 : f32 to vector<1x128xf32>
    %91 = arith.mulf %89, %90 : vector<1x128xf32>
    %c0_51 = arith.constant 0 : index
    %c0_52 = arith.constant 0 : index
    %92 = vector.load %arg5[%c0_51, %c0_52] : memref<1x128xf32, #tpu.memory_space<vmem>>, vector<1x128xf32>
    %cst_53 = arith.constant 9.99999974E-6 : f32
    %93 = vector.broadcast %cst_53 : f32 to vector<1x128xf32>
    %94 = arith.addf %91, %93 : vector<1x128xf32>
    %95 = math.rsqrt %94 : vector<1x128xf32>
    %96 = arith.mulf %92, %95 : vector<1x128xf32>
    %97 = vector.broadcast %96 : vector<1x128xf32> to vector<512x128xf32>
    %98 = arith.mulf %86, %97 : vector<512x128xf32>
    %c0_54 = arith.constant 0 : index
    %c0_55 = arith.constant 0 : index
    %99 = vector.load %arg6[%c0_54, %c0_55] : memref<1x128xf32, #tpu.memory_space<vmem>>, vector<1x128xf32>
    %100 = vector.broadcast %99 : vector<1x128xf32> to vector<512x128xf32>
    %101 = arith.addf %98, %100 : vector<512x128xf32>
    %cst_56 = arith.constant 0.000000e+00 : f32
    %102 = vector.broadcast %cst_56 : f32 to vector<512x128xf32>
    %103 = arith.maximumf %101, %102 : vector<512x128xf32>
    %c0_57 = arith.constant 0 : index
    %c0_58 = arith.constant 0 : index
    %104 = vector.load %arg7[%c0_57, %c0_58] : memref<512x128xf32, #tpu.memory_space<vmem>>, vector<512x128xf32>
    tpu.vector_store %arg7[%c0_57, %c0_58], %103 {strides = array<i32>} : memref<512x128xf32, #tpu.memory_space<vmem>>, vector<512x128xf32>,
    return
  }
}

</mosaic_0001>

<bundles_post_ra>
// kernel: tpu_custom_call.1
= control target key start
LH: loop header
LB: loop body
LE: loop exit
PB: predicated region body
PF: predicated region fallthrough
CT: control target
= control target key end

     0   :  { %v94_v8 = vlaneseq  ;;  %s9730_s0 = inlined_call_operand.vmem [shape: f32[2,20,20,128], index: 0, kind: input, shape index: {}]   ;;  %s9731_s1 = inlined_call_operand.vmem [shape: f32[9,128], index: 1, kind: input, shape index: {}]   ;;  %s9732_s2 = inlined_call_operand.vmem [shape: f32[1,128], index: 2, kind: input, shape index: {}]   ;;  %s9733_s3 = inlined_call_operand.vmem [shape: f32[1,128], index: 3, kind: input, shape index: {}]   ;;  %s9734_s4 = inlined_call_operand.vmem [shape: bf16[128,128], index: 4, kind: input, shape index: {}]   ;;  %s9735_s5 = inlined_call_operand.vmem [shape: f32[1,128], index: 5, kind: input, shape index: {}]   ;;  %s9736_s6 = inlined_call_operand.vmem [shape: f32[1,128], index: 6, kind: input, shape index: {}]   ;;  %s9737_s7 = inlined_call_operand.hbm [shape: f32[512,128], index: 7, kind: output, shape index: {}]  }
   0x1   :  { %v3685_v0 = vld [vmem:[%s9734_s4] sm:$0xff]   ;;  %v3686_v1 = vld [vmem:[%s9734_s4 + $0x8] sm:$0xff]   ;;  %v3687_v2 = vld [vmem:[%s9734_s4 + $0x10] sm:$0xff]  }
   0x2   :  { %3586 = vmatprep.subr.bf16.mxu0 %v3685_v0  ;;  %3666 = vmatprep.subr.bf16.mxu1 %v3685_v0  ;;  %v3688_v3 = vld [vmem:[%s9734_s4 + $0x18] sm:$0xff]   ;;  %v3689_v4 = vld [vmem:[%s9734_s4 + $0x20] sm:$0xff]   ;;  %v3690_v5 = vld [vmem:[%s9734_s4 + $0x28] sm:$0xff]   ;;  %v3789_v9 = vshrl.u32 %v94_v8, 7 }
   0x3   :  { %3587 = vmatpush3.bf16.msra.mxu0 %v3685_v0  ;;  %3674 = vmatpush3.bf16.msra.mxu1 %v3685_v0  ;;  %v3691_v6 = vld [vmem:[%s9734_s4 + $0x30] sm:$0xff]   ;;  %v3692_v7 = vld [vmem:[%s9734_s4 + $0x38] sm:$0xff]   ;;  %v3794_v10 = vld [vmem:[%s9731_s1] sm:$0xff] }
   0x4   :  { %3588 = vmatprep.subr.bf16.mxu0 %v3686_v1  ;;  %3667 = vmatprep.subr.bf16.mxu1 %v3686_v1  ;;  %9846 = vst [vmem:[#allocation5_spill] sm:$0xff] %v3789_v9  ;;  %9847 = vst [vmem:[#allocation6_spill] sm:$0xff] %v3794_v10  ;;  %v3797_v11 = vsub.s32 0, %v3789_v9  ;;  %v63_v12 = vld [vmem:[%s9730_s0 + $0x1e8] sm:$0xff]  ;;  %v64_v13 = vld [vmem:[%s9730_s0 + $0x1f8] sm:$0xff]  ;;  %v228_v19 = vsub.s32 1, %v3789_v9 }
   0x5   :  { %v65_v14 = vld [vmem:[%s9730_s0 + $0x200] sm:$0xff]  ;;  %v66_v15 = vld [vmem:[%s9730_s0 + $0x210] sm:$0xff]  ;;  %v67_v16 = vld [vmem:[%s9730_s0 + $0x218] sm:$0xff] }
   0x6   :  { %9848 = vst [vmem:[#allocation7_spill] sm:$0xff] %v3797_v11  ;;  %v68_v17 = vld [vmem:[%s9730_s0 + $0x228] sm:$0xff]  ;;  %v69_v18 = vld [vmem:[%s9730_s0 + $0x230] sm:$0xff]  ;;  %v70_v20 = vld [vmem:[%s9730_s0 + $0x240] sm:$0xff]  ;;  %v3847_v28 = vrot.slane %v3794_v10, %v3797_v11  ;;  %v3883_v40 = vrot.slane %v3794_v10, %v228_v19 }
   0x7   :  { %3589 = vmatpush3.bf16.msra.mxu0 %v3686_v1  ;;  %3675 = vmatpush3.bf16.msra.mxu1 %v3686_v1  ;;  %v71_v21 = vld [vmem:[%s9730_s0 + $0x248] sm:$0xff]  ;;  %v72_v22 = vld [vmem:[%s9730_s0 + $0x258] sm:$0xff]  ;;  %v73_v23 = vld [vmem:[%s9730_s0 + $0x260] sm:$0xff] }
   0x8   :  { %3590 = vmatprep.subr.bf16.mxu0 %v3687_v2  ;;  %3668 = vmatprep.subr.bf16.mxu1 %v3687_v2  ;;  %v74_v24 = vld [vmem:[%s9730_s0 + $0x270] sm:$0xff]  ;;  %v75_v25 = vld [vmem:[%s9730_s0 + $0x278] sm:$0xff]  ;;  %v76_v26 = vld [vmem:[%s9730_s0 + $0x288] sm:$0xff]  ;;  %9849 = vst [vmem:[#allocation8_spill] sm:$0xff] %v3847_v28  ;;  %v3874_v37 = vmul.f32 %v3847_v28, %v63_v12  ;;  %v3877_v38 = vmul.f32 %v3847_v28, %v64_v13 }
   0x9   :  { %v77_v27 = vld [vmem:[%s9730_s0 + $0x290] sm:$0xff]  ;;  %v78_v29 = vld [vmem:[%s9730_s0 + $0x2a0] sm:$0xff]  ;;  %v79_v30 = vld [vmem:[%s9730_s0 + $0x2a8] sm:$0xff]  ;;  %v3880_v39 = vmul.f32 %v3847_v28, %v65_v14  ;;  %9850 = vst [vmem:[#allocation9_spill] sm:$0xff] %v3883_v40  ;;  %v3898_v45 = vmul.f32 %v3847_v28, %v66_v15  ;;  %v3901_v46 = vmul.f32 %v3847_v28, %v67_v16  ;;  %v3904_v47 = vmul.f32 %v3847_v28, %v68_v17 }
   0xa   :  { %v80_v31 = vld [vmem:[%s9730_s0 + $0x2b8] sm:$0xff]  ;;  %v81_v32 = vld [vmem:[%s9730_s0 + $0x2c0] sm:$0xff]  ;;  %v82_v33 = vld [vmem:[%s9730_s0 + $0x2d0] sm:$0xff]  ;;  %v3907_v48 = vmul.f32 %v3847_v28, %v69_v18  ;;  %v3922_v53 = vmul.f32 %v3847_v28, %v70_v20  ;;  %v3925_v54 = vmul.f32 %v3847_v28, %v71_v21  ;;  %v3928_v55 = vmul.f32 %v3847_v28, %v72_v22 }
   0xb   :  { %3591 = vmatpush3.bf16.msra.mxu0 %v3687_v2  ;;  %3676 = vmatpush3.bf16.msra.mxu1 %v3687_v2  ;;  %v83_v34 = vld [vmem:[%s9730_s0 + $0x2d8] sm:$0xff]  ;;  %v84_v35 = vld [vmem:[%s9730_s0 + $0x2e8] sm:$0xff]  ;;  %v85_v36 = vld [vmem:[%s9730_s0 + $0x2f0] sm:$0xff]  ;;  %v3931_v56 = vmul.f32 %v3847_v28, %v73_v23  ;;  %v3934_v57 = vmul.f32 %v3847_v28, %v74_v24  ;;  %v3937_v58 = vmul.f32 %v3847_v28, %v75_v25 }
   0xc   :  { %3592 = vmatprep.subr.bf16.mxu0 %v3688_v3  ;;  %3669 = vmatprep.subr.bf16.mxu1 %v3688_v3  ;;  %v86_v41 = vld [vmem:[%s9730_s0 + $0x300] sm:$0xff]  ;;  %v87_v42 = vld [vmem:[%s9730_s0 + $0x308] sm:$0xff]  ;;  %v88_v43 = vld [vmem:[%s9730_s0 + $0x318] sm:$0xff]  ;;  %v3940_v59 = vmul.f32 %v3847_v28, %v76_v26  ;;  %v3943_v60 = vmul.f32 %v3847_v28, %v77_v27  ;;  %v3958_v1 = vmul.f32 %v3847_v28, %v78_v29 }
   0xd   :  { %v89_v44 = vld [vmem:[%s9730_s0 + $0x320] sm:$0xff]  ;;  %v90_v49 = vld [vmem:[%s9730_s0 + $0x330] sm:$0xff]  ;;  %v91_v50 = vld [vmem:[%s9730_s0 + $0x338] sm:$0xff]  ;;  %v3961_v2 = vmul.f32 %v3847_v28, %v79_v30  ;;  %v3979_v8 = vmul.f32 %v3847_v28, %v82_v33  ;;  %v3982_v12 = vmul.f32 %v3847_v28, %v83_v34  ;;  %v3985_v13 = vmul.f32 %v3847_v28, %v84_v35 }
   0xe   :  { %v92_v51 = vld [vmem:[%s9730_s0 + $0x348] sm:$0xff]  ;;  %v93_v52 = vld [vmem:[%s9730_s0 + $0x350] sm:$0xff]  ;;  %v196_v62 = vld [vmem:[%s9730_s0 + $0x1fa] sm:$0xff]  ;;  %v3988_v14 = vmul.f32 %v3847_v28, %v85_v36  ;;  %v4000_v18 = vmul.f32 %v3847_v28, %v86_v41  ;;  %v4003_v19 = vmul.f32 %v3847_v28, %v87_v42  ;;  %v4006_v20 = vmul.f32 %v3847_v28, %v88_v43 }
   0xf   :  { %3593 = vmatpush3.bf16.msra.mxu0 %v3688_v3  ;;  %3677 = vmatpush3.bf16.msra.mxu1 %v3688_v3  ;;  %v195_v61 = vld [vmem:[%s9730_s0 + $0x1ea] sm:$0xff]  ;;  %v197_v63 = vld [vmem:[%s9730_s0 + $0x202] sm:$0xff]  ;;  %v198_v0 = vld [vmem:[%s9730_s0 + $0x212] sm:$0xff]  ;;  %v3964_v3 = vmul.f32 %v3847_v28, %v80_v31  ;;  %v4009_v21 = vmul.f32 %v3847_v28, %v89_v44  ;;  %v4021_v25 = vmul.f32 %v3847_v28, %v90_v49 }
  0x10   :  { %3594 = vmatprep.subr.bf16.mxu0 %v3689_v4  ;;  %3670 = vmatprep.subr.bf16.mxu1 %v3689_v4  ;;  %9851 = vst [vmem:[#allocation10_spill] sm:$0xff] %v3988_v14  ;;  %v202_v15 = vld [vmem:[%s9730_s0 + $0x242] sm:$0xff]  ;;  %v203_v16 = vld [vmem:[%s9730_s0 + $0x24a] sm:$0xff]  ;;  %v204_v17 = vld [vmem:[%s9730_s0 + $0x25a] sm:$0xff]  ;;  %v4024_v26 = vmul.f32 %v3847_v28, %v91_v50  ;;  %v4027_v27 = vmul.f32 %v3847_v28, %v92_v51 }
  0x11   :  { %9852 = vst [vmem:[#allocation11_spill] sm:$0xff] %v4000_v18  ;;  %9853 = vst [vmem:[#allocation12_spill] sm:$0xff] %v4003_v19  ;;  %v205_v22 = vld [vmem:[%s9730_s0 + $0x262] sm:$0xff]  ;;  %v206_v23 = vld [vmem:[%s9730_s0 + $0x272] sm:$0xff]  ;;  %v4030_v29 = vmul.f32 %v3847_v28, %v93_v52  ;;  %v263_v36 = vmul.f32 %v3883_v40, %v195_v61  ;;  %v264_v41 = vmul.f32 %v3883_v40, %v196_v62 }
  0x12   :  { %9854 = vst [vmem:[#allocation13_spill] sm:$0xff] %v4006_v20  ;;  %9855 = vst [vmem:[#allocation14_spill] sm:$0xff] %v4009_v21  ;;  %v207_v24 = vld [vmem:[%s9730_s0 + $0x27a] sm:$0xff]  ;;  %v208_v30 = vld [vmem:[%s9730_s0 + $0x28a] sm:$0xff]  ;;  %v265_v42 = vmul.f32 %v3883_v40, %v197_v63  ;;  %v266_v43 = vmul.f32 %v3883_v40, %v198_v0  ;;  %v270_v62 = vmul.f32 %v3883_v40, %v202_v15 }
  0x13   :  { %3595 = vmatpush3.bf16.msra.mxu0 %v3689_v4  ;;  %3678 = vmatpush3.bf16.msra.mxu1 %v3689_v4  ;;  %v3967_v4 = vmul.f32 %v3847_v28, %v81_v32  ;;  %9856 = vst [vmem:[#allocation15_spill] sm:$0xff] %v4021_v25  ;;  %9857 = vst [vmem:[#allocation16_spill] sm:$0xff] %v4024_v26  ;;  %v209_v31 = vld [vmem:[%s9730_s0 + $0x292] sm:$0xff]  ;;  %v210_v32 = vld [vmem:[%s9730_s0 + $0x2a2] sm:$0xff]  ;;  %v274_v15 = vmul.f32 %v3883_v40, %v206_v23 }
  0x14   :  { %3596 = vmatprep.subr.bf16.mxu0 %v3690_v5  ;;  %3671 = vmatprep.subr.bf16.mxu1 %v3690_v5  ;;  %9858 = vst [vmem:[#allocation17_spill] sm:$0xff] %v4027_v27  ;;  %9859 = vst [vmem:[#allocation18_spill] sm:$0xff] %v4030_v29  ;;  %v211_v33 = vld [vmem:[%s9730_s0 + $0x2aa] sm:$0xff]  ;;  %v212_v34 = vld [vmem:[%s9730_s0 + $0x2ba] sm:$0xff]  ;;  %v278_v23 = vmul.f32 %v3883_v40, %v210_v32 }
  0x15   :  { %v213_v35 = vld [vmem:[%s9730_s0 + $0x2c2] sm:$0xff]  ;;  %v214_v44 = vld [vmem:[%s9730_s0 + $0x2d2] sm:$0xff]  ;;  %v215_v49 = vld [vmem:[%s9730_s0 + $0x2da] sm:$0xff] }
  0x16   :  { %v216_v50 = vld [vmem:[%s9730_s0 + $0x2ea] sm:$0xff]  ;;  %v217_v63 = vld [vmem:[%s9730_s0 + $0x2f2] sm:$0xff]  ;;  %v218_v0 = vld [vmem:[%s9730_s0 + $0x302] sm:$0xff]  ;;  %v282_v32 = vmul.f32 %v3883_v40, %v214_v44  ;;  %v283_v25 = vmul.f32 %v3883_v40, %v215_v49 }
  0x17   :  { %3597 = vmatpush3.bf16.msra.mxu0 %v3690_v5  ;;  %3679 = vmatpush3.bf16.msra.mxu1 %v3690_v5  ;;  %v199_v5 = vld [vmem:[%s9730_s0 + $0x21a] sm:$0xff]  ;;  %v219_v11 = vld [vmem:[%s9730_s0 + $0x30a] sm:$0xff]  ;;  %v221_v10 = vld [vmem:[%s9730_s0 + $0x322] sm:$0xff]  ;;  %v284_v21 = vmul.f32 %v3883_v40, %v216_v50  ;;  %v285_v20 = vmul.f32 %v3883_v40, %v217_v63  ;;  %v286_v19 = vmul.f32 %v3883_v40, %v218_v0 }
  0x18   :  { %3598 = vmatprep.subr.bf16.mxu0 %v3691_v6  ;;  %3672 = vmatprep.subr.bf16.mxu1 %v3691_v6  ;;  %v267_v51 = vmul.f32 %v3883_v40, %v199_v5  ;;  %v271_v5 = vmul.f32 %v3883_v40, %v203_v16  ;;  %v220_v28 = vld [vmem:[%s9730_s0 + $0x31a] sm:$0xff]  ;;  %v222_v9 = vld [vmem:[%s9730_s0 + $0x332] sm:$0xff]  ;;  %v275_v16 = vmul.f32 %v3883_v40, %v207_v24  ;;  %v224_v27 = vld [vmem:[%s9730_s0 + $0x34a] sm:$0xff] }
  0x19   :  { %v223_v29 = vld [vmem:[%s9730_s0 + $0x33a] sm:$0xff]  ;;  %v225_v26 = vld [vmem:[%s9730_s0 + $0x352] sm:$0xff]  ;;  %v279_v24 = vmul.f32 %v3883_v40, %v211_v33  ;;  %v287_v18 = vmul.f32 %v3883_v40, %v219_v11  ;;  %v288_v14 = vmul.f32 %v3883_v40, %v220_v28  ;;  %v289_v33 = vmul.f32 %v3883_v40, %v221_v10 }
  0x1a   :  { %v292_v44 = vmul.f32 %v3883_v40, %v224_v27  ;;  %v293_v49 = vmul.f32 %v3883_v40, %v225_v26  ;;  %v4118_v50 = vadd.f32 %v263_v36, %v3874_v37  ;;  %v4121_v63 = vadd.f32 %v264_v41, %v3877_v38  ;;  %v394_v0 = vld [vmem:[%s9730_s0 + $0x214] sm:$0xff] }
  0x1b   :  { %3599 = vmatpush3.bf16.msra.mxu0 %v3691_v6  ;;  %3680 = vmatpush3.bf16.msra.mxu1 %v3691_v6  ;;  %v200_v6 = vld [vmem:[%s9730_s0 + $0x22a] sm:$0xff]  ;;  %v4124_v11 = vadd.f32 %v265_v42, %v3880_v39  ;;  %v4127_v28 = vadd.f32 %v266_v43, %v3898_v45  ;;  %v4139_v37 = vadd.f32 %v270_v62, %v3922_v53 }
  0x1c   :  { %3600 = vmatprep.subr.bf16.mxu0 %v3692_v7  ;;  %3673 = vmatprep.subr.bf16.mxu1 %v3692_v7  ;;  %v268_v52 = vmul.f32 %v3883_v40, %v200_v6  ;;  %v272_v6 = vmul.f32 %v3883_v40, %v204_v17  ;;  %v276_v17 = vmul.f32 %v3883_v40, %v208_v30  ;;  %v393_v62 = vld [vmem:[%s9730_s0 + $0x204] sm:$0xff] }
  0x1d   :  { %v280_v30 = vmul.f32 %v3883_v40, %v212_v34  ;;  %v290_v34 = vmul.f32 %v3883_v40, %v222_v9  ;;  %v4130_v9 = vadd.f32 %v267_v51, %v3901_v46  ;;  %v4142_v38 = vadd.f32 %v271_v5, %v3925_v54  ;;  %v395_v5 = vld [vmem:[%s9730_s0 + $0x21c] sm:$0xff] }
  0x1e   :  { %v4133_v10 = vadd.f32 %v268_v52, %v3904_v47  ;;  %v4145_v39 = vadd.f32 %v272_v6, %v3928_v55  ;;  %v4151_v46 = vadd.f32 %v274_v15, %v3934_v57  ;;  %v4154_v47 = vadd.f32 %v275_v16, %v3937_v58  ;;  %v396_v6 = vld [vmem:[%s9730_s0 + $0x22c] sm:$0xff]  ;;  %v398_v15 = vld [vmem:[%s9730_s0 + $0x244] sm:$0xff] }
  0x1f   :  { %3601 = vmatpush3.bf16.msra.mxu0 %v3692_v7  ;;  %3681 = vmatpush3.bf16.msra.mxu1 %v3692_v7  ;;  %v201_v7 = vld [vmem:[%s9730_s0 + $0x232] sm:$0xff]  ;;  %v4163_v54 = vadd.f32 %v278_v23, %v3958_v1  ;;  %v4166_v55 = vadd.f32 %v279_v24, %v3961_v2  ;;  %v4175_v58 = vadd.f32 %v282_v32, %v3979_v8  ;;  %v9860_v1 = vld [vmem:[#allocation10_spill] sm:$0xff]  ;;  %v403_v24 = vld [vmem:[%s9730_s0 + $0x27c] sm:$0xff] }
  0x20   :  { %v269_v61 = vmul.f32 %v3883_v40, %v201_v7  ;;  %v273_v7 = vmul.f32 %v3883_v40, %v205_v22  ;;  %v277_v22 = vmul.f32 %v3883_v40, %v209_v31  ;;  %v281_v31 = vmul.f32 %v3883_v40, %v213_v35  ;;  %v9862_v2 = vld [vmem:[#allocation11_spill] sm:$0xff]  ;;  %v9868_v8 = vld [vmem:[#allocation14_spill] sm:$0xff] }
  0x21   :  { %v291_v35 = vmul.f32 %v3883_v40, %v223_v29  ;;  %v4184_v27 = vadd.f32 %v285_v20, %v9860_v1  ;;  %v4187_v29 = vadd.f32 %v286_v19, %v9862_v2  ;;  %v4196_v42 = vadd.f32 %v289_v33, %v9868_v8  ;;  %v9874_v20 = vld [vmem:[#allocation17_spill] sm:$0xff]  ;;  %v9876_v19 = vld [vmem:[#allocation18_spill] sm:$0xff]  ;;  %v402_v23 = vld [vmem:[%s9730_s0 + $0x274] sm:$0xff] }
  0x22   :  { %v4136_v26 = vadd.f32 %v269_v61, %v3907_v48  ;;  %v4148_v45 = vadd.f32 %v273_v7, %v3931_v56  ;;  %v4157_v48 = vadd.f32 %v276_v17, %v3940_v59  ;;  %v4160_v53 = vadd.f32 %v277_v22, %v3943_v60  ;;  %v392_v61 = vld [vmem:[%s9730_s0 + $0x1fc] sm:$0xff]  ;;  %v397_v7 = vld [vmem:[%s9730_s0 + $0x234] sm:$0xff]  ;;  %v399_v16 = vld [vmem:[%s9730_s0 + $0x24c] sm:$0xff] }
  0x23   :  { %v4169_v56 = vadd.f32 %v280_v30, %v3964_v3  ;;  %v4172_v57 = vadd.f32 %v281_v31, %v3967_v4  ;;  %v4178_v59 = vadd.f32 %v283_v25, %v3982_v12  ;;  %v4181_v60 = vadd.f32 %v284_v21, %v3985_v13  ;;  %9861 = vst [vmem:[#allocation10_spill] sm:$0xff] %v4184_v27  ;;  %v9864_v3 = vld [vmem:[#allocation12_spill] sm:$0xff]  ;;  %v9866_v4 = vld [vmem:[#allocation13_spill] sm:$0xff]  ;;  %v9870_v12 = vld [vmem:[#allocation15_spill] sm:$0xff] }
  0x24   :  { %9863 = vst [vmem:[#allocation11_spill] sm:$0xff] %v4187_v29  ;;  %v4190_v36 = vadd.f32 %v287_v18, %v9864_v3  ;;  %v4193_v41 = vadd.f32 %v288_v14, %v9866_v4  ;;  %9869 = vst [vmem:[#allocation14_spill] sm:$0xff] %v4196_v42  ;;  %v4199_v25 = vadd.f32 %v290_v34, %v9870_v12  ;;  %v9872_v13 = vld [vmem:[#allocation16_spill] sm:$0xff]  ;;  %v9878_v18 = vld [vmem:[#allocation5_spill] sm:$0xff] }
  0x25   :  { %v4202_v21 = vadd.f32 %v291_v35, %v9872_v13  ;;  %v4205_v43 = vadd.f32 %v292_v44, %v9874_v20  ;;  %v4208_v51 = vadd.f32 %v293_v49, %v9876_v19  ;;  %v424_v52 = vsub.s32 2, %v9878_v18  ;;  %v391_v14 = vld [vmem:[%s9730_s0 + $0x1ec] sm:$0xff]  ;;  %v400_v17 = vld [vmem:[%s9730_s0 + $0x25c] sm:$0xff]  ;;  %v401_v22 = vld [vmem:[%s9730_s0 + $0x264] sm:$0xff] }
  0x26   :  { %9865 = vst [vmem:[#allocation12_spill] sm:$0xff] %v4190_v36  ;;  %9867 = vst [vmem:[#allocation13_spill] sm:$0xff] %v4193_v41  ;;  %v9879_v30 = vld [vmem:[#allocation6_spill] sm:$0xff]  ;;  %v405_v33 = vld [vmem:[%s9730_s0 + $0x294] sm:$0xff] }
  0x27   :  { %9871 = vst [vmem:[#allocation15_spill] sm:$0xff] %v4199_v25  ;;  %9873 = vst [vmem:[#allocation16_spill] sm:$0xff] %v4202_v21  ;;  %v4251_v31 = vrot.slane %v9879_v30, %v424_v52  ;;  %v404_v32 = vld [vmem:[%s9730_s0 + $0x28c] sm:$0xff]  ;;  %v406_v34 = vld [vmem:[%s9730_s0 + $0x2a4] sm:$0xff] }
  0x28   :  { %9875 = vst [vmem:[#allocation17_spill] sm:$0xff] %v4205_v43  ;;  %9877 = vst [vmem:[#allocation18_spill] sm:$0xff] %v4208_v51  ;;  %v407_v35 = vld [vmem:[%s9730_s0 + $0x2ac] sm:$0xff]  ;;  %v408_v44 = vld [vmem:[%s9730_s0 + $0x2bc] sm:$0xff] }
  0x29   :  { %9880 = vst [vmem:[#allocation19_spill] sm:$0xff] %v4251_v31  ;;  %v409_v49 = vld [vmem:[%s9730_s0 + $0x2c4] sm:$0xff]  ;;  %v459_v1 = vmul.f32 %v4251_v31, %v391_v14  ;;  %v460_v2 = vmul.f32 %v4251_v31, %v392_v61  ;;  %v461_v3 = vmul.f32 %v4251_v31, %v393_v62  ;;  %v462_v4 = vmul.f32 %v4251_v31, %v394_v0  ;;  %v410_v8 = vld [vmem:[%s9730_s0 + $0x2d4] sm:$0xff]  ;;  %v411_v12 = vld [vmem:[%s9730_s0 + $0x2dc] sm:$0xff] }
  0x2a   :  { %v412_v13 = vld [vmem:[%s9730_s0 + $0x2ec] sm:$0xff]  ;;  %v463_v20 = vmul.f32 %v4251_v31, %v395_v5  ;;  %v464_v19 = vmul.f32 %v4251_v31, %v396_v6  ;;  %v465_v52 = vmul.f32 %v4251_v31, %v397_v7  ;;  %v466_v14 = vmul.f32 %v4251_v31, %v398_v15  ;;  %v413_v61 = vld [vmem:[%s9730_s0 + $0x2f4] sm:$0xff]  ;;  %v414_v62 = vld [vmem:[%s9730_s0 + $0x304] sm:$0xff] }
  0x2b   :  { %v415_v0 = vld [vmem:[%s9730_s0 + $0x30c] sm:$0xff]  ;;  %v467_v5 = vmul.f32 %v4251_v31, %v399_v16  ;;  %v468_v6 = vmul.f32 %v4251_v31, %v400_v17  ;;  %v469_v7 = vmul.f32 %v4251_v31, %v401_v22  ;;  %v470_v15 = vmul.f32 %v4251_v31, %v402_v23  ;;  %v416_v40 = vld [vmem:[%s9730_s0 + $0x31c] sm:$0xff]  ;;  %v417_v30 = vld [vmem:[%s9730_s0 + $0x324] sm:$0xff] }
  0x2c   :  { %v418_v18 = vld [vmem:[%s9730_s0 + $0x334] sm:$0xff]  ;;  %v471_v16 = vmul.f32 %v4251_v31, %v403_v24  ;;  %v472_v17 = vmul.f32 %v4251_v31, %v404_v32  ;;  %v473_v22 = vmul.f32 %v4251_v31, %v405_v33  ;;  %v474_v23 = vmul.f32 %v4251_v31, %v406_v34  ;;  %v419_v51 = vld [vmem:[%s9730_s0 + $0x33c] sm:$0xff]  ;;  %v420_v43 = vld [vmem:[%s9730_s0 + $0x34c] sm:$0xff] }
  0x2d   :  { %v421_v21 = vld [vmem:[%s9730_s0 + $0x354] sm:$0xff]  ;;  %v475_v24 = vmul.f32 %v4251_v31, %v407_v35  ;;  %v476_v32 = vmul.f32 %v4251_v31, %v408_v44  ;;  %v477_v33 = vmul.f32 %v4251_v31, %v409_v49  ;;  %v478_v34 = vmul.f32 %v4251_v31, %v410_v8 }
  0x2e   :  { %v479_v25 = vmul.f32 %v4251_v31, %v411_v12  ;;  %v480_v42 = vmul.f32 %v4251_v31, %v412_v13  ;;  %v481_v41 = vmul.f32 %v4251_v31, %v413_v61  ;;  %v482_v36 = vmul.f32 %v4251_v31, %v414_v62 }
  0x2f   :  { %v483_v29 = vmul.f32 %v4251_v31, %v415_v0  ;;  %v484_v27 = vmul.f32 %v4251_v31, %v416_v40  ;;  %v485_v35 = vmul.f32 %v4251_v31, %v417_v30  ;;  %v486_v44 = vmul.f32 %v4251_v31, %v418_v18  ;;  %v3187_v0 = vld [vmem:[%s9730_s0 + $0x240] sm:$0xff] }
  0x30   :  { %v487_v49 = vmul.f32 %v4251_v31, %v419_v51  ;;  %v488_v8 = vmul.f32 %v4251_v31, %v420_v43  ;;  %v489_v12 = vmul.f32 %v4251_v31, %v421_v21  ;;  %v4339_v13 = vadd.f32 %v459_v1, %v4118_v50  ;;  %v3209_v31 = vld [vmem:[%s9730_s0 + $0x348] sm:$0xff] }
  0x31   :  { %v4342_v61 = vadd.f32 %v460_v2, %v4121_v63  ;;  %v4345_v62 = vadd.f32 %v461_v3, %v4124_v11  ;;  %v4348_v40 = vadd.f32 %v462_v4, %v4127_v28  ;;  %v4351_v18 = vadd.f32 %v463_v20, %v4130_v9 }
  0x32   :  { %v4354_v51 = vadd.f32 %v464_v19, %v4133_v10  ;;  %v4357_v21 = vadd.f32 %v465_v52, %v4136_v26  ;;  %v4360_v50 = vadd.f32 %v466_v14, %v4139_v37  ;;  %v4363_v63 = vadd.f32 %v467_v5, %v4142_v38  ;;  %v3185_v52 = vld [vmem:[%s9730_s0 + $0x228] sm:$0xff]  ;;  %v3186_v14 = vld [vmem:[%s9730_s0 + $0x230] sm:$0xff] }
  0x33   :  { %v4366_v11 = vadd.f32 %v468_v6, %v4145_v39  ;;  %v4369_v28 = vadd.f32 %v469_v7, %v4148_v45  ;;  %v4372_v9 = vadd.f32 %v470_v15, %v4151_v46  ;;  %v4375_v10 = vadd.f32 %v471_v16, %v4154_v47  ;;  %v3188_v5 = vld [vmem:[%s9730_s0 + $0x248] sm:$0xff]  ;;  %v3189_v6 = vld [vmem:[%s9730_s0 + $0x258] sm:$0xff]  ;;  %v3190_v7 = vld [vmem:[%s9730_s0 + $0x260] sm:$0xff] }
  0x34   :  { %v4378_v26 = vadd.f32 %v472_v17, %v4157_v48  ;;  %v4381_v37 = vadd.f32 %v473_v22, %v4160_v53  ;;  %v4384_v38 = vadd.f32 %v474_v23, %v4163_v54  ;;  %v4387_v39 = vadd.f32 %v475_v24, %v4166_v55  ;;  %v9881_v54 = vld [vmem:[#allocation10_spill] sm:$0xff]  ;;  %v9883_v55 = vld [vmem:[#allocation11_spill] sm:$0xff]  ;;  %v3192_v16 = vld [vmem:[%s9730_s0 + $0x278] sm:$0xff] }
  0x35   :  { %v4390_v45 = vadd.f32 %v476_v32, %v4169_v56  ;;  %v4393_v46 = vadd.f32 %v477_v33, %v4172_v57  ;;  %v4396_v47 = vadd.f32 %v478_v34, %v4175_v58  ;;  %v4399_v48 = vadd.f32 %v479_v25, %v4178_v59  ;;  %v9885_v56 = vld [vmem:[#allocation12_spill] sm:$0xff]  ;;  %v9887_v57 = vld [vmem:[#allocation13_spill] sm:$0xff]  ;;  %v9889_v58 = vld [vmem:[#allocation14_spill] sm:$0xff] }
  0x36   :  { %v4402_v53 = vadd.f32 %v480_v42, %v4181_v60  ;;  %v4405_v43 = vadd.f32 %v481_v41, %v9881_v54  ;;  %v4408_v30 = vadd.f32 %v482_v36, %v9883_v55  ;;  %v4411_v1 = vadd.f32 %v483_v29, %v9885_v56  ;;  %v9891_v59 = vld [vmem:[#allocation15_spill] sm:$0xff]  ;;  %v9893_v60 = vld [vmem:[#allocation16_spill] sm:$0xff]  ;;  %v9895_v41 = vld [vmem:[#allocation17_spill] sm:$0xff] }
  0x37   :  { %v4414_v2 = vadd.f32 %v484_v27, %v9887_v57  ;;  %v4417_v3 = vadd.f32 %v485_v35, %v9889_v58  ;;  %v4420_v25 = vadd.f32 %v486_v44, %v9891_v59  ;;  %v4423_v42 = vadd.f32 %v487_v49, %v9893_v60  ;;  %v9897_v36 = vld [vmem:[#allocation18_spill] sm:$0xff]  ;;  %v9899_v29 = vld [vmem:[#allocation5_spill] sm:$0xff]  ;;  %v3184_v27 = vld [vmem:[%s9730_s0 + $0x218] sm:$0xff] }
  0x38   :  { %9882 = vst [vmem:[#allocation10_spill] sm:$0xff] %v4405_v43  ;;  %9884 = vst [vmem:[#allocation11_spill] sm:$0xff] %v4408_v30  ;;  %v4426_v4 = vadd.f32 %v488_v8, %v9895_v41  ;;  %v4429_v20 = vadd.f32 %v489_v12, %v9897_v36  ;;  %v621_v19 = vsub.s32 3, %v9899_v29  ;;  %v3191_v15 = vld [vmem:[%s9730_s0 + $0x270] sm:$0xff]  ;;  %v3193_v17 = vld [vmem:[%s9730_s0 + $0x288] sm:$0xff] }
  0x39   :  { %9886 = vst [vmem:[#allocation12_spill] sm:$0xff] %v4411_v1  ;;  %9888 = vst [vmem:[#allocation13_spill] sm:$0xff] %v4414_v2  ;;  %v3194_v22 = vld [vmem:[%s9730_s0 + $0x290] sm:$0xff]  ;;  %v3195_v23 = vld [vmem:[%s9730_s0 + $0x2a0] sm:$0xff] }
  0x3a   :  { %9890 = vst [vmem:[#allocation14_spill] sm:$0xff] %v4417_v3  ;;  %9892 = vst [vmem:[#allocation15_spill] sm:$0xff] %v4420_v25  ;;  %v3196_v24 = vld [vmem:[%s9730_s0 + $0x2a8] sm:$0xff]  ;;  %v3197_v34 = vld [vmem:[%s9730_s0 + $0x2b8] sm:$0xff] }
  0x3b   :  { %9894 = vst [vmem:[#allocation16_spill] sm:$0xff] %v4423_v42  ;;  %9896 = vst [vmem:[#allocation17_spill] sm:$0xff] %v4426_v4  ;;  %v9900_v32 = vld [vmem:[#allocation6_spill] sm:$0xff]  ;;  %v3198_v35 = vld [vmem:[%s9730_s0 + $0x2c0] sm:$0xff] }
  0x3c   :  { %9898 = vst [vmem:[#allocation18_spill] sm:$0xff] %v4429_v20  ;;  %v4472_v33 = vrot.slane %v9900_v32, %v621_v19  ;;  %v3199_v44 = vld [vmem:[%s9730_s0 + $0x2d0] sm:$0xff]  ;;  %v3200_v8 = vld [vmem:[%s9730_s0 + $0x2d8] sm:$0xff]  ;;  %v3201_v12 = vld [vmem:[%s9730_s0 + $0x2e8] sm:$0xff] }
  0x3d   :  { %v3202_v54 = vld [vmem:[%s9730_s0 + $0x2f0] sm:$0xff]  ;;  %v3203_v59 = vld [vmem:[%s9730_s0 + $0x300] sm:$0xff]  ;;  %v3204_v60 = vld [vmem:[%s9730_s0 + $0x308] sm:$0xff] }
  0x3e   :  { %9901 = vst [vmem:[#allocation20_spill] sm:$0xff] %v4472_v33  ;;  %v656_v55 = vmul.f32 %v3184_v27, %v4472_v33  ;;  %v657_v56 = vmul.f32 %v3185_v52, %v4472_v33  ;;  %v658_v57 = vmul.f32 %v3186_v14, %v4472_v33  ;;  %v659_v58 = vmul.f32 %v3187_v0, %v4472_v33  ;;  %v3205_v41 = vld [vmem:[%s9730_s0 + $0x318] sm:$0xff]  ;;  %v3206_v14 = vld [vmem:[%s9730_s0 + $0x320] sm:$0xff]  ;;  %v3207_v0 = vld [vmem:[%s9730_s0 + $0x330] sm:$0xff] }
  0x3f   :  { %v660_v36 = vmul.f32 %v3188_v5, %v4472_v33  ;;  %v661_v19 = vmul.f32 %v3189_v6, %v4472_v33  ;;  %v662_v27 = vmul.f32 %v3190_v7, %v4472_v33  ;;  %v663_v52 = vmul.f32 %v3191_v15, %v4472_v33  ;;  %v3208_v49 = vld [vmem:[%s9730_s0 + $0x338] sm:$0xff]  ;;  %v3210_v32 = vld [vmem:[%s9730_s0 + $0x350] sm:$0xff]  ;;  %v3211_v29 = vld [vmem:[%s9730_s0 + $0x360] sm:$0xff] }
  0x40   :  { %v664_v5 = vmul.f32 %v3192_v16, %v4472_v33  ;;  %v665_v6 = vmul.f32 %v3193_v17, %v4472_v33  ;;  %v666_v7 = vmul.f32 %v3194_v22, %v4472_v33  ;;  %v667_v15 = vmul.f32 %v3195_v23, %v4472_v33  ;;  %v3212_v20 = vld [vmem:[%s9730_s0 + $0x368] sm:$0xff]  ;;  %v3213_v4 = vld [vmem:[%s9730_s0 + $0x378] sm:$0xff]  ;;  %v3214_v42 = vld [vmem:[%s9730_s0 + $0x380] sm:$0xff] }
  0x41   :  { %v668_v16 = vmul.f32 %v3196_v24, %v4472_v33  ;;  %v669_v17 = vmul.f32 %v3197_v34, %v4472_v33  ;;  %v670_v22 = vmul.f32 %v3198_v35, %v4472_v33  ;;  %v671_v23 = vmul.f32 %v3199_v44, %v4472_v33 }
  0x42   :  { %v672_v24 = vmul.f32 %v3200_v8, %v4472_v33  ;;  %v673_v34 = vmul.f32 %v3201_v12, %v4472_v33  ;;  %v674_v35 = vmul.f32 %v3202_v54, %v4472_v33  ;;  %v675_v44 = vmul.f32 %v3203_v59, %v4472_v33 }
  0x43   :  { %v676_v25 = vmul.f32 %v3204_v60, %v4472_v33  ;;  %v677_v3 = vmul.f32 %v3205_v41, %v4472_v33  ;;  %v678_v2 = vmul.f32 %v3206_v14, %v4472_v33  ;;  %v679_v1 = vmul.f32 %v3207_v0, %v4472_v33 }
  0x44   :  { %v680_v30 = vmul.f32 %v3208_v49, %v4472_v33  ;;  %v681_v43 = vmul.f32 %v3209_v31, %v4472_v33  ;;  %v682_v8 = vmul.f32 %v3210_v32, %v4472_v33  ;;  %v683_v12 = vmul.f32 %v3211_v29, %v4472_v33 }
  0x45   :  { %v684_v54 = vmul.f32 %v3212_v20, %v4472_v33  ;;  %v685_v59 = vmul.f32 %v3213_v4, %v4472_v33  ;;  %v686_v60 = vmul.f32 %v3214_v42, %v4472_v33  ;;  %v4561_v41 = vadd.f32 %v656_v55, %v4339_v13  ;;  %v9904_v4 = vld [vmem:[#allocation11_spill] sm:$0xff]  ;;  %v9906_v55 = vld [vmem:[#allocation12_spill] sm:$0xff]  ;;  %v54_v33 = vld [vmem:[%s9730_s0 + $0x120] sm:$0xff] }
  0x46   :  { %v4564_v14 = vadd.f32 %v657_v56, %v4342_v61  ;;  %v4567_v49 = vadd.f32 %v658_v57, %v4345_v62  ;;  %v4570_v31 = vadd.f32 %v659_v58, %v4348_v40  ;;  %v4573_v29 = vadd.f32 %v660_v36, %v4351_v18  ;;  %v35_v57 = vld [vmem:[%s9730_s0 + $0x38] sm:$0xff]  ;;  %v36_v58 = vld [vmem:[%s9730_s0 + $0x48] sm:$0xff] }
  0x47   :  { %v4576_v20 = vadd.f32 %v661_v19, %v4354_v51  ;;  %v4579_v42 = vadd.f32 %v662_v27, %v4357_v21  ;;  %v4582_v13 = vadd.f32 %v663_v52, %v4360_v50  ;;  %v4585_v61 = vadd.f32 %v664_v5, %v4363_v63  ;;  %v9912_v19 = vld [vmem:[#allocation15_spill] sm:$0xff]  ;;  %v9914_v52 = vld [vmem:[#allocation16_spill] sm:$0xff]  ;;  %v39_v5 = vld [vmem:[%s9730_s0 + $0x68] sm:$0xff] }
  0x48   :  { %v4588_v62 = vadd.f32 %v665_v6, %v4366_v11  ;;  %v4591_v40 = vadd.f32 %v666_v7, %v4369_v28  ;;  %v4594_v18 = vadd.f32 %v667_v15, %v4372_v9  ;;  %v4597_v51 = vadd.f32 %v668_v16, %v4375_v10  ;;  %v30_v28 = vld [vmem:[%s9730_s0] sm:$0xff]  ;;  %v40_v6 = vld [vmem:[%s9730_s0 + $0x78] sm:$0xff]  ;;  %v9918_v16 = vld [vmem:[#allocation18_spill] sm:$0xff] }
  0x49   :  { %v4600_v21 = vadd.f32 %v669_v17, %v4378_v26  ;;  %v4603_v50 = vadd.f32 %v670_v22, %v4381_v37  ;;  %v4606_v63 = vadd.f32 %v671_v23, %v4384_v38  ;;  %v4609_v11 = vadd.f32 %v672_v24, %v4387_v39  ;;  %v31_v38 = vld [vmem:[%s9730_s0 + $0x8] sm:$0xff]  ;;  %v32_v39 = vld [vmem:[%s9730_s0 + $0x18] sm:$0xff]  ;;  %v9916_v7 = vld [vmem:[#allocation17_spill] sm:$0xff] }
  0x4a   :  { %v4615_v9 = vadd.f32 %v673_v34, %v4390_v45  ;;  %v4618_v10 = vadd.f32 %v674_v35, %v4393_v46  ;;  %v4621_v26 = vadd.f32 %v675_v44, %v4396_v47  ;;  %v4624_v37 = vadd.f32 %v676_v25, %v4399_v48  ;;  %v33_v45 = vld [vmem:[%s9730_s0 + $0x20] sm:$0xff]  ;;  %v34_v46 = vld [vmem:[%s9730_s0 + $0x30] sm:$0xff]  ;;  %v9902_v48 = vld [vmem:[#allocation10_spill] sm:$0xff] }
  0x4b   :  { %v4639_v47 = vadd.f32 %v677_v3, %v4402_v53  ;;  %v4642_v25 = vadd.f32 %v678_v2, %v9902_v48  ;;  %v4645_v32 = vadd.f32 %v679_v1, %v9904_v4  ;;  %v4648_v56 = vadd.f32 %v680_v30, %v9906_v55  ;;  %v37_v53 = vld [vmem:[%s9730_s0 + $0x50] sm:$0xff]  ;;  %v38_v1 = vld [vmem:[%s9730_s0 + $0x60] sm:$0xff]  ;;  %v9910_v30 = vld [vmem:[#allocation14_spill] sm:$0xff] }
  0x4c   :  { %v9908_v2 = vld [vmem:[#allocation13_spill] sm:$0xff]  ;;  %v4666_v36 = vadd.f32 %v682_v8, %v9910_v30  ;;  %v4669_v27 = vadd.f32 %v683_v12, %v9912_v19  ;;  %v4672_v0 = vadd.f32 %v684_v54, %v9914_v52  ;;  %v4684_v15 = vadd.f32 %v685_v59, %v9916_v7  ;;  %v42_v22 = vld [vmem:[%s9730_s0 + $0x90] sm:$0xff]  ;;  %v43_v23 = vld [vmem:[%s9730_s0 + $0x98] sm:$0xff] }
  0x4d   :  { %9903 = vst [vmem:[#allocation10_spill] sm:$0xff] %v4642_v25  ;;  %9905 = vst [vmem:[#allocation11_spill] sm:$0xff] %v4645_v32  ;;  %v4663_v3 = vadd.f32 %v681_v43, %v9908_v2  ;;  %v41_v43 = vld [vmem:[%s9730_s0 + $0x80] sm:$0xff]  ;;  %v4687_v17 = vadd.f32 %v686_v60, %v9918_v16  ;;  %v44_v24 = vld [vmem:[%s9730_s0 + $0xa8] sm:$0xff] }
  0x4e   :  { %9907 = vst [vmem:[#allocation12_spill] sm:$0xff] %v4648_v56  ;;  %9911 = vst [vmem:[#allocation14_spill] sm:$0xff] %v4666_v36  ;;  %v45_v34 = vld [vmem:[%s9730_s0 + $0xb0] sm:$0xff]  ;;  %v46_v35 = vld [vmem:[%s9730_s0 + $0xc0] sm:$0xff] }
  0x4f   :  { %9909 = vst [vmem:[#allocation13_spill] sm:$0xff] %v4663_v3  ;;  %9913 = vst [vmem:[#allocation15_spill] sm:$0xff] %v4669_v27  ;;  %v47_v44 = vld [vmem:[%s9730_s0 + $0xc8] sm:$0xff]  ;;  %v48_v8 = vld [vmem:[%s9730_s0 + $0xd8] sm:$0xff] }
  0x50   :  { %9915 = vst [vmem:[#allocation16_spill] sm:$0xff] %v4672_v0  ;;  %9917 = vst [vmem:[#allocation17_spill] sm:$0xff] %v4684_v15  ;;  %v49_v12 = vld [vmem:[%s9730_s0 + $0xe0] sm:$0xff]  ;;  %v9920_v54 = vld [vmem:[#allocation8_spill] sm:$0xff] }
  0x51   :  { %9919 = vst [vmem:[#allocation18_spill] sm:$0xff] %v4687_v17  ;;  %v4714_v59 = vmul.f32 %v9920_v54, %v30_v28  ;;  %v9921_v60 = vld [vmem:[#allocation5_spill] sm:$0xff]  ;;  %v9923_v4 = vld [vmem:[#allocation6_spill] sm:$0xff]  ;;  %v50_v2 = vld [vmem:[%s9730_s0 + $0xf0] sm:$0xff]  ;;  %v4731_v28 = vmul.f32 %v9920_v54, %v31_v38  ;;  %v4734_v52 = vmul.f32 %v9920_v54, %v32_v39  ;;  %v4737_v7 = vmul.f32 %v9920_v54, %v33_v45 }
  0x52   :  { %v9922_v48 = vsub.s32 4, %v9921_v60  ;;  %v51_v30 = vld [vmem:[%s9730_s0 + $0xf8] sm:$0xff]  ;;  %v52_v19 = vld [vmem:[%s9730_s0 + $0x108] sm:$0xff]  ;;  %v4740_v16 = vmul.f32 %v9920_v54, %v34_v46  ;;  %v4752_v39 = vmul.f32 %v9920_v54, %v35_v57  ;;  %v4755_v45 = vmul.f32 %v9920_v54, %v36_v58  ;;  %v57_v15 = vld [vmem:[%s9730_s0 + $0x140] sm:$0xff] }
  0x53   :  { %v55_v38 = vld [vmem:[%s9730_s0 + $0x128] sm:$0xff]  ;;  %v4758_v46 = vmul.f32 %v9920_v54, %v37_v53  ;;  %v56_v17 = vld [vmem:[%s9730_s0 + $0x138] sm:$0xff]  ;;  %v58_v57 = vld [vmem:[%s9730_s0 + $0x150] sm:$0xff]  ;;  %v4773_v58 = vmul.f32 %v9920_v54, %v39_v5  ;;  %v4776_v53 = vmul.f32 %v9920_v54, %v40_v6  ;;  %v4792_v6 = vmul.f32 %v9920_v54, %v42_v22 }
  0x54   :  { %v4719_v55 = vrot.slane %v9923_v4, %v9922_v48  ;;  %9925 = vst [vmem:[#allocation6_spill] sm:$0xff] %v4740_v16  ;;  %v53_v48 = vld [vmem:[%s9730_s0 + $0x110] sm:$0xff]  ;;  %9926 = vst [vmem:[#allocation21_spill] sm:$0xff] %v4752_v39  ;;  %v4761_v16 = vmul.f32 %v9920_v54, %v38_v1  ;;  %v4779_v1 = vmul.f32 %v9920_v54, %v41_v43  ;;  %v164_v22 = vld [vmem:[%s9730_s0 + $0x1a] sm:$0xff] }
  0x55   :  { %9927 = vst [vmem:[#allocation22_spill] sm:$0xff] %v4755_v45  ;;  %9928 = vst [vmem:[#allocation23_spill] sm:$0xff] %v4758_v46  ;;  %v59_v46 = vld [vmem:[%s9730_s0 + $0x158] sm:$0xff]  ;;  %v60_v45 = vld [vmem:[%s9730_s0 + $0x168] sm:$0xff]  ;;  %v4795_v43 = vmul.f32 %v9920_v54, %v43_v23 }
  0x56   :  { %9924 = vst [vmem:[#allocation8_spill] sm:$0xff] %v4719_v55  ;;  %9929 = vst [vmem:[#allocation24_spill] sm:$0xff] %v4761_v16  ;;  %v1013_v16 = vsub.s32 5, %v9921_v60  ;;  %v61_v5 = vld [vmem:[%s9730_s0 + $0x170] sm:$0xff]  ;;  %v4798_v60 = vmul.f32 %v9920_v54, %v44_v24  ;;  %v62_v23 = vld [vmem:[%s9730_s0 + $0x1e0] sm:$0xff]  ;;  %v4816_v24 = vmul.f32 %v9920_v54, %v46_v35 }
  0x57   :  { %9930 = vst [vmem:[#allocation25_spill] sm:$0xff] %v4773_v58  ;;  %9931 = vst [vmem:[#allocation26_spill] sm:$0xff] %v4776_v53  ;;  %v162_v53 = vld [vmem:[%s9730_s0 + $0x2] sm:$0xff]  ;;  %v163_v58 = vld [vmem:[%s9730_s0 + $0xa] sm:$0xff] }
  0x58   :  { %9932 = vst [vmem:[#allocation27_spill] sm:$0xff] %v4779_v1  ;;  %9933 = vst [vmem:[#allocation28_spill] sm:$0xff] %v4792_v6  ;;  %v4801_v1 = vmul.f32 %v9920_v54, %v45_v34  ;;  %v4819_v34 = vmul.f32 %v9920_v54, %v47_v44  ;;  %v166_v6 = vld [vmem:[%s9730_s0 + $0x32] sm:$0xff]  ;;  %v167_v35 = vld [vmem:[%s9730_s0 + $0x3a] sm:$0xff]  ;;  %v4837_v44 = vmul.f32 %v9920_v54, %v50_v2 }
  0x59   :  { %9934 = vst [vmem:[#allocation29_spill] sm:$0xff] %v4795_v43  ;;  %9935 = vst [vmem:[#allocation30_spill] sm:$0xff] %v4798_v60  ;;  %v4825_v60 = vmul.f32 %v9920_v54, %v49_v12  ;;  %v165_v43 = vld [vmem:[%s9730_s0 + $0x22] sm:$0xff]  ;;  %v4843_v12 = vmul.f32 %v9920_v54, %v52_v19  ;;  %v4861_v19 = vmul.f32 %v9920_v54, %v55_v38 }
  0x5a   :  { %9936 = vst [vmem:[#allocation31_spill] sm:$0xff] %v4801_v1  ;;  %9937 = vst [vmem:[#allocation32_spill] sm:$0xff] %v4816_v24  ;;  %v4822_v1 = vmul.f32 %v9920_v54, %v48_v8  ;;  %v4840_v8 = vmul.f32 %v9920_v54, %v51_v30  ;;  %v170_v2 = vld [vmem:[%s9730_s0 + $0x62] sm:$0xff]  ;;  %v4858_v30 = vmul.f32 %v9920_v54, %v54_v33  ;;  %v174_v24 = vld [vmem:[%s9730_s0 + $0x92] sm:$0xff] }
  0x5b   :  { %9938 = vst [vmem:[#allocation33_spill] sm:$0xff] %v4819_v34  ;;  %9940 = vst [vmem:[#allocation35_spill] sm:$0xff] %v4825_v60  ;;  %v4846_v60 = vmul.f32 %v9920_v54, %v53_v48  ;;  %v169_v34 = vld [vmem:[%s9730_s0 + $0x52] sm:$0xff]  ;;  %v171_v48 = vld [vmem:[%s9730_s0 + $0x6a] sm:$0xff]  ;;  %v4874_v33 = vrot.slane %v9923_v4, %v1013_v16  ;;  %v4877_v38 = vmul.f32 %v9920_v54, %v56_v17 }
  0x5c   :  { %9939 = vst [vmem:[#allocation34_spill] sm:$0xff] %v4822_v1  ;;  %9941 = vst [vmem:[#allocation36_spill] sm:$0xff] %v4837_v44  ;;  %v168_v1 = vld [vmem:[%s9730_s0 + $0x4a] sm:$0xff]  ;;  %v4899_v16 = vmul.f32 %v9920_v54, %v60_v45  ;;  %v4915_v45 = vmul.f32 %v9920_v54, %v62_v23  ;;  %v3275_v39 = vld [vmem:[%s9730_s0 + $0x362] sm:$0xff] }
  0x5d   :  { %9942 = vst [vmem:[#allocation37_spill] sm:$0xff] %v4840_v8  ;;  %9943 = vst [vmem:[#allocation38_spill] sm:$0xff] %v4843_v12  ;;  %v173_v12 = vld [vmem:[%s9730_s0 + $0x82] sm:$0xff]  ;;  %v176_v4 = vld [vmem:[%s9730_s0 + $0xaa] sm:$0xff] }
  0x5e   :  { %9944 = vst [vmem:[#allocation39_spill] sm:$0xff] %v4846_v60  ;;  %9945 = vst [vmem:[#allocation40_spill] sm:$0xff] %v4858_v30  ;;  %v172_v60 = vld [vmem:[%s9730_s0 + $0x7a] sm:$0xff]  ;;  %v4883_v30 = vmul.f32 %v9920_v54, %v58_v57  ;;  %v4902_v57 = vmul.f32 %v9920_v54, %v61_v5  ;;  %v3278_v0 = vld [vmem:[%s9730_s0 + $0x382] sm:$0xff] }
  0x5f   :  { %9946 = vst [vmem:[#allocation41_spill] sm:$0xff] %v4861_v19  ;;  %v9947_v8 = vld [vmem:[#allocation9_spill] sm:$0xff]  ;;  %9948 = vst [vmem:[#allocation42_spill] sm:$0xff] %v4874_v33  ;;  %v4880_v19 = vmul.f32 %v9920_v54, %v57_v15  ;;  %v4896_v15 = vmul.f32 %v9920_v54, %v59_v46  ;;  %v177_v33 = vld [vmem:[%s9730_s0 + $0xb2] sm:$0xff] }
  0x60   :  { %v230_v44 = vmul.f32 %v9947_v8, %v162_v53  ;;  %9949 = vst [vmem:[#allocation43_spill] sm:$0xff] %v4877_v38  ;;  %9951 = vst [vmem:[#allocation45_spill] sm:$0xff] %v4883_v30  ;;  %v175_v53 = vld [vmem:[%s9730_s0 + $0x9a] sm:$0xff]  ;;  %v231_v17 = vmul.f32 %v9947_v8, %v163_v58  ;;  %v178_v30 = vld [vmem:[%s9730_s0 + $0xc2] sm:$0xff]  ;;  %v232_v46 = vmul.f32 %v9947_v8, %v164_v22 }
  0x61   :  { %9950 = vst [vmem:[#allocation44_spill] sm:$0xff] %v4880_v19  ;;  %9952 = vst [vmem:[#allocation46_spill] sm:$0xff] %v4896_v15  ;;  %v179_v58 = vld [vmem:[%s9730_s0 + $0xca] sm:$0xff]  ;;  %v233_v5 = vmul.f32 %v9947_v8, %v165_v43  ;;  %v3248_v15 = vld [vmem:[%s9730_s0 + $0x21a] sm:$0xff]  ;;  %v4937_v43 = vmul.f32 %v9947_v8, %v168_v1  ;;  %v4940_v22 = vmul.f32 %v9947_v8, %v169_v34 }
  0x62   :  { %9953 = vst [vmem:[#allocation47_spill] sm:$0xff] %v4899_v16  ;;  %9954 = vst [vmem:[#allocation48_spill] sm:$0xff] %v4902_v57  ;;  %v4919_v57 = vmul.f32 %v9947_v8, %v166_v6  ;;  %v4922_v16 = vmul.f32 %v9947_v8, %v167_v35  ;;  %v3249_v19 = vld [vmem:[%s9730_s0 + $0x22a] sm:$0xff]  ;;  %v3250_v54 = vld [vmem:[%s9730_s0 + $0x232] sm:$0xff]  ;;  %v4943_v23 = vmul.f32 %v9947_v8, %v170_v2 }
  0x63   :  { %9955 = vst [vmem:[#allocation49_spill] sm:$0xff] %v4915_v45  ;;  %v3251_v6 = vld [vmem:[%s9730_s0 + $0x242] sm:$0xff]  ;;  %9958 = vst [vmem:[#allocation52_spill] sm:$0xff] %v4937_v43  ;;  %v4946_v35 = vadd.f32 %v230_v44, %v4714_v59  ;;  %v3252_v45 = vld [vmem:[%s9730_s0 + $0x24a] sm:$0xff]  ;;  %v4958_v34 = vmul.f32 %v9947_v8, %v171_v48  ;;  %v4961_v2 = vmul.f32 %v9947_v8, %v172_v60 }
  0x64   :  { %9956 = vst [vmem:[#allocation50_spill] sm:$0xff] %v4919_v57  ;;  %9957 = vst [vmem:[#allocation51_spill] sm:$0xff] %v4922_v16  ;;  %v3253_v38 = vld [vmem:[%s9730_s0 + $0x25a] sm:$0xff]  ;;  %v3254_v1 = vld [vmem:[%s9730_s0 + $0x262] sm:$0xff]  ;;  %v4964_v59 = vmul.f32 %v9947_v8, %v173_v12  ;;  %v4967_v44 = vadd.f32 %v231_v17, %v4731_v28  ;;  %v4979_v60 = vmul.f32 %v9947_v8, %v174_v24 }
  0x65   :  { %9959 = vst [vmem:[#allocation53_spill] sm:$0xff] %v4940_v22  ;;  %9960 = vst [vmem:[#allocation54_spill] sm:$0xff] %v4943_v23  ;;  %v3256_v23 = vld [vmem:[%s9730_s0 + $0x27a] sm:$0xff]  ;;  %v3257_v48 = vld [vmem:[%s9730_s0 + $0x28a] sm:$0xff]  ;;  %v4982_v12 = vmul.f32 %v9947_v8, %v175_v53  ;;  %v4985_v28 = vmul.f32 %v9947_v8, %v176_v4  ;;  %v4988_v17 = vadd.f32 %v232_v46, %v4734_v52 }
  0x66   :  { %9961 = vst [vmem:[#allocation55_spill] sm:$0xff] %v4946_v35  ;;  %9962 = vst [vmem:[#allocation56_spill] sm:$0xff] %v4958_v34  ;;  %v3255_v35 = vld [vmem:[%s9730_s0 + $0x272] sm:$0xff]  ;;  %v3260_v24 = vld [vmem:[%s9730_s0 + $0x2aa] sm:$0xff]  ;;  %v5000_v53 = vmul.f32 %v9947_v8, %v177_v33  ;;  %v5003_v4 = vmul.f32 %v9947_v8, %v178_v30  ;;  %v5006_v52 = vmul.f32 %v9947_v8, %v179_v58 }
  0x67   :  { %9963 = vst [vmem:[#allocation57_spill] sm:$0xff] %v4961_v2  ;;  %9964 = vst [vmem:[#allocation58_spill] sm:$0xff] %v4964_v59  ;;  %v3259_v59 = vld [vmem:[%s9730_s0 + $0x2a2] sm:$0xff]  ;;  %v5009_v46 = vadd.f32 %v233_v5, %v4737_v7  ;;  %v3263_v33 = vld [vmem:[%s9730_s0 + $0x2d2] sm:$0xff]  ;;  %v852_v5 = vmul.f32 %v3248_v15, %v4719_v55  ;;  %v856_v15 = vmul.f32 %v3252_v45, %v4719_v55 }
  0x68   :  { %9965 = vst [vmem:[#allocation59_spill] sm:$0xff] %v4967_v44  ;;  %9966 = vst [vmem:[#allocation60_spill] sm:$0xff] %v4979_v60  ;;  %v3258_v44 = vld [vmem:[%s9730_s0 + $0x292] sm:$0xff]  ;;  %v3264_v30 = vld [vmem:[%s9730_s0 + $0x2da] sm:$0xff]  ;;  %v860_v45 = vmul.f32 %v3256_v23, %v4719_v55  ;;  %v864_v23 = vmul.f32 %v3260_v24, %v4719_v55 }
  0x69   :  { %9967 = vst [vmem:[#allocation61_spill] sm:$0xff] %v4982_v12  ;;  %9968 = vst [vmem:[#allocation62_spill] sm:$0xff] %v4985_v28  ;;  %v3262_v28 = vld [vmem:[%s9730_s0 + $0x2c2] sm:$0xff]  ;;  %v3265_v7 = vld [vmem:[%s9730_s0 + $0x2ea] sm:$0xff]  ;;  %v868_v24 = vmul.f32 %v3264_v30, %v4719_v55 }
  0x6a   :  { %9969 = vst [vmem:[#allocation63_spill] sm:$0xff] %v4988_v17  ;;  %9970 = vst [vmem:[#allocation64_spill] sm:$0xff] %v5000_v53  ;;  %v3261_v17 = vld [vmem:[%s9730_s0 + $0x2ba] sm:$0xff]  ;;  %v3266_v58 = vld [vmem:[%s9730_s0 + $0x2f2] sm:$0xff] }
  0x6b   :  { %9971 = vst [vmem:[#allocation65_spill] sm:$0xff] %v5003_v4  ;;  %9972 = vst [vmem:[#allocation66_spill] sm:$0xff] %v5006_v52  ;;  %v854_v52 = vmul.f32 %v3250_v54, %v4719_v55  ;;  %v855_v4 = vmul.f32 %v3251_v6, %v4719_v55  ;;  %v3267_v53 = vld [vmem:[%s9730_s0 + $0x302] sm:$0xff]  ;;  %v3268_v12 = vld [vmem:[%s9730_s0 + $0x30a] sm:$0xff]  ;;  %v858_v54 = vmul.f32 %v3254_v1, %v4719_v55 }
  0x6c   :  { %9973 = vst [vmem:[#allocation67_spill] sm:$0xff] %v5009_v46  ;;  %v853_v46 = vmul.f32 %v3249_v19, %v4719_v55  ;;  %v3269_v60 = vld [vmem:[%s9730_s0 + $0x31a] sm:$0xff]  ;;  %v857_v19 = vmul.f32 %v3253_v38, %v4719_v55  ;;  %v859_v6 = vmul.f32 %v3255_v35, %v4719_v55  ;;  %v3270_v2 = vld [vmem:[%s9730_s0 + $0x322] sm:$0xff]  ;;  %v3271_v34 = vld [vmem:[%s9730_s0 + $0x332] sm:$0xff]  ;;  %v861_v38 = vmul.f32 %v3257_v48, %v4719_v55 }
  0x6d   :  { %v3272_v22 = vld [vmem:[%s9730_s0 + $0x33a] sm:$0xff]  ;;  %v862_v1 = vmul.f32 %v3258_v44, %v4719_v55  ;;  %v863_v35 = vmul.f32 %v3259_v59, %v4719_v55  ;;  %v3273_v43 = vld [vmem:[%s9730_s0 + $0x34a] sm:$0xff]  ;;  %v3274_v16 = vld [vmem:[%s9730_s0 + $0x352] sm:$0xff]  ;;  %v865_v48 = vmul.f32 %v3261_v17, %v4719_v55  ;;  %v866_v44 = vmul.f32 %v3262_v28, %v4719_v55 }
  0x6e   :  { %v867_v59 = vmul.f32 %v3263_v33, %v4719_v55  ;;  %v3276_v57 = vld [vmem:[%s9730_s0 + $0x36a] sm:$0xff]  ;;  %v3277_v8 = vld [vmem:[%s9730_s0 + $0x37a] sm:$0xff]  ;;  %v869_v17 = vmul.f32 %v3265_v7, %v4719_v55  ;;  %v870_v28 = vmul.f32 %v3266_v58, %v4719_v55  ;;  %v871_v33 = vmul.f32 %v3267_v53, %v4719_v55 }
  0x6f   :  { %v872_v27 = vmul.f32 %v3268_v12, %v4719_v55  ;;  %v873_v36 = vmul.f32 %v3269_v60, %v4719_v55  ;;  %v874_v3 = vmul.f32 %v3270_v2, %v4719_v55  ;;  %v875_v56 = vmul.f32 %v3271_v34, %v4719_v55  ;;  %v9978_v34 = vld [vmem:[#allocation12_spill] sm:$0xff] }
  0x70   :  { %v876_v32 = vmul.f32 %v3272_v22, %v4719_v55  ;;  %v877_v25 = vmul.f32 %v3273_v43, %v4719_v55  ;;  %v878_v30 = vmul.f32 %v3274_v16, %v4719_v55  ;;  %v879_v7 = vmul.f32 %v3275_v39, %v4719_v55 }
  0x71   :  { %v880_v58 = vmul.f32 %v3276_v57, %v4719_v55  ;;  %v881_v53 = vmul.f32 %v3277_v8, %v4719_v55  ;;  %v882_v12 = vmul.f32 %v3278_v0, %v4719_v55  ;;  %v5097_v60 = vadd.f32 %v852_v5, %v4561_v41  ;;  %v183_v8 = vld [vmem:[%s9730_s0 + $0xfa] sm:$0xff] }
  0x72   :  { %v5100_v2 = vadd.f32 %v853_v46, %v4564_v14  ;;  %v5103_v22 = vadd.f32 %v854_v52, %v4567_v49  ;;  %v5106_v43 = vadd.f32 %v855_v4, %v4570_v31  ;;  %v5109_v39 = vadd.f32 %v856_v15, %v4573_v29  ;;  %v185_v52 = vld [vmem:[%s9730_s0 + $0x112] sm:$0xff]  ;;  %v186_v46 = vld [vmem:[%s9730_s0 + $0x122] sm:$0xff] }
  0x73   :  { %v5112_v16 = vadd.f32 %v857_v19, %v4576_v20  ;;  %v5115_v0 = vadd.f32 %v858_v54, %v4579_v42  ;;  %v5118_v41 = vadd.f32 %v859_v6, %v4582_v13  ;;  %v5121_v14 = vadd.f32 %v860_v45, %v4585_v61  ;;  %v9986_v19 = vld [vmem:[#allocation16_spill] sm:$0xff]  ;;  %v189_v45 = vld [vmem:[%s9730_s0 + $0x142] sm:$0xff] }
  0x74   :  { %v5124_v49 = vadd.f32 %v861_v38, %v4588_v62  ;;  %v5127_v31 = vadd.f32 %v862_v1, %v4591_v40  ;;  %v5130_v29 = vadd.f32 %v863_v35, %v4594_v18  ;;  %v5133_v20 = vadd.f32 %v864_v23, %v4597_v51  ;;  %v180_v40 = vld [vmem:[%s9730_s0 + $0xda] sm:$0xff]  ;;  %v181_v18 = vld [vmem:[%s9730_s0 + $0xe2] sm:$0xff] }
  0x75   :  { %v5136_v42 = vadd.f32 %v865_v48, %v4600_v21  ;;  %v5139_v13 = vadd.f32 %v866_v44, %v4603_v50  ;;  %v5142_v61 = vadd.f32 %v867_v59, %v4606_v63  ;;  %v5145_v62 = vadd.f32 %v868_v24, %v4609_v11  ;;  %v182_v11 = vld [vmem:[%s9730_s0 + $0xf2] sm:$0xff]  ;;  %v188_v6 = vld [vmem:[%s9730_s0 + $0x13a] sm:$0xff]  ;;  %v9991_v44 = vld [vmem:[#allocation18_spill] sm:$0xff] }
  0x76   :  { %v5154_v51 = vadd.f32 %v869_v17, %v4615_v9  ;;  %v5157_v21 = vadd.f32 %v870_v28, %v4618_v10  ;;  %v5160_v50 = vadd.f32 %v871_v33, %v4621_v26  ;;  %v5163_v63 = vadd.f32 %v872_v27, %v4624_v37  ;;  %v184_v9 = vld [vmem:[%s9730_s0 + $0x10a] sm:$0xff]  ;;  %v9988_v38 = vld [vmem:[#allocation9_spill] sm:$0xff]  ;;  %v193_v28 = vld [vmem:[%s9730_s0 + $0x172] sm:$0xff] }
  0x77   :  { %v5175_v10 = vadd.f32 %v873_v36, %v4639_v47  ;;  %v9974_v26 = vld [vmem:[#allocation10_spill] sm:$0xff]  ;;  %v9976_v37 = vld [vmem:[#allocation11_spill] sm:$0xff]  ;;  %v5184_v4 = vadd.f32 %v876_v32, %v9978_v34  ;;  %v5205_v54 = vadd.f32 %v880_v58, %v9986_v19  ;;  %v248_v1 = vmul.f32 %v9988_v38, %v180_v40  ;;  %v9989_v23 = vld [vmem:[#allocation17_spill] sm:$0xff] }
  0x78   :  { %v5178_v57 = vadd.f32 %v874_v3, %v9974_v26  ;;  %v5181_v27 = vadd.f32 %v875_v56, %v9976_v37  ;;  %v187_v47 = vld [vmem:[%s9730_s0 + $0x12a] sm:$0xff]  ;;  %v9980_v3 = vld [vmem:[#allocation13_spill] sm:$0xff]  ;;  %v249_v35 = vmul.f32 %v9988_v38, %v181_v18  ;;  %v5219_v48 = vadd.f32 %v881_v53, %v9989_v23  ;;  %v10000_v19 = vld [vmem:[#allocation52_spill] sm:$0xff] }
  0x79   :  { %9979 = vst [vmem:[#allocation12_spill] sm:$0xff] %v5184_v4  ;;  %v5196_v36 = vadd.f32 %v877_v25, %v9980_v3  ;;  %v9982_v56 = vld [vmem:[#allocation14_spill] sm:$0xff]  ;;  %v9984_v32 = vld [vmem:[#allocation15_spill] sm:$0xff]  ;;  %9987 = vst [vmem:[#allocation16_spill] sm:$0xff] %v5205_v54  ;;  %v5222_v59 = vadd.f32 %v882_v12, %v9991_v44  ;;  %v250_v33 = vmul.f32 %v9988_v38, %v182_v11 }
  0x7a   :  { %9975 = vst [vmem:[#allocation10_spill] sm:$0xff] %v5178_v57  ;;  %9977 = vst [vmem:[#allocation11_spill] sm:$0xff] %v5181_v27  ;;  %v5199_v5 = vadd.f32 %v878_v30, %v9982_v56  ;;  %v5202_v15 = vadd.f32 %v879_v7, %v9984_v32  ;;  %v190_v25 = vld [vmem:[%s9730_s0 + $0x152] sm:$0xff]  ;;  %v191_v24 = vld [vmem:[%s9730_s0 + $0x15a] sm:$0xff]  ;;  %v251_v30 = vmul.f32 %v9988_v38, %v183_v8 }
  0x7b   :  { %9981 = vst [vmem:[#allocation13_spill] sm:$0xff] %v5196_v36  ;;  %9990 = vst [vmem:[#allocation9_spill] sm:$0xff] %v5219_v48  ;;  %v192_v17 = vld [vmem:[%s9730_s0 + $0x16a] sm:$0xff]  ;;  %v252_v7 = vmul.f32 %v9988_v38, %v184_v9  ;;  %v194_v40 = vld [vmem:[%s9730_s0 + $0x1e2] sm:$0xff]  ;;  %v253_v18 = vmul.f32 %v9988_v38, %v185_v52  ;;  %v254_v26 = vmul.f32 %v9988_v38, %v186_v46 }
  0x7c   :  { %9983 = vst [vmem:[#allocation14_spill] sm:$0xff] %v5199_v5  ;;  %9985 = vst [vmem:[#allocation15_spill] sm:$0xff] %v5202_v15  ;;  %v9993_v58 = vld [vmem:[#allocation6_spill] sm:$0xff]  ;;  %v255_v37 = vmul.f32 %v9988_v38, %v187_v47  ;;  %v9996_v34 = vld [vmem:[#allocation21_spill] sm:$0xff]  ;;  %v256_v8 = vmul.f32 %v9988_v38, %v188_v6  ;;  %v257_v9 = vmul.f32 %v9988_v38, %v189_v45 }
  0x7d   :  { %9992 = vst [vmem:[#allocation17_spill] sm:$0xff] %v5222_v59  ;;  %v9994_v53 = vld [vmem:[#allocation50_spill] sm:$0xff]  ;;  %v9997_v11 = vld [vmem:[#allocation51_spill] sm:$0xff]  ;;  %v258_v56 = vmul.f32 %v9988_v38, %v190_v25  ;;  %v259_v52 = vmul.f32 %v9988_v38, %v191_v24  ;;  %v260_v46 = vmul.f32 %v9988_v38, %v192_v17  ;;  %v261_v47 = vmul.f32 %v9988_v38, %v193_v28  ;;  %v10008_v25 = vld [vmem:[#allocation25_spill] sm:$0xff] }
  0x7e   :  { %v5238_v12 = vadd.f32 %v9994_v53, %v9993_v58  ;;  %v5248_v3 = vadd.f32 %v9997_v11, %v9996_v34  ;;  %v9999_v32 = vld [vmem:[#allocation22_spill] sm:$0xff]  ;;  %v10002_v44 = vld [vmem:[#allocation23_spill] sm:$0xff]  ;;  %v10003_v58 = vld [vmem:[#allocation53_spill] sm:$0xff]  ;;  %v262_v6 = vmul.f32 %v9988_v38, %v194_v40 }
  0x7f   :  { %v5255_v23 = vadd.f32 %v10000_v19, %v9999_v32  ;;  %v5262_v53 = vadd.f32 %v10003_v58, %v10002_v44  ;;  %v10005_v34 = vld [vmem:[#allocation24_spill] sm:$0xff]  ;;  %v10006_v45 = vld [vmem:[#allocation54_spill] sm:$0xff]  ;;  %v10012_v24 = vld [vmem:[#allocation57_spill] sm:$0xff] }
  0x80   :  { %9995 = vst [vmem:[#allocation18_spill] sm:$0xff] %v5238_v12  ;;  %9998 = vst [vmem:[#allocation6_spill] sm:$0xff] %v5248_v3  ;;  %v5267_v11 = vadd.f32 %v10006_v45, %v10005_v34  ;;  %v10009_v55 = vld [vmem:[#allocation56_spill] sm:$0xff]  ;;  %v10011_v19 = vld [vmem:[#allocation26_spill] sm:$0xff] }
  0x81   :  { %10001 = vst [vmem:[#allocation50_spill] sm:$0xff] %v5255_v23  ;;  %10004 = vst [vmem:[#allocation21_spill] sm:$0xff] %v5262_v53  ;;  %v5271_v32 = vadd.f32 %v10009_v55, %v10008_v25  ;;  %v5275_v23 = vadd.f32 %v10012_v24, %v10011_v19  ;;  %v10014_v17 = vld [vmem:[#allocation27_spill] sm:$0xff]  ;;  %v10015_v28 = vld [vmem:[#allocation58_spill] sm:$0xff] }
  0x82   :  { %10007 = vst [vmem:[#allocation51_spill] sm:$0xff] %v5267_v11  ;;  %v5279_v3 = vadd.f32 %v10015_v28, %v10014_v17  ;;  %v10017_v44 = vld [vmem:[#allocation28_spill] sm:$0xff]  ;;  %v10020_v38 = vld [vmem:[#allocation29_spill] sm:$0xff]  ;;  %v10023_v45 = vld [vmem:[#allocation30_spill] sm:$0xff] }
  0x83   :  { %10010 = vst [vmem:[#allocation22_spill] sm:$0xff] %v5271_v32  ;;  %10013 = vst [vmem:[#allocation52_spill] sm:$0xff] %v5275_v23  ;;  %v10018_v58 = vld [vmem:[#allocation60_spill] sm:$0xff]  ;;  %v10021_v40 = vld [vmem:[#allocation61_spill] sm:$0xff] }
  0x84   :  { %10016 = vst [vmem:[#allocation23_spill] sm:$0xff] %v5279_v3  ;;  %v5283_v53 = vadd.f32 %v10018_v58, %v10017_v44  ;;  %v5287_v34 = vadd.f32 %v10021_v40, %v10020_v38  ;;  %v10024_v11 = vld [vmem:[#allocation62_spill] sm:$0xff]  ;;  %v10026_v24 = vld [vmem:[#allocation31_spill] sm:$0xff]  ;;  %v10027_v17 = vld [vmem:[#allocation64_spill] sm:$0xff] }
  0x85   :  { %v5291_v55 = vadd.f32 %v10024_v11, %v10023_v45  ;;  %v358_v25 = vld [vmem:[%s9730_s0 + $0x4] sm:$0xff]  ;;  %v359_v19 = vld [vmem:[%s9730_s0 + $0xc] sm:$0xff]  ;;  %v5301_v28 = vadd.f32 %v10027_v17, %v10026_v24  ;;  %v10029_v44 = vld [vmem:[#allocation32_spill] sm:$0xff] }
  0x86   :  { %10019 = vst [vmem:[#allocation53_spill] sm:$0xff] %v5283_v53  ;;  %10022 = vst [vmem:[#allocation24_spill] sm:$0xff] %v5287_v34  ;;  %v10030_v58 = vld [vmem:[#allocation65_spill] sm:$0xff]  ;;  %v10033_v34 = vld [vmem:[#allocation66_spill] sm:$0xff] }
  0x87   :  { %10025 = vst [vmem:[#allocation54_spill] sm:$0xff] %v5291_v55  ;;  %10028 = vst [vmem:[#allocation25_spill] sm:$0xff] %v5301_v28  ;;  %v5305_v38 = vadd.f32 %v10030_v58, %v10029_v44  ;;  %v10032_v40 = vld [vmem:[#allocation33_spill] sm:$0xff]  ;;  %v10035_v45 = vld [vmem:[#allocation34_spill] sm:$0xff] }
  0x88   :  { %v5309_v11 = vadd.f32 %v10033_v34, %v10032_v40  ;;  %v5312_v55 = vadd.f32 %v248_v1, %v10035_v45  ;;  %v360_v53 = vld [vmem:[%s9730_s0 + $0x1c] sm:$0xff]  ;;  %v361_v24 = vld [vmem:[%s9730_s0 + $0x24] sm:$0xff]  ;;  %v362_v17 = vld [vmem:[%s9730_s0 + $0x34] sm:$0xff] }
  0x89   :  { %10031 = vst [vmem:[#allocation56_spill] sm:$0xff] %v5305_v38  ;;  %v363_v34 = vld [vmem:[%s9730_s0 + $0x3c] sm:$0xff]  ;;  %v10037_v44 = vld [vmem:[#allocation35_spill] sm:$0xff]  ;;  %v3334_v12 = vld [vmem:[%s9730_s0 + $0x324] sm:$0xff] }
  0x8a   :  { %10034 = vst [vmem:[#allocation26_spill] sm:$0xff] %v5309_v11  ;;  %10036 = vst [vmem:[#allocation57_spill] sm:$0xff] %v5312_v55  ;;  %v5327_v58 = vadd.f32 %v249_v35, %v10037_v44  ;;  %v10039_v1 = vld [vmem:[#allocation36_spill] sm:$0xff]  ;;  %v10041_v45 = vld [vmem:[#allocation37_spill] sm:$0xff] }
  0x8b   :  { %v5330_v40 = vadd.f32 %v250_v33, %v10039_v1  ;;  %v5333_v55 = vadd.f32 %v251_v30, %v10041_v45  ;;  %v10043_v11 = vld [vmem:[#allocation38_spill] sm:$0xff]  ;;  %v365_v3 = vld [vmem:[%s9730_s0 + $0x54] sm:$0xff]  ;;  %v10049_v1 = vld [vmem:[#allocation41_spill] sm:$0xff] }
  0x8c   :  { %10038 = vst [vmem:[#allocation27_spill] sm:$0xff] %v5327_v58  ;;  %v5336_v38 = vadd.f32 %v252_v7, %v10043_v11  ;;  %v364_v28 = vld [vmem:[%s9730_s0 + $0x4c] sm:$0xff]  ;;  %v366_v35 = vld [vmem:[%s9730_s0 + $0x64] sm:$0xff]  ;;  %v10047_v7 = vld [vmem:[#allocation40_spill] sm:$0xff]  ;;  %v5357_v45 = vadd.f32 %v255_v37, %v10049_v1 }
  0x8d   :  { %10040 = vst [vmem:[#allocation58_spill] sm:$0xff] %v5330_v40  ;;  %10042 = vst [vmem:[#allocation28_spill] sm:$0xff] %v5333_v55  ;;  %v367_v33 = vld [vmem:[%s9730_s0 + $0x6c] sm:$0xff]  ;;  %v5354_v11 = vadd.f32 %v254_v26, %v10047_v7  ;;  %v368_v40 = vld [vmem:[%s9730_s0 + $0x7c] sm:$0xff] }
  0x8e   :  { %10044 = vst [vmem:[#allocation60_spill] sm:$0xff] %v5336_v38  ;;  %v10045_v30 = vld [vmem:[#allocation39_spill] sm:$0xff]  ;;  %10050 = vst [vmem:[#allocation30_spill] sm:$0xff] %v5357_v45  ;;  %v369_v58 = vld [vmem:[%s9730_s0 + $0x84] sm:$0xff] }
  0x8f   :  { %v5351_v44 = vadd.f32 %v253_v18, %v10045_v30  ;;  %10048 = vst [vmem:[#allocation61_spill] sm:$0xff] %v5354_v11  ;;  %v10051_v38 = vld [vmem:[#allocation43_spill] sm:$0xff]  ;;  %v371_v26 = vld [vmem:[%s9730_s0 + $0x9c] sm:$0xff]  ;;  %v10057_v7 = vld [vmem:[#allocation46_spill] sm:$0xff] }
  0x90   :  { %v5360_v55 = vadd.f32 %v256_v8, %v10051_v38  ;;  %v370_v18 = vld [vmem:[%s9730_s0 + $0x94] sm:$0xff]  ;;  %v10055_v8 = vld [vmem:[#allocation45_spill] sm:$0xff]  ;;  %v5381_v1 = vadd.f32 %v259_v52, %v10057_v7  ;;  %v372_v11 = vld [vmem:[%s9730_s0 + $0xac] sm:$0xff] }
  0x91   :  { %10046 = vst [vmem:[#allocation29_spill] sm:$0xff] %v5351_v44  ;;  %v10053_v37 = vld [vmem:[#allocation44_spill] sm:$0xff]  ;;  %v5378_v38 = vadd.f32 %v258_v56, %v10055_v8  ;;  %v375_v56 = vld [vmem:[%s9730_s0 + $0xcc] sm:$0xff]  ;;  %v377_v7 = vld [vmem:[%s9730_s0 + $0xe4] sm:$0xff] }
  0x92   :  { %10052 = vst [vmem:[#allocation62_spill] sm:$0xff] %v5360_v55  ;;  %v5375_v30 = vadd.f32 %v257_v9, %v10053_v37  ;;  %10058 = vst [vmem:[#allocation32_spill] sm:$0xff] %v5381_v1  ;;  %v10059_v55 = vld [vmem:[#allocation47_spill] sm:$0xff]  ;;  %v374_v9 = vld [vmem:[%s9730_s0 + $0xc4] sm:$0xff] }
  0x93   :  { %10056 = vst [vmem:[#allocation64_spill] sm:$0xff] %v5378_v38  ;;  %v5384_v45 = vadd.f32 %v260_v46, %v10059_v55  ;;  %v373_v44 = vld [vmem:[%s9730_s0 + $0xb4] sm:$0xff]  ;;  %v10063_v46 = vld [vmem:[#allocation49_spill] sm:$0xff]  ;;  %v3316_v32 = vld [vmem:[%s9730_s0 + $0x24c] sm:$0xff] }
  0x94   :  { %10054 = vst [vmem:[#allocation31_spill] sm:$0xff] %v5375_v30  ;;  %v10061_v52 = vld [vmem:[#allocation48_spill] sm:$0xff]  ;;  %v5402_v55 = vadd.f32 %v262_v6, %v10063_v46  ;;  %v3339_v59 = vld [vmem:[%s9730_s0 + $0x364] sm:$0xff]  ;;  %v3340_v48 = vld [vmem:[%s9730_s0 + $0x36c] sm:$0xff] }
  0x95   :  { %10060 = vst [vmem:[#allocation65_spill] sm:$0xff] %v5384_v45  ;;  %v5399_v37 = vadd.f32 %v261_v47, %v10061_v52  ;;  %v376_v8 = vld [vmem:[%s9730_s0 + $0xdc] sm:$0xff]  ;;  %v378_v45 = vld [vmem:[%s9730_s0 + $0xf4] sm:$0xff]  ;;  %v3342_v54 = vld [vmem:[%s9730_s0 + $0x384] sm:$0xff] }
  0x96   :  { %10064 = vst [vmem:[#allocation66_spill] sm:$0xff] %v5402_v55  ;;  %v379_v47 = vld [vmem:[%s9730_s0 + $0xfc] sm:$0xff]  ;;  %v10065_v52 = vld [vmem:[#allocation19_spill] sm:$0xff] }
  0x97   :  { %10062 = vst [vmem:[#allocation33_spill] sm:$0xff] %v5399_v37  ;;  %v5417_v37 = vmul.f32 %v10065_v52, %v358_v25  ;;  %v5420_v6 = vmul.f32 %v10065_v52, %v359_v19  ;;  %v5423_v46 = vmul.f32 %v10065_v52, %v360_v53  ;;  %v5426_v55 = vmul.f32 %v10065_v52, %v361_v24  ;;  %v3312_v25 = vld [vmem:[%s9730_s0 + $0x21c] sm:$0xff]  ;;  %v3313_v19 = vld [vmem:[%s9730_s0 + $0x22c] sm:$0xff]  ;;  %v3314_v53 = vld [vmem:[%s9730_s0 + $0x234] sm:$0xff] }
  0x98   :  { %v5429_v1 = vmul.f32 %v10065_v52, %v362_v17  ;;  %v5432_v38 = vmul.f32 %v10065_v52, %v363_v34  ;;  %v3315_v24 = vld [vmem:[%s9730_s0 + $0x244] sm:$0xff]  ;;  %v5447_v17 = vmul.f32 %v10065_v52, %v364_v28  ;;  %v5450_v34 = vmul.f32 %v10065_v52, %v365_v3 }
  0x99   :  { %10066 = vst [vmem:[#allocation34_spill] sm:$0xff] %v5417_v37  ;;  %10067 = vst [vmem:[#allocation35_spill] sm:$0xff] %v5420_v6  ;;  %v5453_v30 = vmul.f32 %v10065_v52, %v366_v35  ;;  %v5456_v23 = vmul.f32 %v10065_v52, %v367_v33  ;;  %v3318_v28 = vld [vmem:[%s9730_s0 + $0x264] sm:$0xff]  ;;  %v5468_v3 = vmul.f32 %v10065_v52, %v368_v40  ;;  %v3321_v40 = vld [vmem:[%s9730_s0 + $0x28c] sm:$0xff] }
  0x9a   :  { %10068 = vst [vmem:[#allocation36_spill] sm:$0xff] %v5423_v46  ;;  %10069 = vst [vmem:[#allocation37_spill] sm:$0xff] %v5426_v55  ;;  %v5471_v35 = vmul.f32 %v10065_v52, %v369_v58  ;;  %v5474_v33 = vmul.f32 %v10065_v52, %v370_v18  ;;  %v5489_v58 = vmul.f32 %v10065_v52, %v372_v11  ;;  %v3324_v11 = vld [vmem:[%s9730_s0 + $0x2ac] sm:$0xff]  ;;  %v3335_v55 = vld [vmem:[%s9730_s0 + $0x334] sm:$0xff] }
  0x9b   :  { %10070 = vst [vmem:[#allocation38_spill] sm:$0xff] %v5429_v1  ;;  %10071 = vst [vmem:[#allocation39_spill] sm:$0xff] %v5432_v38  ;;  %v3317_v38 = vld [vmem:[%s9730_s0 + $0x25c] sm:$0xff]  ;;  %v5492_v18 = vmul.f32 %v10065_v52, %v373_v44  ;;  %v5510_v44 = vmul.f32 %v10065_v52, %v376_v8  ;;  %v3327_v8 = vld [vmem:[%s9730_s0 + $0x2d4] sm:$0xff] }
  0x9c   :  { %10072 = vst [vmem:[#allocation40_spill] sm:$0xff] %v5447_v17  ;;  %10073 = vst [vmem:[#allocation41_spill] sm:$0xff] %v5450_v34  ;;  %v3320_v34 = vld [vmem:[%s9730_s0 + $0x27c] sm:$0xff]  ;;  %v3332_v17 = vld [vmem:[%s9730_s0 + $0x30c] sm:$0xff] }
  0x9d   :  { %10074 = vst [vmem:[#allocation43_spill] sm:$0xff] %v5453_v30  ;;  %10075 = vst [vmem:[#allocation44_spill] sm:$0xff] %v5456_v23  ;;  %v5477_v23 = vmul.f32 %v10065_v52, %v371_v26  ;;  %v3319_v30 = vld [vmem:[%s9730_s0 + $0x274] sm:$0xff]  ;;  %v5495_v26 = vmul.f32 %v10065_v52, %v374_v9  ;;  %v5513_v9 = vmul.f32 %v10065_v52, %v377_v7  ;;  %v3329_v7 = vld [vmem:[%s9730_s0 + $0x2ec] sm:$0xff] }
  0x9e   :  { %10076 = vst [vmem:[#allocation45_spill] sm:$0xff] %v5468_v3  ;;  %10077 = vst [vmem:[#allocation46_spill] sm:$0xff] %v5471_v35  ;;  %v3323_v35 = vld [vmem:[%s9730_s0 + $0x2a4] sm:$0xff]  ;;  %v3333_v1 = vld [vmem:[%s9730_s0 + $0x31c] sm:$0xff] }
  0x9f   :  { %10078 = vst [vmem:[#allocation47_spill] sm:$0xff] %v5474_v33  ;;  %10079 = vst [vmem:[#allocation48_spill] sm:$0xff] %v5477_v23  ;;  %v5498_v23 = vmul.f32 %v10065_v52, %v375_v56  ;;  %v3322_v33 = vld [vmem:[%s9730_s0 + $0x294] sm:$0xff]  ;;  %v5516_v56 = vmul.f32 %v10065_v52, %v378_v45  ;;  %v3328_v45 = vld [vmem:[%s9730_s0 + $0x2dc] sm:$0xff] }
  0xa0   :  { %10080 = vst [vmem:[#allocation49_spill] sm:$0xff] %v5489_v58  ;;  %10081 = vst [vmem:[#allocation68_spill] sm:$0xff] %v5492_v18  ;;  %v3326_v18 = vld [vmem:[%s9730_s0 + $0x2c4] sm:$0xff]  ;;  %v3336_v46 = vld [vmem:[%s9730_s0 + $0x33c] sm:$0xff] }
  0xa1   :  { %10082 = vst [vmem:[#allocation69_spill] sm:$0xff] %v5495_v26  ;;  %10083 = vst [vmem:[#allocation70_spill] sm:$0xff] %v5498_v23  ;;  %v5519_v23 = vmul.f32 %v10065_v52, %v379_v47  ;;  %v3325_v26 = vld [vmem:[%s9730_s0 + $0x2bc] sm:$0xff]  ;;  %v3330_v47 = vld [vmem:[%s9730_s0 + $0x2f4] sm:$0xff] }
  0xa2   :  { %10084 = vst [vmem:[#allocation71_spill] sm:$0xff] %v5510_v44  ;;  %10085 = vst [vmem:[#allocation72_spill] sm:$0xff] %v5513_v9  ;;  %v3331_v3 = vld [vmem:[%s9730_s0 + $0x304] sm:$0xff]  ;;  %v3337_v6 = vld [vmem:[%s9730_s0 + $0x34c] sm:$0xff] }
  0xa3   :  { %10086 = vst [vmem:[#allocation73_spill] sm:$0xff] %v5516_v56  ;;  %10087 = vst [vmem:[#allocation74_spill] sm:$0xff] %v5519_v23  ;;  %v10088_v23 = vld [vmem:[#allocation42_spill] sm:$0xff]  ;;  %v3338_v37 = vld [vmem:[%s9730_s0 + $0x354] sm:$0xff] }
  0xa4   :  { %v1048_v56 = vmul.f32 %v3312_v25, %v10088_v23  ;;  %v1049_v9 = vmul.f32 %v3313_v19, %v10088_v23  ;;  %v1050_v44 = vmul.f32 %v3314_v53, %v10088_v23  ;;  %v1051_v58 = vmul.f32 %v3315_v24, %v10088_v23  ;;  %v3341_v52 = vld [vmem:[%s9730_s0 + $0x37c] sm:$0xff] }
  0xa5   :  { %v1052_v25 = vmul.f32 %v3316_v32, %v10088_v23  ;;  %v1053_v19 = vmul.f32 %v3317_v38, %v10088_v23  ;;  %v1054_v53 = vmul.f32 %v3318_v28, %v10088_v23  ;;  %v1055_v24 = vmul.f32 %v3319_v30, %v10088_v23 }
  0xa6   :  { %v1056_v32 = vmul.f32 %v3320_v34, %v10088_v23  ;;  %v1057_v38 = vmul.f32 %v3321_v40, %v10088_v23  ;;  %v1058_v28 = vmul.f32 %v3322_v33, %v10088_v23  ;;  %v1059_v30 = vmul.f32 %v3323_v35, %v10088_v23 }
  0xa7   :  { %v1060_v34 = vmul.f32 %v3324_v11, %v10088_v23  ;;  %v1061_v40 = vmul.f32 %v3325_v26, %v10088_v23  ;;  %v1062_v33 = vmul.f32 %v3326_v18, %v10088_v23  ;;  %v1063_v35 = vmul.f32 %v3327_v8, %v10088_v23 }
  0xa8   :  { %v1064_v11 = vmul.f32 %v3328_v45, %v10088_v23  ;;  %v1065_v26 = vmul.f32 %v3329_v7, %v10088_v23  ;;  %v1066_v18 = vmul.f32 %v3330_v47, %v10088_v23  ;;  %v1067_v8 = vmul.f32 %v3331_v3, %v10088_v23 }
  0xa9   :  { %v1068_v15 = vmul.f32 %v3332_v17, %v10088_v23  ;;  %v1069_v5 = vmul.f32 %v3333_v1, %v10088_v23  ;;  %v1070_v36 = vmul.f32 %v3334_v12, %v10088_v23  ;;  %v1071_v4 = vmul.f32 %v3335_v55, %v10088_v23 }
  0xaa   :  { %v1072_v27 = vmul.f32 %v3336_v46, %v10088_v23  ;;  %v1073_v57 = vmul.f32 %v3337_v6, %v10088_v23  ;;  %v1074_v45 = vmul.f32 %v3338_v37, %v10088_v23  ;;  %v1075_v7 = vmul.f32 %v3339_v59, %v10088_v23  ;;  %v385_v46 = vld [vmem:[%s9730_s0 + $0x144] sm:$0xff] }
  0xab   :  { %v1076_v47 = vmul.f32 %v3340_v48, %v10088_v23  ;;  %v1077_v3 = vmul.f32 %v3341_v52, %v10088_v23  ;;  %v1078_v17 = vmul.f32 %v3342_v54, %v10088_v23  ;;  %v5607_v1 = vadd.f32 %v1048_v56, %v5097_v60  ;;  %v384_v52 = vld [vmem:[%s9730_s0 + $0x13c] sm:$0xff] }
  0xac   :  { %v5610_v12 = vadd.f32 %v1049_v9, %v5100_v2  ;;  %v5613_v55 = vadd.f32 %v1050_v44, %v5103_v22  ;;  %v5616_v6 = vadd.f32 %v1051_v58, %v5106_v43  ;;  %v5619_v59 = vadd.f32 %v1052_v25, %v5109_v39  ;;  %v10093_v44 = vld [vmem:[#allocation12_spill] sm:$0xff]  ;;  %v388_v25 = vld [vmem:[%s9730_s0 + $0x16c] sm:$0xff]  ;;  %v10138_v23 = vld [vmem:[#allocation45_spill] sm:$0xff] }
  0xad   :  { %v5622_v48 = vadd.f32 %v1053_v19, %v5112_v16  ;;  %v5625_v54 = vadd.f32 %v1054_v53, %v5115_v0  ;;  %v5628_v60 = vadd.f32 %v1055_v24, %v5118_v41  ;;  %v5631_v2 = vadd.f32 %v1056_v32, %v5121_v14  ;;  %v380_v0 = vld [vmem:[%s9730_s0 + $0x10c] sm:$0xff]  ;;  %v387_v56 = vld [vmem:[%s9730_s0 + $0x15c] sm:$0xff] }
  0xae   :  { %v5634_v22 = vadd.f32 %v1057_v38, %v5124_v49  ;;  %v5637_v43 = vadd.f32 %v1058_v28, %v5127_v31  ;;  %v5640_v39 = vadd.f32 %v1059_v30, %v5130_v29  ;;  %v5643_v16 = vadd.f32 %v1060_v34, %v5133_v20  ;;  %v381_v29 = vld [vmem:[%s9730_s0 + $0x114] sm:$0xff]  ;;  %v382_v20 = vld [vmem:[%s9730_s0 + $0x124] sm:$0xff] }
  0xaf   :  { %v5649_v41 = vadd.f32 %v1061_v40, %v5136_v42  ;;  %v5652_v14 = vadd.f32 %v1062_v33, %v5139_v13  ;;  %v5655_v49 = vadd.f32 %v1063_v35, %v5142_v61  ;;  %v5658_v31 = vadd.f32 %v1064_v11, %v5145_v62  ;;  %v383_v42 = vld [vmem:[%s9730_s0 + $0x12c] sm:$0xff]  ;;  %v10101_v24 = vld [vmem:[#allocation16_spill] sm:$0xff]  ;;  %v390_v38 = vld [vmem:[%s9730_s0 + $0x1e4] sm:$0xff] }
  0xb0   :  { %v5670_v13 = vadd.f32 %v1065_v26, %v5154_v51  ;;  %v5673_v61 = vadd.f32 %v1066_v18, %v5157_v21  ;;  %v5676_v62 = vadd.f32 %v1067_v8, %v5160_v50  ;;  %v5679_v37 = vadd.f32 %v1068_v15, %v5163_v63  ;;  %v386_v51 = vld [vmem:[%s9730_s0 + $0x154] sm:$0xff]  ;;  %v10089_v50 = vld [vmem:[#allocation10_spill] sm:$0xff]  ;;  %v10104_v40 = vld [vmem:[#allocation9_spill] sm:$0xff] }
  0xb1   :  { %v5691_v21 = vadd.f32 %v1069_v5, %v5175_v10  ;;  %v5694_v58 = vadd.f32 %v1070_v36, %v10089_v50  ;;  %v10091_v63 = vld [vmem:[#allocation11_spill] sm:$0xff]  ;;  %v5700_v9 = vadd.f32 %v1072_v27, %v10093_v44  ;;  %v10095_v36 = vld [vmem:[#allocation13_spill] sm:$0xff]  ;;  %v5721_v32 = vadd.f32 %v1076_v47, %v10101_v24 }
  0xb2   :  { %v5697_v15 = vadd.f32 %v1071_v4, %v10091_v63  ;;  %v389_v10 = vld [vmem:[%s9730_s0 + $0x174] sm:$0xff]  ;;  %v5712_v5 = vadd.f32 %v1073_v57, %v10095_v36  ;;  %v10097_v4 = vld [vmem:[#allocation14_spill] sm:$0xff]  ;;  %v5729_v57 = vadd.f32 %v1077_v3, %v10104_v40  ;;  %v10106_v33 = vld [vmem:[#allocation17_spill] sm:$0xff] }
  0xb3   :  { %10090 = vst [vmem:[#allocation10_spill] sm:$0xff] %v5694_v58  ;;  %10094 = vst [vmem:[#allocation12_spill] sm:$0xff] %v5700_v9  ;;  %v5715_v19 = vadd.f32 %v1074_v45, %v10097_v4  ;;  %v10099_v27 = vld [vmem:[#allocation15_spill] sm:$0xff]  ;;  %v5732_v35 = vadd.f32 %v1078_v17, %v10106_v33  ;;  %v10126_v40 = vld [vmem:[#allocation40_spill] sm:$0xff] }
  0xb4   :  { %10092 = vst [vmem:[#allocation11_spill] sm:$0xff] %v5697_v15  ;;  %10096 = vst [vmem:[#allocation13_spill] sm:$0xff] %v5712_v5  ;;  %v5718_v53 = vadd.f32 %v1075_v7, %v10099_v27  ;;  %v10103_v28 = vld [vmem:[#allocation19_spill] sm:$0xff]  ;;  %v10122_v27 = vld [vmem:[#allocation6_spill] sm:$0xff] }
  0xb5   :  { %10098 = vst [vmem:[#allocation14_spill] sm:$0xff] %v5715_v19  ;;  %10102 = vst [vmem:[#allocation16_spill] sm:$0xff] %v5721_v32  ;;  %v448_v30 = vmul.f32 %v10103_v28, %v380_v0  ;;  %v449_v34 = vmul.f32 %v10103_v28, %v381_v29  ;;  %v450_v11 = vmul.f32 %v10103_v28, %v382_v20  ;;  %v10108_v17 = vld [vmem:[#allocation55_spill] sm:$0xff]  ;;  %v10109_v29 = vld [vmem:[#allocation34_spill] sm:$0xff] }
  0xb6   :  { %10100 = vst [vmem:[#allocation15_spill] sm:$0xff] %v5718_v53  ;;  %10105 = vst [vmem:[#allocation19_spill] sm:$0xff] %v5729_v57  ;;  %v451_v26 = vmul.f32 %v10103_v28, %v383_v42  ;;  %v452_v18 = vmul.f32 %v10103_v28, %v384_v52  ;;  %v453_v8 = vmul.f32 %v10103_v28, %v385_v46  ;;  %v10110_v20 = vld [vmem:[#allocation59_spill] sm:$0xff]  ;;  %v10114_v46 = vld [vmem:[#allocation36_spill] sm:$0xff] }
  0xb7   :  { %10107 = vst [vmem:[#allocation9_spill] sm:$0xff] %v5732_v35  ;;  %v454_v45 = vmul.f32 %v10103_v28, %v386_v51  ;;  %v455_v7 = vmul.f32 %v10103_v28, %v387_v56  ;;  %v456_v47 = vmul.f32 %v10103_v28, %v388_v25  ;;  %v457_v3 = vmul.f32 %v10103_v28, %v389_v10  ;;  %v10111_v42 = vld [vmem:[#allocation35_spill] sm:$0xff]  ;;  %v10117_v56 = vld [vmem:[#allocation37_spill] sm:$0xff]  ;;  %v10119_v25 = vld [vmem:[#allocation18_spill] sm:$0xff] }
  0xb8   :  { %v458_v0 = vmul.f32 %v10103_v28, %v390_v38  ;;  %v5745_v50 = vadd.f32 %v10109_v29, %v10108_v17  ;;  %v5749_v63 = vadd.f32 %v10111_v42, %v10110_v20  ;;  %v10113_v52 = vld [vmem:[#allocation63_spill] sm:$0xff]  ;;  %v10120_v10 = vld [vmem:[#allocation38_spill] sm:$0xff]  ;;  %v10128_v17 = vld [vmem:[#allocation21_spill] sm:$0xff] }
  0xb9   :  { %v5753_v44 = vadd.f32 %v10114_v46, %v10113_v52  ;;  %v10116_v51 = vld [vmem:[#allocation67_spill] sm:$0xff]  ;;  %v5761_v4 = vadd.f32 %v10120_v10, %v10119_v25  ;;  %v10125_v28 = vld [vmem:[#allocation50_spill] sm:$0xff]  ;;  %v10129_v29 = vld [vmem:[#allocation41_spill] sm:$0xff] }
  0xba   :  { %10112 = vst [vmem:[#allocation17_spill] sm:$0xff] %v5749_v63  ;;  %v5757_v36 = vadd.f32 %v10117_v56, %v10116_v51  ;;  %v10123_v24 = vld [vmem:[#allocation39_spill] sm:$0xff]  ;;  %v5769_v33 = vadd.f32 %v10126_v40, %v10125_v28  ;;  %v5773_v20 = vadd.f32 %v10129_v29, %v10128_v17  ;;  %v10134_v51 = vld [vmem:[#allocation22_spill] sm:$0xff]  ;;  %v10135_v56 = vld [vmem:[#allocation44_spill] sm:$0xff] }
  0xbb   :  { %10115 = vst [vmem:[#allocation55_spill] sm:$0xff] %v5753_v44  ;;  %10121 = vst [vmem:[#allocation59_spill] sm:$0xff] %v5761_v4  ;;  %v5765_v38 = vadd.f32 %v10123_v24, %v10122_v27  ;;  %v10131_v42 = vld [vmem:[#allocation51_spill] sm:$0xff]  ;;  %v5781_v25 = vadd.f32 %v10135_v56, %v10134_v51  ;;  %v10137_v10 = vld [vmem:[#allocation52_spill] sm:$0xff] }
  0xbc   :  { %10118 = vst [vmem:[#allocation34_spill] sm:$0xff] %v5757_v36  ;;  %10127 = vst [vmem:[#allocation63_spill] sm:$0xff] %v5769_v33  ;;  %v10132_v52 = vld [vmem:[#allocation43_spill] sm:$0xff]  ;;  %v5785_v27 = vadd.f32 %v10138_v23, %v10137_v10  ;;  %v10143_v40 = vld [vmem:[#allocation53_spill] sm:$0xff] }
  0xbd   :  { %10124 = vst [vmem:[#allocation35_spill] sm:$0xff] %v5765_v38  ;;  %10130 = vst [vmem:[#allocation36_spill] sm:$0xff] %v5773_v20  ;;  %v5777_v46 = vadd.f32 %v10132_v52, %v10131_v42  ;;  %v10140_v24 = vld [vmem:[#allocation23_spill] sm:$0xff]  ;;  %v10141_v38 = vld [vmem:[#allocation46_spill] sm:$0xff] }
  0xbe   :  { %10136 = vst [vmem:[#allocation37_spill] sm:$0xff] %v5781_v25  ;;  %10139 = vst [vmem:[#allocation18_spill] sm:$0xff] %v5785_v27  ;;  %v5789_v28 = vadd.f32 %v10141_v38, %v10140_v24  ;;  %v10144_v33 = vld [vmem:[#allocation47_spill] sm:$0xff]  ;;  %v10146_v29 = vld [vmem:[#allocation24_spill] sm:$0xff] }
  0xbf   :  { %10133 = vst [vmem:[#allocation67_spill] sm:$0xff] %v5777_v46  ;;  %v5793_v17 = vadd.f32 %v10144_v33, %v10143_v40  ;;  %v10147_v20 = vld [vmem:[#allocation48_spill] sm:$0xff]  ;;  %v10149_v52 = vld [vmem:[#allocation54_spill] sm:$0xff]  ;;  %v10150_v46 = vld [vmem:[#allocation49_spill] sm:$0xff] }
  0xc0   :  { %10142 = vst [vmem:[#allocation38_spill] sm:$0xff] %v5789_v28  ;;  %v5797_v42 = vadd.f32 %v10147_v20, %v10146_v29  ;;  %v5801_v51 = vadd.f32 %v10150_v46, %v10149_v52  ;;  %v3151_v23 = vld [vmem:[%s9730_s0 + $0x30] sm:$0xff]  ;;  %v3152_v38 = vld [vmem:[%s9730_s0 + $0x38] sm:$0xff]  ;;  %v10152_v56 = vld [vmem:[#allocation25_spill] sm:$0xff] }
  0xc1   :  { %10145 = vst [vmem:[#allocation6_spill] sm:$0xff] %v5793_v17  ;;  %v10153_v10 = vld [vmem:[#allocation68_spill] sm:$0xff]  ;;  %v10156_v40 = vld [vmem:[#allocation69_spill] sm:$0xff]  ;;  %v10158_v29 = vld [vmem:[#allocation26_spill] sm:$0xff] }
  0xc2   :  { %10148 = vst [vmem:[#allocation39_spill] sm:$0xff] %v5797_v42  ;;  %10151 = vst [vmem:[#allocation50_spill] sm:$0xff] %v5801_v51  ;;  %v5811_v33 = vadd.f32 %v10153_v10, %v10152_v56  ;;  %v10155_v24 = vld [vmem:[#allocation56_spill] sm:$0xff]  ;;  %v10159_v42 = vld [vmem:[#allocation70_spill] sm:$0xff] }
  0xc3   :  { %v5815_v20 = vadd.f32 %v10156_v40, %v10155_v24  ;;  %v5819_v46 = vadd.f32 %v10159_v42, %v10158_v29  ;;  %v10161_v52 = vld [vmem:[#allocation57_spill] sm:$0xff]  ;;  %v10162_v51 = vld [vmem:[#allocation71_spill] sm:$0xff]  ;;  %v3153_v28 = vld [vmem:[%s9730_s0 + $0x48] sm:$0xff] }
  0xc4   :  { %10154 = vst [vmem:[#allocation40_spill] sm:$0xff] %v5811_v33  ;;  %v5823_v17 = vadd.f32 %v10162_v51, %v10161_v52  ;;  %v3154_v56 = vld [vmem:[%s9730_s0 + $0x50] sm:$0xff]  ;;  %v3155_v10 = vld [vmem:[%s9730_s0 + $0x60] sm:$0xff]  ;;  %v3156_v42 = vld [vmem:[%s9730_s0 + $0x68] sm:$0xff] }
  0xc5   :  { %10157 = vst [vmem:[#allocation21_spill] sm:$0xff] %v5815_v20  ;;  %10160 = vst [vmem:[#allocation41_spill] sm:$0xff] %v5819_v46  ;;  %v10164_v24 = vld [vmem:[#allocation27_spill] sm:$0xff]  ;;  %v10165_v40 = vld [vmem:[#allocation72_spill] sm:$0xff] }
  0xc6   :  { %10163 = vst [vmem:[#allocation51_spill] sm:$0xff] %v5823_v17  ;;  %v5839_v51 = vadd.f32 %v10165_v40, %v10164_v24  ;;  %v10167_v29 = vld [vmem:[#allocation58_spill] sm:$0xff]  ;;  %v10168_v52 = vld [vmem:[#allocation73_spill] sm:$0xff]  ;;  %v10170_v46 = vld [vmem:[#allocation28_spill] sm:$0xff] }
  0xc7   :  { %v5843_v17 = vadd.f32 %v10168_v52, %v10167_v29  ;;  %v10171_v20 = vld [vmem:[#allocation74_spill] sm:$0xff]  ;;  %v10173_v27 = vld [vmem:[#allocation60_spill] sm:$0xff]  ;;  %v3158_v24 = vld [vmem:[%s9730_s0 + $0x80] sm:$0xff] }
  0xc8   :  { %10166 = vst [vmem:[#allocation43_spill] sm:$0xff] %v5839_v51  ;;  %v5847_v33 = vadd.f32 %v10171_v20, %v10170_v46  ;;  %v5850_v25 = vadd.f32 %v448_v30, %v10173_v27  ;;  %v3157_v4 = vld [vmem:[%s9730_s0 + $0x78] sm:$0xff]  ;;  %v3159_v40 = vld [vmem:[%s9730_s0 + $0x90] sm:$0xff]  ;;  %v10175_v46 = vld [vmem:[#allocation29_spill] sm:$0xff] }
  0xc9   :  { %10169 = vst [vmem:[#allocation22_spill] sm:$0xff] %v5843_v17  ;;  %v3160_v20 = vld [vmem:[%s9730_s0 + $0x98] sm:$0xff]  ;;  %v5865_v29 = vadd.f32 %v449_v34, %v10175_v46  ;;  %v10177_v30 = vld [vmem:[#allocation61_spill] sm:$0xff]  ;;  %v10179_v52 = vld [vmem:[#allocation30_spill] sm:$0xff] }
  0xca   :  { %10172 = vst [vmem:[#allocation44_spill] sm:$0xff] %v5847_v33  ;;  %10174 = vst [vmem:[#allocation52_spill] sm:$0xff] %v5850_v25  ;;  %v5868_v27 = vadd.f32 %v450_v11, %v10177_v30  ;;  %v5871_v25 = vadd.f32 %v451_v26, %v10179_v52  ;;  %v10181_v33 = vld [vmem:[#allocation62_spill] sm:$0xff]  ;;  %v3162_v36 = vld [vmem:[%s9730_s0 + $0xb0] sm:$0xff] }
  0xcb   :  { %10176 = vst [vmem:[#allocation45_spill] sm:$0xff] %v5865_v29  ;;  %v5874_v17 = vadd.f32 %v452_v18, %v10181_v33  ;;  %v3161_v51 = vld [vmem:[%s9730_s0 + $0xa8] sm:$0xff]  ;;  %v3163_v34 = vld [vmem:[%s9730_s0 + $0xc0] sm:$0xff] }
  0xcc   :  { %10178 = vst [vmem:[#allocation23_spill] sm:$0xff] %v5868_v27  ;;  %10180 = vst [vmem:[#allocation46_spill] sm:$0xff] %v5871_v25 }
  0xcd   :  { %10182 = vst [vmem:[#allocation53_spill] sm:$0xff] %v5874_v17 }
  0xce   :  { %12 = vsyncpa [#allocation3], 0  ;;  %v10183_v11 = vld [vmem:[#allocation31_spill] sm:$0xff]  ;;  %v10185_v26 = vld [vmem:[#allocation64_spill] sm:$0xff] }
  0xcf   :  { %v5886_v46 = vadd.f32 %v453_v8, %v10183_v11  ;;  %v5889_v30 = vadd.f32 %v454_v45, %v10185_v26  ;;  %v10187_v18 = vld [vmem:[#allocation32_spill] sm:$0xff]  ;;  %v10189_v52 = vld [vmem:[#allocation65_spill] sm:$0xff]  ;;  %v3164_v25 = vld [vmem:[%s9730_s0 + $0xc8] sm:$0xff] }
  0xd0   :  { %v5892_v33 = vadd.f32 %v455_v7, %v10187_v18  ;;  %v5895_v17 = vadd.f32 %v456_v47, %v10189_v52  ;;  %v3165_v27 = vld [vmem:[%s9730_s0 + $0xd8] sm:$0xff]  ;;  %v3166_v8 = vld [vmem:[%s9730_s0 + $0xe0] sm:$0xff]  ;;  %v3167_v45 = vld [vmem:[%s9730_s0 + $0xf0] sm:$0xff] }
  0xd1   :  { %10184 = vst [vmem:[#allocation47_spill] sm:$0xff] %v5886_v46  ;;  %10186 = vst [vmem:[#allocation24_spill] sm:$0xff] %v5889_v30  ;;  %v10191_v7 = vld [vmem:[#allocation33_spill] sm:$0xff]  ;;  %v10193_v47 = vld [vmem:[#allocation66_spill] sm:$0xff] }
  0xd2   :  { %10188 = vst [vmem:[#allocation48_spill] sm:$0xff] %v5892_v33  ;;  %10190 = vst [vmem:[#allocation54_spill] sm:$0xff] %v5895_v17  ;;  %v5910_v11 = vadd.f32 %v457_v3, %v10191_v7  ;;  %v5913_v26 = vadd.f32 %v458_v0, %v10193_v47  ;;  %v3168_v18 = vld [vmem:[%s9730_s0 + $0xf8] sm:$0xff]  ;;  %v3169_v52 = vld [vmem:[%s9730_s0 + $0x108] sm:$0xff] }
  0xd3   :  { %v3170_v17 = vld [vmem:[%s9730_s0 + $0x110] sm:$0xff]  ;;  %v3171_v3 = vld [vmem:[%s9730_s0 + $0x120] sm:$0xff]  ;;  %v10195_v7 = vld [vmem:[#allocation20_spill] sm:$0xff] }
  0xd4   :  { %10192 = vst [vmem:[#allocation49_spill] sm:$0xff] %v5910_v11  ;;  %10194 = vst [vmem:[#allocation25_spill] sm:$0xff] %v5913_v26  ;;  %v5928_v11 = vmul.f32 %v3151_v23, %v10195_v7  ;;  %v5931_v0 = vmul.f32 %v3152_v38, %v10195_v7  ;;  %v3172_v47 = vld [vmem:[%s9730_s0 + $0x128] sm:$0xff]  ;;  %v3173_v26 = vld [vmem:[%s9730_s0 + $0x138] sm:$0xff]  ;;  %v5946_v30 = vmul.f32 %v3153_v28, %v10195_v7 }
  0xd5   :  { %v3174_v33 = vld [vmem:[%s9730_s0 + $0x140] sm:$0xff]  ;;  %v3175_v23 = vld [vmem:[%s9730_s0 + $0x150] sm:$0xff]  ;;  %v5949_v38 = vmul.f32 %v3154_v56, %v10195_v7  ;;  %v5952_v46 = vmul.f32 %v3155_v10, %v10195_v7  ;;  %v5955_v29 = vmul.f32 %v3156_v42, %v10195_v7  ;;  %v3176_v44 = vld [vmem:[%s9730_s0 + $0x158] sm:$0xff]  ;;  %v5967_v56 = vmul.f32 %v3157_v4, %v10195_v7 }
  0xd6   :  { %10196 = vst [vmem:[#allocation68_spill] sm:$0xff] %v5931_v0  ;;  %10197 = vst [vmem:[#allocation56_spill] sm:$0xff] %v5946_v30  ;;  %v3177_v0 = vld [vmem:[%s9730_s0 + $0x168] sm:$0xff]  ;;  %v3178_v28 = vld [vmem:[%s9730_s0 + $0x170] sm:$0xff]  ;;  %v5970_v10 = vmul.f32 %v3158_v24, %v10195_v7  ;;  %v5973_v42 = vmul.f32 %v3159_v40, %v10195_v7  ;;  %v5991_v40 = vmul.f32 %v3161_v51, %v10195_v7 }
  0xd7   :  { %10198 = vst [vmem:[#allocation69_spill] sm:$0xff] %v5949_v38  ;;  %10199 = vst [vmem:[#allocation26_spill] sm:$0xff] %v5952_v46  ;;  %v3179_v46 = vld [vmem:[%s9730_s0 + $0x180] sm:$0xff]  ;;  %v3180_v38 = vld [vmem:[%s9730_s0 + $0x188] sm:$0xff]  ;;  %v6004_v30 = vmul.f32 %v3164_v25, %v10195_v7  ;;  %v6007_v63 = vmul.f32 %v3165_v27, %v10195_v7  ;;  %v6010_v51 = vmul.f32 %v3166_v8, %v10195_v7 }
  0xd8   :  { %10200 = vst [vmem:[#allocation70_spill] sm:$0xff] %v5955_v29  ;;  %10201 = vst [vmem:[#allocation57_spill] sm:$0xff] %v5967_v56  ;;  %v5976_v29 = vmul.f32 %v3160_v20, %v10195_v7  ;;  %v3181_v4 = vld [vmem:[%s9730_s0 + $0x198] sm:$0xff]  ;;  %v3182_v24 = vld [vmem:[%s9730_s0 + $0x1a0] sm:$0xff]  ;;  %v5994_v20 = vmul.f32 %v3162_v36, %v10195_v7  ;;  %v6013_v36 = vmul.f32 %v3167_v45, %v10195_v7 }
  0xd9   :  { %10202 = vst [vmem:[#allocation71_spill] sm:$0xff] %v5970_v10  ;;  %10203 = vst [vmem:[#allocation27_spill] sm:$0xff] %v5973_v42  ;;  %v10208_v42 = vld [vmem:[#allocation5_spill] sm:$0xff]  ;;  %v3183_v56 = vld [vmem:[%s9730_s0 + $0x210] sm:$0xff]  ;;  %v6022_v25 = vmul.f32 %v3168_v18, %v10195_v7  ;;  %v6025_v27 = vmul.f32 %v3169_v52, %v10195_v7  ;;  %v6028_v8 = vmul.f32 %v3170_v17, %v10195_v7 }
  0xda   :  { %10204 = vst [vmem:[#allocation72_spill] sm:$0xff] %v5976_v29  ;;  %10205 = vst [vmem:[#allocation58_spill] sm:$0xff] %v5991_v40  ;;  %v5997_v29 = vmul.f32 %v3163_v34, %v10195_v7  ;;  %v1210_v10 = vsub.s32 6, %v10208_v42  ;;  %v3376_v34 = vld [vmem:[%s9730_s0 + $0x248] sm:$0xff]  ;;  %v3377_v42 = vld [vmem:[%s9730_s0 + $0x258] sm:$0xff]  ;;  %v6031_v45 = vmul.f32 %v3171_v3, %v10195_v7  ;;  %v6046_v52 = vmul.f32 %v3172_v47, %v10195_v7 }
  0xdb   :  { %10206 = vst [vmem:[#allocation73_spill] sm:$0xff] %v5994_v20  ;;  %10209 = vst [vmem:[#allocation74_spill] sm:$0xff] %v6004_v30  ;;  %v3380_v18 = vld [vmem:[%s9730_s0 + $0x278] sm:$0xff]  ;;  %v3381_v17 = vld [vmem:[%s9730_s0 + $0x288] sm:$0xff]  ;;  %v6049_v3 = vmul.f32 %v3173_v26, %v10195_v7  ;;  %v6067_v26 = vmul.f32 %v3176_v44, %v10195_v7 }
  0xdc   :  { %10207 = vst [vmem:[#allocation28_spill] sm:$0xff] %v5997_v29  ;;  %10210 = vst [vmem:[#allocation60_spill] sm:$0xff] %v6007_v63  ;;  %v3384_v47 = vld [vmem:[%s9730_s0 + $0x2a8] sm:$0xff]  ;;  %v6087_v44 = vld [vmem:[%s9731_s1] sm:$0xff] }
  0xdd   :  { %10211 = vst [vmem:[#allocation29_spill] sm:$0xff] %v6010_v51  ;;  %10212 = vst [vmem:[#allocation61_spill] sm:$0xff] %v6013_v36  ;;  %v3378_v36 = vld [vmem:[%s9730_s0 + $0x260] sm:$0xff]  ;;  %v3379_v51 = vld [vmem:[%s9730_s0 + $0x270] sm:$0xff] }
  0xde   :  { %10213 = vst [vmem:[#allocation30_spill] sm:$0xff] %v6022_v25  ;;  %10214 = vst [vmem:[#allocation62_spill] sm:$0xff] %v6025_v27  ;;  %v3382_v27 = vld [vmem:[%s9730_s0 + $0x290] sm:$0xff]  ;;  %v3383_v25 = vld [vmem:[%s9730_s0 + $0x2a0] sm:$0xff] }
  0xdf   :  { %10215 = vst [vmem:[#allocation31_spill] sm:$0xff] %v6028_v8  ;;  %10216 = vst [vmem:[#allocation64_spill] sm:$0xff] %v6031_v45  ;;  %v6052_v45 = vmul.f32 %v3174_v33, %v10195_v7  ;;  %v6055_v8 = vmul.f32 %v3175_v23, %v10195_v7  ;;  %v6070_v33 = vmul.f32 %v3177_v0, %v10195_v7  ;;  %v3399_v63 = vld [vmem:[%s9730_s0 + $0x360] sm:$0xff]  ;;  %v3400_v30 = vld [vmem:[%s9730_s0 + $0x368] sm:$0xff] }
  0xe0   :  { %10217 = vst [vmem:[#allocation32_spill] sm:$0xff] %v6046_v52  ;;  %10218 = vst [vmem:[#allocation65_spill] sm:$0xff] %v6049_v3  ;;  %v6073_v23 = vmul.f32 %v3178_v28, %v10195_v7  ;;  %v3387_v3 = vld [vmem:[%s9730_s0 + $0x2d0] sm:$0xff]  ;;  %v6090_v0 = vrot.slane %v6087_v44, %v1210_v10  ;;  %v6093_v28 = vmul.f32 %v3179_v46, %v10195_v7  ;;  %v3388_v52 = vld [vmem:[%s9730_s0 + $0x2d8] sm:$0xff] }
  0xe1   :  { %10219 = vst [vmem:[#allocation33_spill] sm:$0xff] %v6052_v45  ;;  %10220 = vst [vmem:[#allocation66_spill] sm:$0xff] %v6055_v8  ;;  %v3385_v8 = vld [vmem:[%s9730_s0 + $0x2b8] sm:$0xff]  ;;  %v3386_v45 = vld [vmem:[%s9730_s0 + $0x2c0] sm:$0xff] }
  0xe2   :  { %10221 = vst [vmem:[#allocation20_spill] sm:$0xff] %v6067_v26  ;;  %10222 = vst [vmem:[#allocation75_spill] sm:$0xff] %v6070_v33  ;;  %v6099_v33 = vmul.f32 %v3181_v4, %v10195_v7  ;;  %v6102_v26 = vmul.f32 %v3182_v24, %v10195_v7  ;;  %v3389_v10 = vld [vmem:[%s9730_s0 + $0x2e8] sm:$0xff]  ;;  %v3390_v46 = vld [vmem:[%s9730_s0 + $0x2f0] sm:$0xff]  ;;  %v6118_v4 = vadd.f32 %v5928_v11, %v5745_v50 }
  0xe3   :  { %10223 = vst [vmem:[#allocation76_spill] sm:$0xff] %v6073_v23  ;;  %10224 = vst [vmem:[#allocation77_spill] sm:$0xff] %v6087_v44  ;;  %v6096_v23 = vmul.f32 %v3180_v38, %v10195_v7  ;;  %v6114_v38 = vmul.f32 %v3183_v56, %v10195_v7  ;;  %v3391_v24 = vld [vmem:[%s9730_s0 + $0x300] sm:$0xff]  ;;  %v3392_v44 = vld [vmem:[%s9730_s0 + $0x308] sm:$0xff]  ;;  %v1246_v7 = vmul.f32 %v3377_v42, %v6090_v0 }
  0xe4   :  { %10225 = vst [vmem:[#allocation78_spill] sm:$0xff] %v6090_v0  ;;  %10226 = vst [vmem:[#allocation79_spill] sm:$0xff] %v6093_v28  ;;  %v3394_v50 = vld [vmem:[%s9730_s0 + $0x320] sm:$0xff]  ;;  %v3395_v11 = vld [vmem:[%s9730_s0 + $0x330] sm:$0xff]  ;;  %v1250_v42 = vmul.f32 %v3381_v17, %v6090_v0  ;;  %v1254_v17 = vmul.f32 %v3385_v8, %v6090_v0  ;;  %v1258_v8 = vmul.f32 %v3389_v10, %v6090_v0 }
  0xe5   :  { %10227 = vst [vmem:[#allocation80_spill] sm:$0xff] %v6096_v23  ;;  %10228 = vst [vmem:[#allocation81_spill] sm:$0xff] %v6099_v33  ;;  %v1245_v33 = vmul.f32 %v3376_v34, %v6090_v0  ;;  %v3396_v56 = vld [vmem:[%s9730_s0 + $0x338] sm:$0xff]  ;;  %v1249_v34 = vmul.f32 %v3380_v18, %v6090_v0  ;;  %v3397_v23 = vld [vmem:[%s9730_s0 + $0x348] sm:$0xff]  ;;  %v1253_v18 = vmul.f32 %v3384_v47, %v6090_v0 }
  0xe6   :  { %10229 = vst [vmem:[#allocation82_spill] sm:$0xff] %v6102_v26  ;;  %10230 = vst [vmem:[#allocation83_spill] sm:$0xff] %v6114_v38  ;;  %v3393_v26 = vld [vmem:[%s9730_s0 + $0x318] sm:$0xff]  ;;  %v1248_v38 = vmul.f32 %v3379_v51, %v6090_v0  ;;  %v3398_v28 = vld [vmem:[%s9730_s0 + $0x350] sm:$0xff]  ;;  %v1252_v51 = vmul.f32 %v3383_v25, %v6090_v0  ;;  %v1256_v25 = vmul.f32 %v3387_v3, %v6090_v0 }
  0xe7   :  { %10231 = vst [vmem:[#allocation84_spill] sm:$0xff] %v6118_v4  ;;  %v1247_v4 = vmul.f32 %v3378_v36, %v6090_v0  ;;  %v1251_v36 = vmul.f32 %v3382_v27, %v6090_v0  ;;  %v3401_v29 = vld [vmem:[%s9730_s0 + $0x378] sm:$0xff]  ;;  %v3402_v20 = vld [vmem:[%s9730_s0 + $0x380] sm:$0xff]  ;;  %v1255_v27 = vmul.f32 %v3386_v45, %v6090_v0  ;;  %v1257_v47 = vmul.f32 %v3388_v52, %v6090_v0  ;;  %v3403_v40 = vld [vmem:[%s9730_s0 + $0x390] sm:$0xff] }
  0xe8   :  { %v3404_v35 = vld [vmem:[%s9730_s0 + $0x398] sm:$0xff]  ;;  %v3405_v57 = vld [vmem:[%s9730_s0 + $0x3a8] sm:$0xff]  ;;  %v1259_v45 = vmul.f32 %v3390_v46, %v6090_v0  ;;  %v1260_v3 = vmul.f32 %v3391_v24, %v6090_v0  ;;  %v1261_v52 = vmul.f32 %v3392_v44, %v6090_v0  ;;  %v1262_v10 = vmul.f32 %v3393_v26, %v6090_v0  ;;  %v3406_v32 = vld [vmem:[%s9730_s0 + $0x3b0] sm:$0xff] }
  0xe9   :  { %v1263_v53 = vmul.f32 %v3394_v50, %v6090_v0  ;;  %v1264_v19 = vmul.f32 %v3395_v11, %v6090_v0  ;;  %v1265_v5 = vmul.f32 %v3396_v56, %v6090_v0  ;;  %v1266_v9 = vmul.f32 %v3397_v23, %v6090_v0 }
  0xea   :  { %v1267_v46 = vmul.f32 %v3398_v28, %v6090_v0  ;;  %v1268_v24 = vmul.f32 %v3399_v63, %v6090_v0  ;;  %v1269_v44 = vmul.f32 %v3400_v30, %v6090_v0  ;;  %v1270_v26 = vmul.f32 %v3401_v29, %v6090_v0 }
  0xeb   :  { %v1271_v15 = vmul.f32 %v3402_v20, %v6090_v0  ;;  %v1272_v58 = vmul.f32 %v3403_v40, %v6090_v0  ;;  %v1273_v50 = vmul.f32 %v3404_v35, %v6090_v0  ;;  %v1274_v11 = vmul.f32 %v3405_v57, %v6090_v0 }
  0xec   :  { %v1275_v56 = vmul.f32 %v3406_v32, %v6090_v0  ;;  %v6200_v23 = vadd.f32 %v1245_v33, %v5607_v1  ;;  %v6203_v28 = vadd.f32 %v1246_v7, %v5610_v12  ;;  %v6206_v63 = vadd.f32 %v1247_v4, %v5613_v55  ;;  %v10246_v33 = vld [vmem:[#allocation19_spill] sm:$0xff]  ;;  %v10248_v4 = vld [vmem:[#allocation9_spill] sm:$0xff] }
  0xed   :  { %v6209_v29 = vadd.f32 %v1248_v38, %v5616_v6  ;;  %v6212_v30 = vadd.f32 %v1249_v34, %v5619_v59  ;;  %v6215_v35 = vadd.f32 %v1250_v42, %v5622_v48  ;;  %v6218_v32 = vadd.f32 %v1251_v36, %v5625_v54  ;;  %v10250_v34 = vld [vmem:[#allocation17_spill] sm:$0xff]  ;;  %v10251_v42 = vld [vmem:[#allocation68_spill] sm:$0xff] }
  0xee   :  { %v6221_v1 = vadd.f32 %v1252_v51, %v5628_v60  ;;  %v6224_v12 = vadd.f32 %v1253_v18, %v5631_v2  ;;  %v6227_v55 = vadd.f32 %v1254_v17, %v5634_v22  ;;  %v6230_v6 = vadd.f32 %v1255_v27, %v5637_v43  ;;  %v10253_v51 = vld [vmem:[#allocation55_spill] sm:$0xff]  ;;  %v10254_v18 = vld [vmem:[#allocation56_spill] sm:$0xff]  ;;  %v10256_v17 = vld [vmem:[#allocation34_spill] sm:$0xff] }
  0xef   :  { %v6233_v59 = vadd.f32 %v1256_v25, %v5640_v39  ;;  %v6236_v48 = vadd.f32 %v1257_v47, %v5643_v16  ;;  %v6239_v54 = vadd.f32 %v1258_v8, %v5649_v41  ;;  %v6242_v60 = vadd.f32 %v1259_v45, %v5652_v14  ;;  %v10259_v25 = vld [vmem:[#allocation59_spill] sm:$0xff]  ;;  %v10260_v47 = vld [vmem:[#allocation26_spill] sm:$0xff] }
  0xf0   :  { %v6245_v2 = vadd.f32 %v1260_v3, %v5655_v49  ;;  %v6248_v22 = vadd.f32 %v1261_v52, %v5658_v31  ;;  %v6251_v43 = vadd.f32 %v1262_v10, %v5670_v13  ;;  %v6254_v39 = vadd.f32 %v1263_v53, %v5673_v61  ;;  %v10232_v49 = vld [vmem:[#allocation10_spill] sm:$0xff]  ;;  %v10234_v31 = vld [vmem:[#allocation11_spill] sm:$0xff]  ;;  %v10236_v13 = vld [vmem:[#allocation12_spill] sm:$0xff] }
  0xf1   :  { %v6257_v16 = vadd.f32 %v1264_v19, %v5676_v62  ;;  %v6260_v41 = vadd.f32 %v1265_v5, %v5679_v37  ;;  %v6263_v14 = vadd.f32 %v1266_v9, %v5691_v21  ;;  %v6266_v57 = vadd.f32 %v1267_v46, %v10232_v49  ;;  %v10238_v61 = vld [vmem:[#allocation13_spill] sm:$0xff]  ;;  %v10240_v62 = vld [vmem:[#allocation14_spill] sm:$0xff]  ;;  %v10242_v37 = vld [vmem:[#allocation15_spill] sm:$0xff] }
  0xf2   :  { %v6269_v40 = vadd.f32 %v1268_v24, %v10234_v31  ;;  %v6272_v20 = vadd.f32 %v1269_v44, %v10236_v13  ;;  %v6275_v53 = vadd.f32 %v1270_v26, %v10238_v61  ;;  %v6278_v19 = vadd.f32 %v1271_v15, %v10240_v62  ;;  %v10244_v21 = vld [vmem:[#allocation16_spill] sm:$0xff]  ;;  %v10262_v45 = vld [vmem:[#allocation35_spill] sm:$0xff]  ;;  %v10263_v3 = vld [vmem:[#allocation70_spill] sm:$0xff] }
  0xf3   :  { %10233 = vst [vmem:[#allocation10_spill] sm:$0xff] %v6266_v57  ;;  %v6281_v5 = vadd.f32 %v1272_v58, %v10242_v37  ;;  %v6284_v9 = vadd.f32 %v1273_v50, %v10244_v21  ;;  %v6287_v38 = vadd.f32 %v1274_v11, %v10246_v33  ;;  %v6290_v7 = vadd.f32 %v1275_v56, %v10248_v4  ;;  %v10257_v58 = vld [vmem:[#allocation69_spill] sm:$0xff]  ;;  %v10265_v10 = vld [vmem:[#allocation63_spill] sm:$0xff]  ;;  %v10268_v44 = vld [vmem:[#allocation36_spill] sm:$0xff] }
  0xf4   :  { %10235 = vst [vmem:[#allocation11_spill] sm:$0xff] %v6269_v40  ;;  %10237 = vst [vmem:[#allocation12_spill] sm:$0xff] %v6272_v20  ;;  %v6294_v36 = vadd.f32 %v10251_v42, %v10250_v34  ;;  %v6298_v15 = vadd.f32 %v10254_v18, %v10253_v51  ;;  %v6302_v27 = vadd.f32 %v10257_v58, %v10256_v17  ;;  %v10266_v46 = vld [vmem:[#allocation57_spill] sm:$0xff]  ;;  %v10269_v26 = vld [vmem:[#allocation71_spill] sm:$0xff] }
  0xf5   :  { %10239 = vst [vmem:[#allocation13_spill] sm:$0xff] %v6275_v53  ;;  %10241 = vst [vmem:[#allocation14_spill] sm:$0xff] %v6278_v19  ;;  %v6306_v8 = vadd.f32 %v10260_v47, %v10259_v25  ;;  %v6310_v52 = vadd.f32 %v10263_v3, %v10262_v45  ;;  %v6314_v24 = vadd.f32 %v10266_v46, %v10265_v10  ;;  %v10271_v11 = vld [vmem:[#allocation67_spill] sm:$0xff]  ;;  %v10274_v31 = vld [vmem:[#allocation37_spill] sm:$0xff] }
  0xf6   :  { %10243 = vst [vmem:[#allocation15_spill] sm:$0xff] %v6281_v5  ;;  %10245 = vst [vmem:[#allocation16_spill] sm:$0xff] %v6284_v9  ;;  %v6318_v50 = vadd.f32 %v10269_v26, %v10268_v44  ;;  %v10272_v56 = vld [vmem:[#allocation27_spill] sm:$0xff]  ;;  %v10275_v13 = vld [vmem:[#allocation72_spill] sm:$0xff] }
  0xf7   :  { %10247 = vst [vmem:[#allocation19_spill] sm:$0xff] %v6287_v38  ;;  %10249 = vst [vmem:[#allocation9_spill] sm:$0xff] %v6290_v7  ;;  %v6322_v49 = vadd.f32 %v10272_v56, %v10271_v11  ;;  %v6326_v61 = vadd.f32 %v10275_v13, %v10274_v31  ;;  %v10277_v62 = vld [vmem:[#allocation18_spill] sm:$0xff]  ;;  %v10281_v4 = vld [vmem:[#allocation73_spill] sm:$0xff] }
  0xf8   :  { %10252 = vst [vmem:[#allocation17_spill] sm:$0xff] %v6294_v36  ;;  %10255 = vst [vmem:[#allocation68_spill] sm:$0xff] %v6298_v15  ;;  %v10278_v37 = vld [vmem:[#allocation58_spill] sm:$0xff]  ;;  %v10284_v51 = vld [vmem:[#allocation28_spill] sm:$0xff] }
  0xf9   :  { %10258 = vst [vmem:[#allocation55_spill] sm:$0xff] %v6302_v27  ;;  %10261 = vst [vmem:[#allocation56_spill] sm:$0xff] %v6306_v8  ;;  %v6330_v21 = vadd.f32 %v10278_v37, %v10277_v62  ;;  %v10280_v33 = vld [vmem:[#allocation38_spill] sm:$0xff]  ;;  %v10286_v17 = vld [vmem:[#allocation39_spill] sm:$0xff] }
  0xfa   :  { %10264 = vst [vmem:[#allocation34_spill] sm:$0xff] %v6310_v52  ;;  %10267 = vst [vmem:[#allocation69_spill] sm:$0xff] %v6314_v24  ;;  %v6334_v34 = vadd.f32 %v10281_v4, %v10280_v33  ;;  %v10283_v42 = vld [vmem:[#allocation6_spill] sm:$0xff]  ;;  %v10290_v45 = vld [vmem:[#allocation60_spill] sm:$0xff] }
  0xfb   :  { %10270 = vst [vmem:[#allocation59_spill] sm:$0xff] %v6318_v50  ;;  %10273 = vst [vmem:[#allocation26_spill] sm:$0xff] %v6322_v49  ;;  %v6338_v18 = vadd.f32 %v10284_v51, %v10283_v42  ;;  %v10287_v58 = vld [vmem:[#allocation74_spill] sm:$0xff]  ;;  %v10292_v10 = vld [vmem:[#allocation40_spill] sm:$0xff] }
  0xfc   :  { %10276 = vst [vmem:[#allocation35_spill] sm:$0xff] %v6326_v61  ;;  %10279 = vst [vmem:[#allocation70_spill] sm:$0xff] %v6330_v21  ;;  %v6342_v25 = vadd.f32 %v10287_v58, %v10286_v17  ;;  %v10289_v47 = vld [vmem:[#allocation50_spill] sm:$0xff]  ;;  %v10293_v46 = vld [vmem:[#allocation29_spill] sm:$0xff] }
  0xfd   :  { %10282 = vst [vmem:[#allocation63_spill] sm:$0xff] %v6334_v34  ;;  %10285 = vst [vmem:[#allocation57_spill] sm:$0xff] %v6338_v18  ;;  %v6346_v3 = vadd.f32 %v10290_v45, %v10289_v47  ;;  %v6350_v44 = vadd.f32 %v10293_v46, %v10292_v10  ;;  %v10295_v26 = vld [vmem:[#allocation21_spill] sm:$0xff]  ;;  %v3215_v31 = vld [vmem:[%s9730_s0 + $0x32] sm:$0xff] }
  0xfe   :  { %10288 = vst [vmem:[#allocation36_spill] sm:$0xff] %v6342_v25  ;;  %v10296_v11 = vld [vmem:[#allocation61_spill] sm:$0xff]  ;;  %v3217_v62 = vld [vmem:[%s9730_s0 + $0x4a] sm:$0xff]  ;;  %v3218_v37 = vld [vmem:[%s9730_s0 + $0x52] sm:$0xff] }
  0xff   :  { %10291 = vst [vmem:[#allocation71_spill] sm:$0xff] %v6346_v3  ;;  %10294 = vst [vmem:[#allocation67_spill] sm:$0xff] %v6350_v44  ;;  %v6354_v56 = vadd.f32 %v10296_v11, %v10295_v26  ;;  %v3216_v13 = vld [vmem:[%s9730_s0 + $0x3a] sm:$0xff]  ;;  %v10299_v4 = vld [vmem:[#allocation30_spill] sm:$0xff] }
 0x100   :  { %v10298_v33 = vld [vmem:[#allocation41_spill] sm:$0xff]  ;;  %v10301_v51 = vld [vmem:[#allocation51_spill] sm:$0xff]  ;;  %v10302_v17 = vld [vmem:[#allocation62_spill] sm:$0xff] }
 0x101   :  { %10297 = vst [vmem:[#allocation27_spill] sm:$0xff] %v6354_v56  ;;  %v6370_v42 = vadd.f32 %v10299_v4, %v10298_v33  ;;  %v6374_v58 = vadd.f32 %v10302_v17, %v10301_v51  ;;  %v10304_v47 = vld [vmem:[#allocation43_spill] sm:$0xff]  ;;  %v10307_v46 = vld [vmem:[#allocation22_spill] sm:$0xff]  ;;  %v10308_v26 = vld [vmem:[#allocation64_spill] sm:$0xff] }
 0x102   :  { %v10305_v45 = vld [vmem:[#allocation31_spill] sm:$0xff]  ;;  %v6382_v11 = vadd.f32 %v10308_v26, %v10307_v46  ;;  %v3219_v0 = vld [vmem:[%s9730_s0 + $0x62] sm:$0xff]  ;;  %v3221_v4 = vld [vmem:[%s9730_s0 + $0x7a] sm:$0xff] }
 0x103   :  { %10300 = vst [vmem:[#allocation37_spill] sm:$0xff] %v6370_v42  ;;  %10303 = vst [vmem:[#allocation72_spill] sm:$0xff] %v6374_v58  ;;  %v6378_v10 = vadd.f32 %v10305_v45, %v10304_v47  ;;  %v3220_v33 = vld [vmem:[%s9730_s0 + $0x6a] sm:$0xff]  ;;  %v3222_v51 = vld [vmem:[%s9730_s0 + $0x82] sm:$0xff] }
 0x104   :  { %10309 = vst [vmem:[#allocation58_spill] sm:$0xff] %v6382_v11  ;;  %v10310_v17 = vld [vmem:[#allocation44_spill] sm:$0xff]  ;;  %v10314_v26 = vld [vmem:[#allocation65_spill] sm:$0xff]  ;;  %v10319_v56 = vld [vmem:[#allocation23_spill] sm:$0xff] }
 0x105   :  { %10306 = vst [vmem:[#allocation18_spill] sm:$0xff] %v6378_v10  ;;  %v10311_v47 = vld [vmem:[#allocation32_spill] sm:$0xff]  ;;  %v10316_v10 = vld [vmem:[#allocation45_spill] sm:$0xff]  ;;  %v10320_v44 = vld [vmem:[#allocation66_spill] sm:$0xff] }
 0x106   :  { %v6398_v45 = vadd.f32 %v10311_v47, %v10310_v17  ;;  %v10313_v46 = vld [vmem:[#allocation52_spill] sm:$0xff]  ;;  %v10317_v58 = vld [vmem:[#allocation33_spill] sm:$0xff]  ;;  %v6410_v3 = vadd.f32 %v10320_v44, %v10319_v56  ;;  %v3225_v47 = vld [vmem:[%s9730_s0 + $0xaa] sm:$0xff] }
 0x107   :  { %v6402_v11 = vadd.f32 %v10314_v26, %v10313_v46  ;;  %v6406_v42 = vadd.f32 %v10317_v58, %v10316_v10  ;;  %v3223_v25 = vld [vmem:[%s9730_s0 + $0x92] sm:$0xff]  ;;  %v3224_v17 = vld [vmem:[%s9730_s0 + $0x9a] sm:$0xff]  ;;  %v10322_v46 = vld [vmem:[#allocation46_spill] sm:$0xff] }
 0x108   :  { %10312 = vst [vmem:[#allocation38_spill] sm:$0xff] %v6398_v45  ;;  %10321 = vst [vmem:[#allocation28_spill] sm:$0xff] %v6410_v3  ;;  %v10323_v26 = vld [vmem:[#allocation20_spill] sm:$0xff]  ;;  %v10325_v10 = vld [vmem:[#allocation53_spill] sm:$0xff] }
 0x109   :  { %10315 = vst [vmem:[#allocation73_spill] sm:$0xff] %v6402_v11  ;;  %10318 = vst [vmem:[#allocation6_spill] sm:$0xff] %v6406_v42  ;;  %v6423_v58 = vadd.f32 %v10323_v26, %v10322_v46  ;;  %v10326_v42 = vld [vmem:[#allocation75_spill] sm:$0xff]  ;;  %v10329_v3 = vld [vmem:[#allocation76_spill] sm:$0xff] }
 0x10a   :  { %v6427_v44 = vadd.f32 %v10326_v42, %v10325_v10  ;;  %v10328_v56 = vld [vmem:[#allocation47_spill] sm:$0xff]  ;;  %v10331_v45 = vld [vmem:[#allocation24_spill] sm:$0xff]  ;;  %v3227_v46 = vld [vmem:[%s9730_s0 + $0xc2] sm:$0xff] }
 0x10b   :  { %10324 = vst [vmem:[#allocation39_spill] sm:$0xff] %v6423_v58  ;;  %v6431_v11 = vadd.f32 %v10329_v3, %v10328_v56  ;;  %v10332_v18 = vld [vmem:[#allocation79_spill] sm:$0xff]  ;;  %v3229_v3 = vld [vmem:[%s9730_s0 + $0xda] sm:$0xff]  ;;  %v3230_v24 = vld [vmem:[%s9730_s0 + $0xe2] sm:$0xff] }
 0x10c   :  { %10327 = vst [vmem:[#allocation74_spill] sm:$0xff] %v6427_v44  ;;  %v6435_v34 = vadd.f32 %v10332_v18, %v10331_v45  ;;  %v3226_v21 = vld [vmem:[%s9730_s0 + $0xb2] sm:$0xff]  ;;  %v3228_v42 = vld [vmem:[%s9730_s0 + $0xca] sm:$0xff]  ;;  %v10338_v56 = vld [vmem:[#allocation81_spill] sm:$0xff] }
 0x10d   :  { %10330 = vst [vmem:[#allocation50_spill] sm:$0xff] %v6431_v11  ;;  %v10334_v26 = vld [vmem:[#allocation48_spill] sm:$0xff]  ;;  %v10337_v45 = vld [vmem:[#allocation54_spill] sm:$0xff]  ;;  %v10340_v11 = vld [vmem:[#allocation49_spill] sm:$0xff] }
 0x10e   :  { %10333 = vst [vmem:[#allocation60_spill] sm:$0xff] %v6435_v34  ;;  %v10335_v10 = vld [vmem:[#allocation80_spill] sm:$0xff]  ;;  %v6455_v34 = vadd.f32 %v10338_v56, %v10337_v45  ;;  %v10341_v44 = vld [vmem:[#allocation82_spill] sm:$0xff]  ;;  %v10343_v61 = vld [vmem:[#allocation25_spill] sm:$0xff] }
 0x10f   :  { %v6451_v18 = vadd.f32 %v10335_v10, %v10334_v26  ;;  %v6459_v58 = vadd.f32 %v10341_v44, %v10340_v11  ;;  %v10344_v49 = vld [vmem:[#allocation83_spill] sm:$0xff]  ;;  %v3232_v10 = vld [vmem:[%s9730_s0 + $0xfa] sm:$0xff]  ;;  %v3238_v52 = vld [vmem:[%s9730_s0 + $0x142] sm:$0xff] }
 0x110   :  { %10339 = vst [vmem:[#allocation29_spill] sm:$0xff] %v6455_v34  ;;  %v6463_v50 = vadd.f32 %v10344_v49, %v10343_v61  ;;  %v3231_v26 = vld [vmem:[%s9730_s0 + $0xf2] sm:$0xff]  ;;  %v3233_v11 = vld [vmem:[%s9730_s0 + $0x10a] sm:$0xff]  ;;  %v3235_v61 = vld [vmem:[%s9730_s0 + $0x122] sm:$0xff] }
 0x111   :  { %10336 = vst [vmem:[#allocation40_spill] sm:$0xff] %v6451_v18  ;;  %10342 = vst [vmem:[#allocation21_spill] sm:$0xff] %v6459_v58  ;;  %v3234_v49 = vld [vmem:[%s9730_s0 + $0x112] sm:$0xff]  ;;  %v3236_v44 = vld [vmem:[%s9730_s0 + $0x12a] sm:$0xff] }
 0x112   :  { %10345 = vst [vmem:[#allocation61_spill] sm:$0xff] %v6463_v50  ;;  %v3237_v45 = vld [vmem:[%s9730_s0 + $0x13a] sm:$0xff]  ;;  %v3239_v8 = vld [vmem:[%s9730_s0 + $0x152] sm:$0xff]  ;;  %v3241_v27 = vld [vmem:[%s9730_s0 + $0x16a] sm:$0xff] }
 0x113   :  { %v10346_v56 = vld [vmem:[#allocation8_spill] sm:$0xff]  ;;  %v3246_v15 = vld [vmem:[%s9730_s0 + $0x1a2] sm:$0xff]  ;;  %v3469_v38 = vld [vmem:[%s9730_s0 + $0x3aa] sm:$0xff] }
 0x114   :  { %v6490_v50 = vmul.f32 %v3215_v31, %v10346_v56  ;;  %v6493_v58 = vmul.f32 %v3216_v13, %v10346_v56  ;;  %v6496_v34 = vmul.f32 %v3217_v62, %v10346_v56  ;;  %v6499_v18 = vmul.f32 %v3218_v37, %v10346_v56  ;;  %v3240_v31 = vld [vmem:[%s9730_s0 + $0x15a] sm:$0xff]  ;;  %v3470_v9 = vld [vmem:[%s9730_s0 + $0x3b2] sm:$0xff] }
 0x115   :  { %v6511_v13 = vmul.f32 %v3219_v0, %v10346_v56  ;;  %v6514_v62 = vmul.f32 %v3220_v33, %v10346_v56  ;;  %v6517_v37 = vmul.f32 %v3221_v4, %v10346_v56  ;;  %v3243_v0 = vld [vmem:[%s9730_s0 + $0x182] sm:$0xff]  ;;  %v3244_v33 = vld [vmem:[%s9730_s0 + $0x18a] sm:$0xff]  ;;  %v6535_v4 = vmul.f32 %v3223_v25, %v10346_v56  ;;  %v3465_v36 = vld [vmem:[%s9730_s0 + $0x37a] sm:$0xff] }
 0x116   :  { %10347 = vst [vmem:[#allocation41_spill] sm:$0xff] %v6490_v50  ;;  %10348 = vst [vmem:[#allocation30_spill] sm:$0xff] %v6493_v58  ;;  %v6551_v58 = vmul.f32 %v3226_v21, %v10346_v56  ;;  %v6554_v25 = vmul.f32 %v3227_v46, %v10346_v56  ;;  %v6569_v21 = vmul.f32 %v3230_v24, %v10346_v56  ;;  %v3444_v24 = vld [vmem:[%s9730_s0 + $0x27a] sm:$0xff]  ;;  %v3466_v50 = vld [vmem:[%s9730_s0 + $0x382] sm:$0xff] }
 0x117   :  { %10349 = vst [vmem:[#allocation51_spill] sm:$0xff] %v6496_v34  ;;  %10350 = vst [vmem:[#allocation62_spill] sm:$0xff] %v6499_v18  ;;  %v6520_v18 = vmul.f32 %v3222_v51, %v10346_v56  ;;  %v3242_v34 = vld [vmem:[%s9730_s0 + $0x172] sm:$0xff]  ;;  %v6538_v51 = vmul.f32 %v3224_v17, %v10346_v56  ;;  %v6557_v17 = vmul.f32 %v3228_v42, %v10346_v56  ;;  %v3468_v7 = vld [vmem:[%s9730_s0 + $0x39a] sm:$0xff] }
 0x118   :  { %10351 = vst [vmem:[#allocation43_spill] sm:$0xff] %v6511_v13  ;;  %10352 = vst [vmem:[#allocation31_spill] sm:$0xff] %v6514_v62  ;;  %v3245_v13 = vld [vmem:[%s9730_s0 + $0x19a] sm:$0xff]  ;;  %v6572_v46 = vmul.f32 %v3231_v26, %v10346_v56  ;;  %v6575_v42 = vmul.f32 %v3232_v10, %v10346_v56  ;;  %v3445_v26 = vld [vmem:[%s9730_s0 + $0x28a] sm:$0xff]  ;;  %v6593_v10 = vmul.f32 %v3234_v49, %v10346_v56 }
 0x119   :  { %10353 = vst [vmem:[#allocation22_spill] sm:$0xff] %v6517_v37  ;;  %10354 = vst [vmem:[#allocation64_spill] sm:$0xff] %v6520_v18  ;;  %v6541_v18 = vmul.f32 %v3225_v47, %v10346_v56  ;;  %v10358_v37 = vld [vmem:[#allocation5_spill] sm:$0xff]  ;;  %v6560_v47 = vmul.f32 %v3229_v3, %v10346_v56  ;;  %v6578_v3 = vmul.f32 %v3233_v11, %v10346_v56  ;;  %v3448_v49 = vld [vmem:[%s9730_s0 + $0x2aa] sm:$0xff] }
 0x11a   :  { %10355 = vst [vmem:[#allocation44_spill] sm:$0xff] %v6535_v4  ;;  %10356 = vst [vmem:[#allocation32_spill] sm:$0xff] %v6538_v51  ;;  %v1406_v62 = vsub.s32 7, %v10358_v37  ;;  %v3440_v37 = vld [vmem:[%s9730_s0 + $0x24a] sm:$0xff]  ;;  %v6596_v11 = vmul.f32 %v3235_v61, %v10346_v56  ;;  %v6614_v61 = vmul.f32 %v3238_v52, %v10346_v56  ;;  %v10374_v52 = vld [vmem:[#allocation77_spill] sm:$0xff] }
 0x11b   :  { %10357 = vst [vmem:[#allocation52_spill] sm:$0xff] %v6541_v18  ;;  %10359 = vst [vmem:[#allocation65_spill] sm:$0xff] %v6551_v58  ;;  %v3441_v18 = vld [vmem:[%s9730_s0 + $0x25a] sm:$0xff]  ;;  %v3462_v58 = vld [vmem:[%s9730_s0 + $0x352] sm:$0xff] }
 0x11c   :  { %10360 = vst [vmem:[#allocation45_spill] sm:$0xff] %v6554_v25  ;;  %10361 = vst [vmem:[#allocation33_spill] sm:$0xff] %v6557_v17  ;;  %v3443_v17 = vld [vmem:[%s9730_s0 + $0x272] sm:$0xff]  ;;  %v3461_v25 = vld [vmem:[%s9730_s0 + $0x34a] sm:$0xff] }
 0x11d   :  { %10362 = vst [vmem:[#allocation23_spill] sm:$0xff] %v6560_v47  ;;  %10363 = vst [vmem:[#allocation66_spill] sm:$0xff] %v6569_v21  ;;  %v3442_v47 = vld [vmem:[%s9730_s0 + $0x262] sm:$0xff]  ;;  %v3464_v4 = vld [vmem:[%s9730_s0 + $0x36a] sm:$0xff] }
 0x11e   :  { %10364 = vst [vmem:[#allocation46_spill] sm:$0xff] %v6572_v46  ;;  %10365 = vst [vmem:[#allocation20_spill] sm:$0xff] %v6575_v42  ;;  %v6602_v42 = vmul.f32 %v3237_v45, %v10346_v56  ;;  %v3446_v46 = vld [vmem:[%s9730_s0 + $0x292] sm:$0xff]  ;;  %v3447_v21 = vld [vmem:[%s9730_s0 + $0x2a2] sm:$0xff]  ;;  %v6620_v45 = vmul.f32 %v3240_v31, %v10346_v56  ;;  %v6638_v31 = vmul.f32 %v3242_v34, %v10346_v56 }
 0x11f   :  { %10366 = vst [vmem:[#allocation53_spill] sm:$0xff] %v6578_v3  ;;  %10367 = vst [vmem:[#allocation75_spill] sm:$0xff] %v6593_v10  ;;  %v6599_v3 = vmul.f32 %v3236_v44, %v10346_v56  ;;  %v6617_v44 = vmul.f32 %v3239_v8, %v10346_v56  ;;  %v6635_v8 = vmul.f32 %v3241_v27, %v10346_v56  ;;  %v3452_v10 = vld [vmem:[%s9730_s0 + $0x2da] sm:$0xff]  ;;  %v3454_v27 = vld [vmem:[%s9730_s0 + $0x2f2] sm:$0xff] }
 0x120   :  { %10368 = vst [vmem:[#allocation47_spill] sm:$0xff] %v6596_v11  ;;  %10370 = vst [vmem:[#allocation24_spill] sm:$0xff] %v6602_v42  ;;  %v3449_v42 = vld [vmem:[%s9730_s0 + $0x2ba] sm:$0xff]  ;;  %v3451_v11 = vld [vmem:[%s9730_s0 + $0x2d2] sm:$0xff]  ;;  %v6656_v34 = vmul.f32 %v3245_v13, %v10346_v56 }
 0x121   :  { %10369 = vst [vmem:[#allocation76_spill] sm:$0xff] %v6599_v3  ;;  %10371 = vst [vmem:[#allocation79_spill] sm:$0xff] %v6614_v61  ;;  %v3450_v3 = vld [vmem:[%s9730_s0 + $0x2c2] sm:$0xff]  ;;  %v6632_v61 = vrot.slane %v10374_v52, %v1406_v62  ;;  %v3453_v62 = vld [vmem:[%s9730_s0 + $0x2ea] sm:$0xff] }
 0x122   :  { %10372 = vst [vmem:[#allocation48_spill] sm:$0xff] %v6617_v44  ;;  %10373 = vst [vmem:[#allocation80_spill] sm:$0xff] %v6620_v45  ;;  %v6641_v45 = vmul.f32 %v3243_v0, %v10346_v56  ;;  %v6644_v44 = vmul.f32 %v3244_v33, %v10346_v56  ;;  %v6659_v0 = vmul.f32 %v3246_v15, %v10346_v56  ;;  %v3455_v33 = vld [vmem:[%s9730_s0 + $0x302] sm:$0xff]  ;;  %v3456_v52 = vld [vmem:[%s9730_s0 + $0x30a] sm:$0xff] }
 0x123   :  { %10375 = vst [vmem:[#allocation54_spill] sm:$0xff] %v6635_v8  ;;  %10376 = vst [vmem:[#allocation81_spill] sm:$0xff] %v6638_v31  ;;  %v1442_v13 = vmul.f32 %v3441_v18, %v6632_v61  ;;  %v3458_v15 = vld [vmem:[%s9730_s0 + $0x322] sm:$0xff]  ;;  %v1443_v31 = vmul.f32 %v3442_v47, %v6632_v61  ;;  %v1444_v8 = vmul.f32 %v3443_v17, %v6632_v61  ;;  %v3467_v56 = vld [vmem:[%s9730_s0 + $0x392] sm:$0xff] }
 0x124   :  { %10377 = vst [vmem:[#allocation49_spill] sm:$0xff] %v6641_v45  ;;  %10378 = vst [vmem:[#allocation82_spill] sm:$0xff] %v6644_v44  ;;  %v3457_v44 = vld [vmem:[%s9730_s0 + $0x31a] sm:$0xff]  ;;  %v1441_v45 = vmul.f32 %v3440_v37, %v6632_v61  ;;  %v1445_v37 = vmul.f32 %v3444_v24, %v6632_v61  ;;  %v1446_v18 = vmul.f32 %v3445_v26, %v6632_v61  ;;  %v3463_v51 = vld [vmem:[%s9730_s0 + $0x362] sm:$0xff] }
 0x125   :  { %10379 = vst [vmem:[#allocation25_spill] sm:$0xff] %v6656_v34  ;;  %10380 = vst [vmem:[#allocation83_spill] sm:$0xff] %v6659_v0  ;;  %v3459_v0 = vld [vmem:[%s9730_s0 + $0x332] sm:$0xff]  ;;  %v3460_v34 = vld [vmem:[%s9730_s0 + $0x33a] sm:$0xff]  ;;  %v1447_v47 = vmul.f32 %v3446_v46, %v6632_v61  ;;  %v1448_v17 = vmul.f32 %v3447_v21, %v6632_v61  ;;  %v1449_v24 = vmul.f32 %v3448_v49, %v6632_v61 }
 0x126   :  { %v1450_v26 = vmul.f32 %v3449_v42, %v6632_v61  ;;  %v1451_v46 = vmul.f32 %v3450_v3, %v6632_v61  ;;  %v1452_v21 = vmul.f32 %v3451_v11, %v6632_v61  ;;  %v1453_v49 = vmul.f32 %v3452_v10, %v6632_v61 }
 0x127   :  { %v1454_v42 = vmul.f32 %v3453_v62, %v6632_v61  ;;  %v1455_v3 = vmul.f32 %v3454_v27, %v6632_v61  ;;  %v1456_v11 = vmul.f32 %v3455_v33, %v6632_v61  ;;  %v1457_v10 = vmul.f32 %v3456_v52, %v6632_v61 }
 0x128   :  { %v1458_v62 = vmul.f32 %v3457_v44, %v6632_v61  ;;  %v1459_v5 = vmul.f32 %v3458_v15, %v6632_v61  ;;  %v1460_v19 = vmul.f32 %v3459_v0, %v6632_v61  ;;  %v1461_v53 = vmul.f32 %v3460_v34, %v6632_v61 }
 0x129   :  { %v1462_v20 = vmul.f32 %v3461_v25, %v6632_v61  ;;  %v1463_v27 = vmul.f32 %v3462_v58, %v6632_v61  ;;  %v1464_v33 = vmul.f32 %v3463_v51, %v6632_v61  ;;  %v1465_v52 = vmul.f32 %v3464_v4, %v6632_v61  ;;  %v10409_v51 = vld [vmem:[#allocation13_spill] sm:$0xff] }
 0x12a   :  { %v1466_v44 = vmul.f32 %v3465_v36, %v6632_v61  ;;  %v1467_v40 = vmul.f32 %v3466_v50, %v6632_v61  ;;  %v1468_v57 = vmul.f32 %v3467_v56, %v6632_v61  ;;  %v1469_v15 = vmul.f32 %v3468_v7, %v6632_v61 }
 0x12b   :  { %v1470_v0 = vmul.f32 %v3469_v38, %v6632_v61  ;;  %v1471_v34 = vmul.f32 %v3470_v9, %v6632_v61  ;;  %v6741_v25 = vadd.f32 %v1441_v45, %v6200_v23  ;;  %v6744_v58 = vadd.f32 %v1442_v13, %v6203_v28  ;;  %v10419_v13 = vld [vmem:[#allocation9_spill] sm:$0xff] }
 0x12c   :  { %v6747_v4 = vadd.f32 %v1443_v31, %v6206_v63  ;;  %v6750_v36 = vadd.f32 %v1444_v8, %v6209_v29  ;;  %v6753_v50 = vadd.f32 %v1445_v37, %v6212_v30  ;;  %v6756_v7 = vadd.f32 %v1446_v18, %v6215_v35  ;;  %v10417_v8 = vld [vmem:[#allocation19_spill] sm:$0xff]  ;;  %v10421_v18 = vld [vmem:[#allocation8_spill] sm:$0xff] }
 0x12d   :  { %10381 = vst [vmem:[#allocation5_spill] sm:$0xff] %v6741_v25  ;;  %10382 = vst [vmem:[#allocation77_spill] sm:$0xff] %v6744_v58  ;;  %v6759_v9 = vadd.f32 %v1447_v47, %v6218_v32  ;;  %v6762_v23 = vadd.f32 %v1448_v17, %v6221_v1  ;;  %v6765_v28 = vadd.f32 %v1449_v24, %v6224_v12  ;;  %v10422_v17 = vld [vmem:[#allocation84_spill] sm:$0xff]  ;;  %v10423_v24 = vld [vmem:[#allocation41_spill] sm:$0xff] }
 0x12e   :  { %10383 = vst [vmem:[#allocation85_spill] sm:$0xff] %v6747_v4  ;;  %10384 = vst [vmem:[#allocation86_spill] sm:$0xff] %v6750_v36  ;;  %v6768_v63 = vadd.f32 %v1450_v26, %v6227_v55  ;;  %v6771_v29 = vadd.f32 %v1451_v46, %v6230_v6  ;;  %v6774_v30 = vadd.f32 %v1452_v21, %v6233_v59  ;;  %v10425_v46 = vld [vmem:[#allocation30_spill] sm:$0xff]  ;;  %v3301_v25 = vld [vmem:[%s9730_s0 + $0x13c] sm:$0xff] }
 0x12f   :  { %10385 = vst [vmem:[#allocation87_spill] sm:$0xff] %v6753_v50  ;;  %10386 = vst [vmem:[#allocation88_spill] sm:$0xff] %v6756_v7  ;;  %v6777_v35 = vadd.f32 %v1453_v49, %v6236_v48  ;;  %v6780_v32 = vadd.f32 %v1454_v42, %v6239_v54  ;;  %v6783_v1 = vadd.f32 %v1455_v3, %v6242_v60  ;;  %v3247_v48 = vld [vmem:[%s9730_s0 + $0x212] sm:$0xff] }
 0x130   :  { %10387 = vst [vmem:[#allocation89_spill] sm:$0xff] %v6759_v9  ;;  %10388 = vst [vmem:[#allocation90_spill] sm:$0xff] %v6762_v23  ;;  %v6786_v12 = vadd.f32 %v1456_v11, %v6245_v2  ;;  %v6789_v55 = vadd.f32 %v1457_v10, %v6248_v22  ;;  %v6792_v6 = vadd.f32 %v1458_v62, %v6251_v43  ;;  %v10403_v22 = vld [vmem:[#allocation10_spill] sm:$0xff]  ;;  %v10405_v43 = vld [vmem:[#allocation11_spill] sm:$0xff] }
 0x131   :  { %10389 = vst [vmem:[#allocation91_spill] sm:$0xff] %v6765_v28  ;;  %10390 = vst [vmem:[#allocation92_spill] sm:$0xff] %v6768_v63  ;;  %v6795_v59 = vadd.f32 %v1459_v5, %v6254_v39  ;;  %v6801_v54 = vadd.f32 %v1460_v19, %v6257_v16  ;;  %v6804_v60 = vadd.f32 %v1461_v53, %v6260_v41  ;;  %v10407_v39 = vld [vmem:[#allocation12_spill] sm:$0xff]  ;;  %v10411_v16 = vld [vmem:[#allocation14_spill] sm:$0xff] }
 0x132   :  { %10391 = vst [vmem:[#allocation93_spill] sm:$0xff] %v6771_v29  ;;  %10392 = vst [vmem:[#allocation94_spill] sm:$0xff] %v6774_v30  ;;  %v6807_v2 = vadd.f32 %v1462_v20, %v6263_v14  ;;  %v6810_v38 = vadd.f32 %v1463_v27, %v10403_v22  ;;  %v6813_v56 = vadd.f32 %v1464_v33, %v10405_v43  ;;  %v10413_v41 = vld [vmem:[#allocation15_spill] sm:$0xff]  ;;  %v10415_v14 = vld [vmem:[#allocation16_spill] sm:$0xff] }
 0x133   :  { %10393 = vst [vmem:[#allocation95_spill] sm:$0xff] %v6777_v35  ;;  %10394 = vst [vmem:[#allocation96_spill] sm:$0xff] %v6780_v32  ;;  %v6816_v5 = vadd.f32 %v1465_v52, %v10407_v39  ;;  %v6819_v45 = vadd.f32 %v1466_v44, %v10409_v51  ;;  %v6822_v19 = vadd.f32 %v1467_v40, %v10411_v16  ;;  %v10424_v40 = vld [vmem:[#allocation17_spill] sm:$0xff]  ;;  %v10427_v49 = vld [vmem:[#allocation51_spill] sm:$0xff] }
 0x134   :  { %10395 = vst [vmem:[#allocation97_spill] sm:$0xff] %v6783_v1  ;;  %10396 = vst [vmem:[#allocation98_spill] sm:$0xff] %v6786_v12  ;;  %v6825_v53 = vadd.f32 %v1468_v57, %v10413_v41  ;;  %v6828_v20 = vadd.f32 %v1469_v15, %v10415_v14  ;;  %v6831_v31 = vadd.f32 %v1470_v0, %v10417_v8  ;;  %v10426_v57 = vld [vmem:[#allocation68_spill] sm:$0xff]  ;;  %v10428_v3 = vld [vmem:[#allocation55_spill] sm:$0xff] }
 0x135   :  { %10397 = vst [vmem:[#allocation99_spill] sm:$0xff] %v6789_v55  ;;  %10398 = vst [vmem:[#allocation100_spill] sm:$0xff] %v6792_v6  ;;  %v6834_v37 = vadd.f32 %v1471_v34, %v10419_v13  ;;  %v851_v47 = vmul.f32 %v3247_v48, %v10421_v18  ;;  %v6839_v26 = vadd.f32 %v10423_v24, %v10422_v17  ;;  %v10429_v11 = vld [vmem:[#allocation62_spill] sm:$0xff]  ;;  %v10430_v62 = vld [vmem:[#allocation56_spill] sm:$0xff] }
 0x136   :  { %10399 = vst [vmem:[#allocation101_spill] sm:$0xff] %v6795_v59  ;;  %10400 = vst [vmem:[#allocation102_spill] sm:$0xff] %v6801_v54  ;;  %v6843_v21 = vadd.f32 %v10425_v46, %v10424_v40  ;;  %v6847_v42 = vadd.f32 %v10427_v49, %v10426_v57  ;;  %v6851_v10 = vadd.f32 %v10429_v11, %v10428_v3  ;;  %v10431_v27 = vld [vmem:[#allocation43_spill] sm:$0xff]  ;;  %v10432_v52 = vld [vmem:[#allocation34_spill] sm:$0xff] }
 0x137   :  { %10401 = vst [vmem:[#allocation103_spill] sm:$0xff] %v6804_v60  ;;  %10402 = vst [vmem:[#allocation104_spill] sm:$0xff] %v6807_v2  ;;  %v6855_v33 = vadd.f32 %v10431_v27, %v10430_v62  ;;  %v10433_v44 = vld [vmem:[#allocation31_spill] sm:$0xff]  ;;  %v10434_v0 = vld [vmem:[#allocation69_spill] sm:$0xff] }
 0x138   :  { %10404 = vst [vmem:[#allocation10_spill] sm:$0xff] %v6810_v38  ;;  %10406 = vst [vmem:[#allocation11_spill] sm:$0xff] %v6813_v56  ;;  %v6859_v15 = vadd.f32 %v10433_v44, %v10432_v52  ;;  %v10435_v34 = vld [vmem:[#allocation22_spill] sm:$0xff]  ;;  %v10436_v22 = vld [vmem:[#allocation59_spill] sm:$0xff] }
 0x139   :  { %10408 = vst [vmem:[#allocation12_spill] sm:$0xff] %v6816_v5  ;;  %10410 = vst [vmem:[#allocation13_spill] sm:$0xff] %v6819_v45  ;;  %v6863_v48 = vadd.f32 %v10435_v34, %v10434_v0  ;;  %v10437_v43 = vld [vmem:[#allocation64_spill] sm:$0xff]  ;;  %v10438_v51 = vld [vmem:[#allocation26_spill] sm:$0xff] }
 0x13a   :  { %10412 = vst [vmem:[#allocation14_spill] sm:$0xff] %v6822_v19  ;;  %10414 = vst [vmem:[#allocation15_spill] sm:$0xff] %v6825_v53  ;;  %v6867_v39 = vadd.f32 %v10437_v43, %v10436_v22  ;;  %v10439_v16 = vld [vmem:[#allocation44_spill] sm:$0xff]  ;;  %v10440_v14 = vld [vmem:[#allocation35_spill] sm:$0xff] }
 0x13b   :  { %10416 = vst [vmem:[#allocation16_spill] sm:$0xff] %v6828_v20  ;;  %10418 = vst [vmem:[#allocation19_spill] sm:$0xff] %v6831_v31  ;;  %v6871_v41 = vadd.f32 %v10439_v16, %v10438_v51  ;;  %v10441_v8 = vld [vmem:[#allocation32_spill] sm:$0xff]  ;;  %v10442_v18 = vld [vmem:[#allocation70_spill] sm:$0xff] }
 0x13c   :  { %10420 = vst [vmem:[#allocation9_spill] sm:$0xff] %v6834_v37  ;;  %v6875_v13 = vadd.f32 %v10441_v8, %v10440_v14  ;;  %v10443_v17 = vld [vmem:[#allocation52_spill] sm:$0xff]  ;;  %v10444_v40 = vld [vmem:[#allocation63_spill] sm:$0xff]  ;;  %v10445_v46 = vld [vmem:[#allocation65_spill] sm:$0xff] }
 0x13d   :  { %v6879_v24 = vadd.f32 %v10443_v17, %v10442_v18  ;;  %v6883_v57 = vadd.f32 %v10445_v46, %v10444_v40  ;;  %v10446_v49 = vld [vmem:[#allocation57_spill] sm:$0xff]  ;;  %v10448_v62 = vld [vmem:[#allocation36_spill] sm:$0xff]  ;;  %v10450_v44 = vld [vmem:[#allocation71_spill] sm:$0xff] }
 0x13e   :  { %v10447_v3 = vld [vmem:[#allocation45_spill] sm:$0xff]  ;;  %v10451_v0 = vld [vmem:[#allocation23_spill] sm:$0xff]  ;;  %v10453_v43 = vld [vmem:[#allocation66_spill] sm:$0xff] }
 0x13f   :  { %v6887_v11 = vadd.f32 %v10447_v3, %v10446_v49  ;;  %v10449_v27 = vld [vmem:[#allocation33_spill] sm:$0xff]  ;;  %v6895_v34 = vadd.f32 %v10451_v0, %v10450_v44  ;;  %v10452_v22 = vld [vmem:[#allocation67_spill] sm:$0xff]  ;;  %v10455_v14 = vld [vmem:[#allocation46_spill] sm:$0xff] }
 0x140   :  { %v6891_v52 = vadd.f32 %v10449_v27, %v10448_v62  ;;  %v6899_v51 = vadd.f32 %v10453_v43, %v10452_v22  ;;  %v10454_v16 = vld [vmem:[#allocation27_spill] sm:$0xff]  ;;  %v10456_v18 = vld [vmem:[#allocation37_spill] sm:$0xff]  ;;  %v10457_v17 = vld [vmem:[#allocation20_spill] sm:$0xff] }
 0x141   :  { %v6903_v8 = vadd.f32 %v10455_v14, %v10454_v16  ;;  %v6907_v40 = vadd.f32 %v10457_v17, %v10456_v18  ;;  %v10458_v46 = vld [vmem:[#allocation72_spill] sm:$0xff]  ;;  %v10459_v49 = vld [vmem:[#allocation53_spill] sm:$0xff]  ;;  %v3281_v44 = vld [vmem:[%s9730_s0 + $0x4c] sm:$0xff] }
 0x142   :  { %v6911_v3 = vadd.f32 %v10459_v49, %v10458_v46  ;;  %v3279_v62 = vld [vmem:[%s9730_s0 + $0x34] sm:$0xff]  ;;  %v3280_v27 = vld [vmem:[%s9730_s0 + $0x3c] sm:$0xff]  ;;  %v10460_v0 = vld [vmem:[#allocation18_spill] sm:$0xff] }
 0x143   :  { %v10461_v22 = vld [vmem:[#allocation75_spill] sm:$0xff]  ;;  %v10462_v16 = vld [vmem:[#allocation58_spill] sm:$0xff]  ;;  %v10465_v46 = vld [vmem:[#allocation76_spill] sm:$0xff] }
 0x144   :  { %v6924_v43 = vadd.f32 %v10461_v22, %v10460_v0  ;;  %v10463_v14 = vld [vmem:[#allocation47_spill] sm:$0xff]  ;;  %v10464_v17 = vld [vmem:[#allocation38_spill] sm:$0xff]  ;;  %v10467_v37 = vld [vmem:[#allocation73_spill] sm:$0xff] }
 0x145   :  { %v6928_v18 = vadd.f32 %v10463_v14, %v10462_v16  ;;  %v6932_v49 = vadd.f32 %v10465_v46, %v10464_v17  ;;  %v10468_v31 = vld [vmem:[#allocation24_spill] sm:$0xff]  ;;  %v3283_v0 = vld [vmem:[%s9730_s0 + $0x64] sm:$0xff]  ;;  %v3284_v22 = vld [vmem:[%s9730_s0 + $0x6c] sm:$0xff] }
 0x146   :  { %v6936_v20 = vadd.f32 %v10468_v31, %v10467_v37  ;;  %v3282_v53 = vld [vmem:[%s9730_s0 + $0x54] sm:$0xff]  ;;  %v10470_v16 = vld [vmem:[#allocation6_spill] sm:$0xff]  ;;  %v3285_v60 = vld [vmem:[%s9730_s0 + $0x7c] sm:$0xff] }
 0x147   :  { %10466 = vst [vmem:[#allocation8_spill] sm:$0xff] %v6932_v49  ;;  %v10471_v14 = vld [vmem:[#allocation79_spill] sm:$0xff]  ;;  %v10473_v46 = vld [vmem:[#allocation28_spill] sm:$0xff]  ;;  %v10479_v56 = vld [vmem:[#allocation74_spill] sm:$0xff] }
 0x148   :  { %10469 = vst [vmem:[#allocation84_spill] sm:$0xff] %v6936_v20  ;;  %v6949_v17 = vadd.f32 %v10471_v14, %v10470_v16  ;;  %v10474_v19 = vld [vmem:[#allocation48_spill] sm:$0xff]  ;;  %v10476_v37 = vld [vmem:[#allocation39_spill] sm:$0xff]  ;;  %v10480_v38 = vld [vmem:[#allocation54_spill] sm:$0xff] }
 0x149   :  { %v6953_v31 = vadd.f32 %v10474_v19, %v10473_v46  ;;  %v10477_v45 = vld [vmem:[#allocation80_spill] sm:$0xff]  ;;  %v6961_v2 = vadd.f32 %v10480_v38, %v10479_v56  ;;  %v3286_v16 = vld [vmem:[%s9730_s0 + $0x84] sm:$0xff]  ;;  %v3297_v9 = vld [vmem:[%s9730_s0 + $0x10c] sm:$0xff] }
 0x14a   :  { %10472 = vst [vmem:[#allocation41_spill] sm:$0xff] %v6949_v17  ;;  %v6957_v5 = vadd.f32 %v10477_v45, %v10476_v37  ;;  %v3287_v19 = vld [vmem:[%s9730_s0 + $0x94] sm:$0xff]  ;;  %v10482_v14 = vld [vmem:[#allocation50_spill] sm:$0xff]  ;;  %v10483_v46 = vld [vmem:[#allocation81_spill] sm:$0xff] }
 0x14b   :  { %10475 = vst [vmem:[#allocation17_spill] sm:$0xff] %v6953_v31  ;;  %10481 = vst [vmem:[#allocation68_spill] sm:$0xff] %v6961_v2  ;;  %v6974_v45 = vadd.f32 %v10483_v46, %v10482_v14  ;;  %v10485_v37 = vld [vmem:[#allocation60_spill] sm:$0xff]  ;;  %v10486_v54 = vld [vmem:[#allocation49_spill] sm:$0xff] }
 0x14c   :  { %10478 = vst [vmem:[#allocation30_spill] sm:$0xff] %v6957_v5  ;;  %v6978_v38 = vadd.f32 %v10486_v54, %v10485_v37  ;;  %v10488_v56 = vld [vmem:[#allocation40_spill] sm:$0xff]  ;;  %v10489_v59 = vld [vmem:[#allocation82_spill] sm:$0xff]  ;;  %v10491_v55 = vld [vmem:[#allocation29_spill] sm:$0xff] }
 0x14d   :  { %10484 = vst [vmem:[#allocation51_spill] sm:$0xff] %v6974_v45  ;;  %v6982_v6 = vadd.f32 %v10489_v59, %v10488_v56  ;;  %v10492_v12 = vld [vmem:[#allocation25_spill] sm:$0xff]  ;;  %v3289_v14 = vld [vmem:[%s9730_s0 + $0xac] sm:$0xff]  ;;  %v3290_v54 = vld [vmem:[%s9730_s0 + $0xb4] sm:$0xff] }
 0x14e   :  { %10487 = vst [vmem:[#allocation55_spill] sm:$0xff] %v6978_v38  ;;  %v6986_v1 = vadd.f32 %v10492_v12, %v10491_v55  ;;  %v3288_v32 = vld [vmem:[%s9730_s0 + $0x9c] sm:$0xff]  ;;  %v10495_v37 = vld [vmem:[#allocation83_spill] sm:$0xff]  ;;  %v3291_v12 = vld [vmem:[%s9730_s0 + $0xc4] sm:$0xff] }
 0x14f   :  { %10490 = vst [vmem:[#allocation62_spill] sm:$0xff] %v6982_v6  ;;  %v10494_v46 = vld [vmem:[#allocation21_spill] sm:$0xff]  ;;  %v3292_v55 = vld [vmem:[%s9730_s0 + $0xcc] sm:$0xff]  ;;  %v7149_v20 = vld [vmem:[%s9731_s1 + $0x8] ss:$0 sm:$0xff] }
 0x150   :  { %10493 = vst [vmem:[#allocation56_spill] sm:$0xff] %v6986_v1  ;;  %v6999_v59 = vadd.f32 %v10495_v37, %v10494_v46  ;;  %v10497_v56 = vld [vmem:[#allocation61_spill] sm:$0xff]  ;;  %v10499_v29 = vld [vmem:[#allocation42_spill] sm:$0xff]  ;;  %v3295_v37 = vld [vmem:[%s9730_s0 + $0xf4] sm:$0xff] }
 0x151   :  { %v7002_v35 = vadd.f32 %v851_v47, %v10497_v56  ;;  %v3293_v30 = vld [vmem:[%s9730_s0 + $0xdc] sm:$0xff]  ;;  %v1015_v63 = vmul.f32 %v3279_v62, %v10499_v29  ;;  %v1016_v46 = vmul.f32 %v3280_v27, %v10499_v29  ;;  %v3294_v47 = vld [vmem:[%s9730_s0 + $0xe4] sm:$0xff]  ;;  %v1017_v28 = vmul.f32 %v3281_v44, %v10499_v29  ;;  %v3303_v1 = vld [vmem:[%s9730_s0 + $0x154] sm:$0xff] }
 0x152   :  { %10496 = vst [vmem:[#allocation43_spill] sm:$0xff] %v6999_v59  ;;  %v3296_v56 = vld [vmem:[%s9730_s0 + $0xfc] sm:$0xff]  ;;  %v1018_v23 = vmul.f32 %v3282_v53, %v10499_v29  ;;  %v7027_v62 = vmul.f32 %v3283_v0, %v10499_v29  ;;  %v7030_v27 = vmul.f32 %v3284_v22, %v10499_v29  ;;  %v7036_v7 = vmul.f32 %v3285_v60, %v10499_v29  ;;  %v3344_v22 = vld [vmem:[%s9730_s0 + $0x68] sm:$0xff]  ;;  %v3298_v60 = vld [vmem:[%s9730_s0 + $0x114] sm:$0xff] }
 0x153   :  { %10498 = vst [vmem:[#allocation34_spill] sm:$0xff] %v7002_v35  ;;  %v7039_v50 = vmul.f32 %v3286_v16, %v10499_v29  ;;  %v7042_v44 = vmul.f32 %v3287_v19, %v10499_v29  ;;  %v7045_v53 = vmul.f32 %v3288_v32, %v10499_v29  ;;  %v3343_v0 = vld [vmem:[%s9730_s0 + $0x60] sm:$0xff]  ;;  %v3300_v32 = vld [vmem:[%s9730_s0 + $0x12c] sm:$0xff]  ;;  %v7063_v19 = vmul.f32 %v3289_v14, %v10499_v29  ;;  %v3345_v59 = vld [vmem:[%s9730_s0 + $0x78] sm:$0xff] }
 0x154   :  { %v3299_v16 = vld [vmem:[%s9730_s0 + $0x124] sm:$0xff]  ;;  %v7066_v36 = vmul.f32 %v3290_v54, %v10499_v29  ;;  %v7069_v4 = vmul.f32 %v3291_v12, %v10499_v29  ;;  %v7072_v58 = vmul.f32 %v3292_v55, %v10499_v29  ;;  %v7081_v14 = vmul.f32 %v3293_v30, %v10499_v29  ;;  %v3304_v30 = vld [vmem:[%s9730_s0 + $0x15c] sm:$0xff]  ;;  %v3305_v2 = vld [vmem:[%s9730_s0 + $0x16c] sm:$0xff] }
 0x155   :  { %v3302_v35 = vld [vmem:[%s9730_s0 + $0x144] sm:$0xff]  ;;  %v7084_v54 = vmul.f32 %v3294_v47, %v10499_v29  ;;  %v7087_v12 = vmul.f32 %v3295_v37, %v10499_v29  ;;  %v7090_v55 = vmul.f32 %v3296_v56, %v10499_v29  ;;  %v1079_v47 = vadd.f32 %v1015_v63, %v6839_v26 }
 0x156   :  { %v1080_v37 = vadd.f32 %v1016_v46, %v6843_v21  ;;  %v3346_v56 = vld [vmem:[%s9730_s0 + $0x80] sm:$0xff]  ;;  %v10500_v6 = vld [vmem:[#allocation78_spill] sm:$0xff]  ;;  %v7112_v5 = vmul.f32 %v3297_v9, %v10499_v29  ;;  %v7115_v31 = vmul.f32 %v3298_v60, %v10499_v29  ;;  %v7118_v63 = vmul.f32 %v3299_v16, %v10499_v29  ;;  %v3306_v9 = vld [vmem:[%s9730_s0 + $0x174] sm:$0xff] }
 0x157   :  { %v1212_v38 = vmul.f32 %v3343_v0, %v10500_v6  ;;  %v1213_v45 = vmul.f32 %v3344_v22, %v10500_v6  ;;  %v7121_v26 = vmul.f32 %v3300_v32, %v10499_v29  ;;  %v3407_v21 = vld [vmem:[%s9730_s0 + $0x62] sm:$0xff]  ;;  %v3408_v46 = vld [vmem:[%s9730_s0 + $0x6a] sm:$0xff]  ;;  %v7139_v60 = vmul.f32 %v3301_v25, %v10499_v29 }
 0x158   :  { %v3307_v0 = vld [vmem:[%s9730_s0 + $0x184] sm:$0xff]  ;;  %v3308_v22 = vld [vmem:[%s9730_s0 + $0x18c] sm:$0xff]  ;;  %v7142_v16 = vmul.f32 %v3302_v35, %v10499_v29  ;;  %v1081_v32 = vadd.f32 %v1017_v28, %v6847_v42  ;;  %v1214_v17 = vmul.f32 %v3345_v59, %v10500_v6  ;;  %v7155_v49 = vmul.f32 %v3304_v30, %v10499_v29  ;;  %v3409_v42 = vld [vmem:[%s9730_s0 + $0x7a] sm:$0xff] }
 0x159   :  { %10501 = vst [vmem:[#allocation31_spill] sm:$0xff] %v7121_v26  ;;  %v7152_v26 = vmul.f32 %v3303_v1, %v10499_v29  ;;  %v1082_v25 = vadd.f32 %v1018_v23, %v6851_v10  ;;  %v3347_v35 = vld [vmem:[%s9730_s0 + $0x90] sm:$0xff]  ;;  %v1215_v28 = vmul.f32 %v3346_v56, %v10500_v6  ;;  %v3348_v1 = vld [vmem:[%s9730_s0 + $0x98] sm:$0xff]  ;;  %v1276_v59 = vadd.f32 %v1212_v38, %v1079_v47  ;;  %v3471_v10 = vld [vmem:[%s9730_s0 + $0x64] sm:$0xff] }
 0x15a   :  { %10502 = vst [vmem:[#allocation69_spill] sm:$0xff] %v7142_v16  ;;  %10504 = vst [vmem:[#allocation59_spill] sm:$0xff] %v7155_v49  ;;  %v1408_v30 = vmul.f32 %v3407_v21, %v6632_v61  ;;  %v1409_v23 = vmul.f32 %v3408_v46, %v6632_v61  ;;  %v3472_v56 = vld [vmem:[%s9730_s0 + $0x6c] sm:$0xff]  ;;  %v7177_v49 = vmul.f32 %v3305_v2, %v10499_v29  ;;  %v3410_v47 = vld [vmem:[%s9730_s0 + $0x82] sm:$0xff] }
 0x15b   :  { %10503 = vst [vmem:[#allocation22_spill] sm:$0xff] %v7152_v26  ;;  %v1277_v26 = vadd.f32 %v1213_v45, %v1080_v37  ;;  %v7180_v16 = vmul.f32 %v3306_v9, %v10499_v29  ;;  %v7183_v45 = vmul.f32 %v3307_v0, %v10499_v29  ;;  %v7186_v38 = vmul.f32 %v3308_v22, %v10499_v29  ;;  %v3309_v37 = vld [vmem:[%s9730_s0 + $0x19c] sm:$0xff]  ;;  %v3310_v2 = vld [vmem:[%s9730_s0 + $0x1a4] sm:$0xff] }
 0x15c   :  { %10505 = vst [vmem:[#allocation64_spill] sm:$0xff] %v7177_v49  ;;  %v1083_v21 = vadd.f32 %v7027_v62, %v6855_v33  ;;  %v1216_v46 = vmul.f32 %v3347_v35, %v10500_v6  ;;  %v1278_v9 = vadd.f32 %v1214_v17, %v1081_v32  ;;  %v1410_v0 = vmul.f32 %v3409_v42, %v6632_v61  ;;  %v3473_v22 = vld [vmem:[%s9730_s0 + $0x7c] sm:$0xff]  ;;  %v3411_v33 = vld [vmem:[%s9730_s0 + $0x92] sm:$0xff] }
 0x15d   :  { %10506 = vst [vmem:[#allocation26_spill] sm:$0xff] %v7180_v16  ;;  %10507 = vst [vmem:[#allocation44_spill] sm:$0xff] %v7183_v45  ;;  %v3349_v45 = vld [vmem:[%s9730_s0 + $0xa8] sm:$0xff]  ;;  %v1217_v16 = vmul.f32 %v3348_v1, %v10500_v6  ;;  %v1604_v17 = vmul.f32 %v7149_v20, %v3471_v10  ;;  %v1605_v62 = vmul.f32 %v7149_v20, %v3472_v56  ;;  %v3350_v32 = vld [vmem:[%s9730_s0 + $0xb0] sm:$0xff] }
 0x15e   :  { %10508 = vst [vmem:[#allocation35_spill] sm:$0xff] %v7186_v38  ;;  %v1084_v38 = vadd.f32 %v7030_v27, %v6859_v15  ;;  %v1279_v35 = vadd.f32 %v1215_v28, %v1082_v25  ;;  %v1411_v15 = vmul.f32 %v3410_v47, %v6632_v61  ;;  %v1472_v27 = vadd.f32 %v1408_v30, %v1276_v59  ;;  %v3474_v1 = vld [vmem:[%s9730_s0 + $0x84] sm:$0xff]  ;;  %v3412_v25 = vld [vmem:[%s9730_s0 + $0x9a] sm:$0xff] }
 0x15f   :  { %v1473_v42 = vadd.f32 %v1409_v23, %v1277_v26  ;;  %v7223_v49 = vmul.f32 %v3309_v37, %v10499_v29  ;;  %v7226_v10 = vmul.f32 %v3310_v2, %v10499_v29  ;;  %v1085_v56 = vadd.f32 %v7036_v7, %v6863_v48  ;;  %v3311_v26 = vld [vmem:[%s9730_s0 + $0x214] sm:$0xff]  ;;  %v3351_v59 = vld [vmem:[%s9730_s0 + $0xc0] sm:$0xff] }
 0x160   :  { %v1606_v28 = vmul.f32 %v7149_v20, %v3473_v22  ;;  %v1218_v30 = vmul.f32 %v3349_v45, %v10500_v6  ;;  %v1280_v23 = vadd.f32 %v1216_v46, %v1083_v21  ;;  %v1412_v47 = vmul.f32 %v3411_v33, %v6632_v61  ;;  %v3475_v48 = vld [vmem:[%s9730_s0 + $0x94] sm:$0xff]  ;;  %v3352_v21 = vld [vmem:[%s9730_s0 + $0xc8] sm:$0xff] }
 0x161   :  { %10509 = vst [vmem:[#allocation32_spill] sm:$0xff] %v7226_v10  ;;  %v1474_v7 = vadd.f32 %v1410_v0, %v1278_v9  ;;  %v1086_v37 = vadd.f32 %v7039_v50, %v6867_v39  ;;  %v1219_v2 = vmul.f32 %v3350_v32, %v10500_v6  ;;  %v1281_v22 = vadd.f32 %v1217_v16, %v1084_v38  ;;  %v3413_v10 = vld [vmem:[%s9730_s0 + $0xaa] sm:$0xff]  ;;  %v3476_v50 = vld [vmem:[%s9730_s0 + $0x9c] sm:$0xff]  ;;  %v3414_v32 = vld [vmem:[%s9730_s0 + $0xb2] sm:$0xff] }
 0x162   :  { %v1607_v45 = vmul.f32 %v7149_v20, %v3474_v1  ;;  %v1413_v46 = vmul.f32 %v3412_v25, %v6632_v61  ;;  %v1475_v9 = vadd.f32 %v1411_v15, %v1279_v35  ;;  %v7259_v39 = vadd.f32 %v1604_v17, %v1472_v27  ;;  %v3353_v17 = vld [vmem:[%s9730_s0 + $0xd8] sm:$0xff]  ;;  %v3415_v25 = vld [vmem:[%s9730_s0 + $0xc2] sm:$0xff] }
 0x163   :  { %v7261_v16 = vadd.f32 %v1605_v62, %v1473_v42  ;;  %v7264_v38 = vmul.f32 %v3311_v26, %v10499_v29  ;;  %v1087_v0 = vadd.f32 %v7042_v44, %v6871_v41  ;;  %v1220_v33 = vmul.f32 %v3351_v59, %v10500_v6  ;;  %v3477_v41 = vld [vmem:[%s9730_s0 + $0xac] sm:$0xff] }
 0x164   :  { %v1608_v35 = vmul.f32 %v7149_v20, %v3475_v48  ;;  %v1282_v62 = vadd.f32 %v1218_v30, %v1085_v56  ;;  %v1414_v15 = vmul.f32 %v3413_v10, %v6632_v61  ;;  %v1476_v29 = vadd.f32 %v1412_v47, %v1280_v23  ;;  %v3354_v10 = vld [vmem:[%s9730_s0 + $0xe0] sm:$0xff] }
 0x165   :  { %v7280_v44 = vadd.f32 %v1606_v28, %v1474_v7  ;;  %v1088_v27 = vadd.f32 %v7045_v53, %v6875_v13  ;;  %v1221_v42 = vmul.f32 %v3352_v21, %v10500_v6  ;;  %v1283_v1 = vadd.f32 %v1219_v2, %v1086_v37  ;;  %v3478_v13 = vld [vmem:[%s9730_s0 + $0xb4] sm:$0xff]  ;;  %v3416_v7 = vld [vmem:[%s9730_s0 + $0xca] sm:$0xff] }
 0x166   :  { %v1609_v56 = vmul.f32 %v7149_v20, %v3476_v50  ;;  %v1415_v26 = vmul.f32 %v3414_v32, %v6632_v61  ;;  %v1477_v28 = vadd.f32 %v1413_v46, %v1281_v22  ;;  %v7296_v53 = vadd.f32 %v1607_v45, %v1475_v9  ;;  %v3355_v37 = vld [vmem:[%s9730_s0 + $0xf0] sm:$0xff]  ;;  %v3417_v50 = vld [vmem:[%s9730_s0 + $0xda] sm:$0xff] }
 0x167   :  { %v1732_v59 = vadd.f32 %v7261_v16, %v7259_v39  ;;  %v1089_v30 = vadd.f32 %v7063_v19, %v6879_v24  ;;  %v1222_v23 = vmul.f32 %v3353_v17, %v10500_v6  ;;  %v1284_v47 = vadd.f32 %v1220_v33, %v1087_v0  ;;  %v3479_v24 = vld [vmem:[%s9730_s0 + $0xc4] sm:$0xff]  ;;  %v3356_v33 = vld [vmem:[%s9730_s0 + $0xf8] sm:$0xff] }
 0x168   :  { %v1610_v48 = vmul.f32 %v7149_v20, %v3477_v41  ;;  %v1416_v2 = vmul.f32 %v3415_v25, %v6632_v61  ;;  %v1478_v22 = vadd.f32 %v1414_v15, %v1282_v62  ;;  %v7314_v19 = vadd.f32 %v1608_v35, %v1476_v29  ;;  %v3418_v41 = vld [vmem:[%s9730_s0 + $0xe2] sm:$0xff] }
 0x169   :  { %v1733_v45 = vadd.f32 %v1732_v59, %v7280_v44  ;;  %v1090_v21 = vadd.f32 %v7066_v36, %v6883_v57  ;;  %v1223_v46 = vmul.f32 %v3354_v10, %v10500_v6  ;;  %v1285_v9 = vadd.f32 %v1221_v42, %v1088_v27  ;;  %v3480_v36 = vld [vmem:[%s9730_s0 + $0xcc] sm:$0xff] }
 0x16a   :  { %v1611_v0 = vmul.f32 %v7149_v20, %v3478_v13  ;;  %v1417_v32 = vmul.f32 %v3416_v7, %v6632_v61  ;;  %v1479_v35 = vadd.f32 %v1415_v26, %v1283_v1  ;;  %v7331_v57 = vadd.f32 %v1609_v56, %v1477_v28  ;;  %v3357_v42 = vld [vmem:[%s9730_s0 + $0x108] sm:$0xff]  ;;  %v3419_v1 = vld [vmem:[%s9730_s0 + $0xf2] sm:$0xff]  ;;  %v3481_v13 = vld [vmem:[%s9730_s0 + $0xdc] sm:$0xff] }
 0x16b   :  { %v1734_v17 = vadd.f32 %v1733_v45, %v7296_v53  ;;  %v1091_v62 = vadd.f32 %v7069_v4, %v6887_v11  ;;  %v1224_v15 = vmul.f32 %v3355_v37, %v10500_v6  ;;  %v1286_v29 = vadd.f32 %v1222_v23, %v1089_v30  ;;  %v3358_v30 = vld [vmem:[%s9730_s0 + $0x110] sm:$0xff]  ;;  %v3420_v23 = vld [vmem:[%s9730_s0 + $0xfa] sm:$0xff] }
 0x16c   :  { %v1612_v27 = vmul.f32 %v7149_v20, %v3479_v24  ;;  %v1418_v25 = vmul.f32 %v3417_v50, %v6632_v61  ;;  %v1480_v4 = vadd.f32 %v1416_v2, %v1284_v47  ;;  %v7348_v11 = vadd.f32 %v1610_v48, %v1478_v22  ;;  %v3482_v24 = vld [vmem:[%s9730_s0 + $0xe4] sm:$0xff] }
 0x16d   :  { %v1735_v56 = vadd.f32 %v1734_v17, %v7314_v19  ;;  %v1092_v10 = vadd.f32 %v7072_v58, %v6891_v52  ;;  %v1225_v26 = vmul.f32 %v3356_v33, %v10500_v6  ;;  %v1287_v28 = vadd.f32 %v1223_v46, %v1090_v21  ;;  %v3359_v45 = vld [vmem:[%s9730_s0 + $0x120] sm:$0xff]  ;;  %v3421_v21 = vld [vmem:[%s9730_s0 + $0x10a] sm:$0xff]  ;;  %v3422_v17 = vld [vmem:[%s9730_s0 + $0x112] sm:$0xff] }
 0x16e   :  { %v1613_v59 = vmul.f32 %v7149_v20, %v3480_v36  ;;  %v1419_v47 = vmul.f32 %v3418_v41, %v6632_v61  ;;  %v1481_v58 = vadd.f32 %v1417_v32, %v1285_v9  ;;  %v7365_v52 = vadd.f32 %v1611_v0, %v1479_v35  ;;  %v3483_v35 = vld [vmem:[%s9730_s0 + $0xf4] sm:$0xff]  ;;  %v3360_v36 = vld [vmem:[%s9730_s0 + $0x128] sm:$0xff] }
 0x16f   :  { %v1736_v7 = vadd.f32 %v1735_v56, %v7331_v57  ;;  %v1093_v48 = vadd.f32 %v7081_v14, %v6895_v34  ;;  %v1226_v37 = vmul.f32 %v3357_v42, %v10500_v6  ;;  %v1288_v2 = vadd.f32 %v1224_v15, %v1091_v62 }
 0x170   :  { %v1420_v22 = vmul.f32 %v3419_v1, %v6632_v61  ;;  %v1482_v46 = vadd.f32 %v1418_v25, %v1286_v29  ;;  %v1614_v34 = vmul.f32 %v7149_v20, %v3481_v13  ;;  %v7382_v14 = vadd.f32 %v1612_v27, %v1480_v4  ;;  %v3484_v1 = vld [vmem:[%s9730_s0 + $0xfc] sm:$0xff] }
 0x171   :  { %v1737_v9 = vadd.f32 %v1736_v7, %v7348_v11  ;;  %v1094_v50 = vadd.f32 %v7084_v54, %v6899_v51  ;;  %v1227_v0 = vmul.f32 %v3358_v30, %v10500_v6  ;;  %v1289_v33 = vadd.f32 %v1225_v26, %v1092_v10  ;;  %v3361_v25 = vld [vmem:[%s9730_s0 + $0x138] sm:$0xff]  ;;  %v3423_v4 = vld [vmem:[%s9730_s0 + $0x122] sm:$0xff]  ;;  %v3485_v30 = vld [vmem:[%s9730_s0 + $0x10c] sm:$0xff] }
 0x172   :  { %v1421_v32 = vmul.f32 %v3420_v23, %v6632_v61  ;;  %v1483_v62 = vadd.f32 %v1419_v47, %v1287_v28  ;;  %v1615_v51 = vmul.f32 %v7149_v20, %v3482_v24  ;;  %v7399_v54 = vadd.f32 %v1613_v59, %v1481_v58  ;;  %v3362_v23 = vld [vmem:[%s9730_s0 + $0x140] sm:$0xff]  ;;  %v3424_v47 = vld [vmem:[%s9730_s0 + $0x12a] sm:$0xff]  ;;  %v3486_v24 = vld [vmem:[%s9730_s0 + $0x114] sm:$0xff] }
 0x173   :  { %v1738_v15 = vadd.f32 %v1737_v9, %v7365_v52  ;;  %v1095_v29 = vadd.f32 %v7087_v12, %v6903_v8  ;;  %v1228_v41 = vmul.f32 %v3359_v45, %v10500_v6  ;;  %v1290_v27 = vadd.f32 %v1226_v37, %v1093_v48  ;;  %v3363_v45 = vld [vmem:[%s9730_s0 + $0x150] sm:$0xff] }
 0x174   :  { %v1422_v42 = vmul.f32 %v3421_v21, %v6632_v61  ;;  %v1484_v56 = vadd.f32 %v1420_v22, %v1288_v2  ;;  %v1616_v8 = vmul.f32 %v7149_v20, %v3483_v35  ;;  %v7416_v12 = vadd.f32 %v1614_v34, %v1482_v46  ;;  %v3425_v21 = vld [vmem:[%s9730_s0 + $0x13a] sm:$0xff] }
 0x175   :  { %v1739_v10 = vadd.f32 %v1738_v15, %v7382_v14  ;;  %v1096_v26 = vadd.f32 %v7090_v55, %v6907_v40  ;;  %v1229_v28 = vmul.f32 %v3360_v36, %v10500_v6  ;;  %v1291_v13 = vadd.f32 %v1227_v0, %v1094_v50  ;;  %v3364_v35 = vld [vmem:[%s9730_s0 + $0x158] sm:$0xff]  ;;  %v3426_v36 = vld [vmem:[%s9730_s0 + $0x142] sm:$0xff] }
 0x176   :  { %v1423_v59 = vmul.f32 %v3422_v17, %v6632_v61  ;;  %v1485_v58 = vadd.f32 %v1421_v32, %v1289_v33  ;;  %v1617_v40 = vmul.f32 %v7149_v20, %v3484_v1  ;;  %v7433_v55 = vadd.f32 %v1615_v51, %v1483_v62  ;;  %v3487_v32 = vld [vmem:[%s9730_s0 + $0x124] sm:$0xff]  ;;  %v3427_v1 = vld [vmem:[%s9730_s0 + $0x152] sm:$0xff] }
 0x177   :  { %v1740_v7 = vadd.f32 %v1739_v10, %v7399_v54  ;;  %v1097_v48 = vadd.f32 %v7112_v5, %v6911_v3  ;;  %v1230_v37 = vmul.f32 %v3361_v25, %v10500_v6  ;;  %v1292_v2 = vadd.f32 %v1228_v41, %v1095_v29 }
 0x178   :  { %v1424_v22 = vmul.f32 %v3423_v4, %v6632_v61  ;;  %v1486_v46 = vadd.f32 %v1422_v42, %v1290_v27  ;;  %v1618_v5 = vmul.f32 %v7149_v20, %v3485_v30  ;;  %v7450_v3 = vadd.f32 %v1616_v8, %v1484_v56  ;;  %v3488_v27 = vld [vmem:[%s9730_s0 + $0x12c] sm:$0xff]  ;;  %v10510_v56 = vld [vmem:[#allocation8_spill] sm:$0xff] }
 0x179   :  { %v1741_v34 = vadd.f32 %v1740_v7, %v7416_v12  ;;  %v1098_v9 = vadd.f32 %v7115_v31, %v6924_v43  ;;  %v1231_v50 = vmul.f32 %v3362_v23, %v10500_v6  ;;  %v1293_v0 = vadd.f32 %v1229_v28, %v1096_v26  ;;  %v3365_v42 = vld [vmem:[%s9730_s0 + $0x168] sm:$0xff]  ;;  %v10511_v8 = vld [vmem:[#allocation31_spill] sm:$0xff]  ;;  %v3428_v23 = vld [vmem:[%s9730_s0 + $0x15a] sm:$0xff] }
 0x17a   :  { %v1425_v33 = vmul.f32 %v3424_v47, %v6632_v61  ;;  %v1487_v17 = vadd.f32 %v1423_v59, %v1291_v13  ;;  %v1619_v43 = vmul.f32 %v7149_v20, %v3486_v24  ;;  %v7467_v31 = vadd.f32 %v1617_v40, %v1485_v58  ;;  %v3489_v59 = vld [vmem:[%s9730_s0 + $0x13c] sm:$0xff]  ;;  %v3366_v30 = vld [vmem:[%s9730_s0 + $0x170] sm:$0xff] }
 0x17b   :  { %v1742_v62 = vadd.f32 %v1741_v34, %v7433_v55  ;;  %v1099_v51 = vadd.f32 %v7118_v63, %v6928_v18  ;;  %v1232_v15 = vmul.f32 %v3363_v45, %v10500_v6  ;;  %v1294_v29 = vadd.f32 %v1230_v37, %v1097_v48  ;;  %v10512_v48 = vld [vmem:[#allocation84_spill] sm:$0xff]  ;;  %v3490_v45 = vld [vmem:[%s9730_s0 + $0x144] sm:$0xff] }
 0x17c   :  { %v1426_v41 = vmul.f32 %v3425_v21, %v6632_v61  ;;  %v1488_v25 = vadd.f32 %v1424_v22, %v1292_v2  ;;  %v1620_v18 = vmul.f32 %v7149_v20, %v3487_v32  ;;  %v7484_v63 = vadd.f32 %v1618_v5, %v1486_v46  ;;  %v3367_v21 = vld [vmem:[%s9730_s0 + $0x180] sm:$0xff]  ;;  %v3429_v46 = vld [vmem:[%s9730_s0 + $0x16a] sm:$0xff] }
 0x17d   :  { %v1743_v4 = vadd.f32 %v1742_v62, %v7450_v3  ;;  %v1100_v10 = vadd.f32 %v10511_v8, %v10510_v56  ;;  %v1233_v26 = vmul.f32 %v3364_v35, %v10500_v6  ;;  %v1295_v28 = vadd.f32 %v1231_v50, %v1098_v9  ;;  %v10513_v50 = vld [vmem:[#allocation41_spill] sm:$0xff]  ;;  %v3430_v62 = vld [vmem:[%s9730_s0 + $0x172] sm:$0xff] }
 0x17e   :  { %v1427_v13 = vmul.f32 %v3426_v36, %v6632_v61  ;;  %v1489_v47 = vadd.f32 %v1425_v33, %v1293_v0  ;;  %v1621_v58 = vmul.f32 %v7149_v20, %v3488_v27  ;;  %v7501_v40 = vadd.f32 %v1619_v43, %v1487_v17  ;;  %v10514_v0 = vld [vmem:[#allocation69_spill] sm:$0xff]  ;;  %v3491_v17 = vld [vmem:[%s9730_s0 + $0x154] sm:$0xff]  ;;  %v3368_v43 = vld [vmem:[%s9730_s0 + $0x188] sm:$0xff] }
 0x17f   :  { %v1744_v7 = vadd.f32 %v1743_v4, %v7467_v31  ;;  %v1101_v37 = vadd.f32 %v7139_v60, %v10512_v48  ;;  %v1234_v2 = vmul.f32 %v3365_v42, %v10500_v6  ;;  %v1296_v22 = vadd.f32 %v1232_v15, %v1099_v51  ;;  %v10515_v27 = vld [vmem:[#allocation17_spill] sm:$0xff]  ;;  %v10516_v42 = vld [vmem:[#allocation22_spill] sm:$0xff]  ;;  %v3369_v8 = vld [vmem:[%s9730_s0 + $0x198] sm:$0xff] }
 0x180   :  { %v1428_v24 = vmul.f32 %v3427_v1, %v6632_v61  ;;  %v1490_v5 = vadd.f32 %v1426_v41, %v1294_v29  ;;  %v1622_v60 = vmul.f32 %v7149_v20, %v3489_v59  ;;  %v7518_v34 = vadd.f32 %v1620_v18, %v1488_v25  ;;  %v3492_v56 = vld [vmem:[%s9730_s0 + $0x15c] sm:$0xff] }
 0x181   :  { %v1745_v9 = vadd.f32 %v1744_v7, %v7484_v63  ;;  %v1102_v33 = vadd.f32 %v10514_v0, %v10513_v50  ;;  %v1235_v32 = vmul.f32 %v3366_v30, %v10500_v6  ;;  %v1297_v35 = vadd.f32 %v1233_v26, %v1100_v10  ;;  %v3431_v10 = vld [vmem:[%s9730_s0 + $0x182] sm:$0xff] }
 0x182   :  { %v1429_v36 = vmul.f32 %v3428_v23, %v6632_v61  ;;  %v1491_v51 = vadd.f32 %v1427_v13, %v1295_v28  ;;  %v1623_v15 = vmul.f32 %v7149_v20, %v3490_v45  ;;  %v7535_v29 = vadd.f32 %v1621_v58, %v1489_v47  ;;  %v10517_v30 = vld [vmem:[#allocation30_spill] sm:$0xff]  ;;  %v10518_v23 = vld [vmem:[#allocation59_spill] sm:$0xff] }
 0x183   :  { %v1746_v41 = vadd.f32 %v1745_v9, %v7501_v40  ;;  %v1103_v1 = vadd.f32 %v10516_v42, %v10515_v27  ;;  %v1236_v25 = vmul.f32 %v3367_v21, %v10500_v6  ;;  %v1298_v18 = vadd.f32 %v1234_v2, %v1101_v37  ;;  %v3493_v37 = vld [vmem:[%s9730_s0 + $0x16c] sm:$0xff]  ;;  %v3370_v2 = vld [vmem:[%s9730_s0 + $0x1a0] sm:$0xff] }
 0x184   :  { %v1430_v4 = vmul.f32 %v3429_v46, %v6632_v61  ;;  %v1492_v26 = vadd.f32 %v1428_v24, %v1296_v22  ;;  %v1624_v28 = vmul.f32 %v7149_v20, %v3491_v17  ;;  %v7552_v13 = vadd.f32 %v1622_v60, %v1490_v5  ;;  %v3432_v22 = vld [vmem:[%s9730_s0 + $0x18a] sm:$0xff]  ;;  %v10519_v5 = vld [vmem:[#allocation68_spill] sm:$0xff] }
 0x185   :  { %v1747_v59 = vadd.f32 %v1746_v41, %v7518_v34  ;;  %v1104_v47 = vadd.f32 %v10518_v23, %v10517_v30  ;;  %v1237_v58 = vmul.f32 %v3368_v43, %v10500_v6  ;;  %v1299_v7 = vadd.f32 %v1235_v32, %v1102_v33  ;;  %v10520_v60 = vld [vmem:[#allocation64_spill] sm:$0xff]  ;;  %v10522_v41 = vld [vmem:[#allocation26_spill] sm:$0xff] }
 0x186   :  { %v1431_v48 = vmul.f32 %v3430_v62, %v6632_v61  ;;  %v1493_v24 = vadd.f32 %v1429_v36, %v1297_v35  ;;  %v1625_v45 = vmul.f32 %v7149_v20, %v3492_v56  ;;  %v7569_v21 = vadd.f32 %v1623_v15, %v1491_v51  ;;  %v3494_v32 = vld [vmem:[%s9730_s0 + $0x174] sm:$0xff]  ;;  %v3495_v56 = vld [vmem:[%s9730_s0 + $0x184] sm:$0xff] }
 0x187   :  { %v1748_v46 = vadd.f32 %v1747_v59, %v7535_v29  ;;  %v1105_v9 = vadd.f32 %v10520_v60, %v10519_v5  ;;  %v1238_v50 = vmul.f32 %v3369_v8, %v10500_v6  ;;  %v1300_v0 = vadd.f32 %v1236_v25, %v1103_v1  ;;  %v3371_v35 = vld [vmem:[%s9730_s0 + $0x1b0] sm:$0xff]  ;;  %v3433_v36 = vld [vmem:[%s9730_s0 + $0x19a] sm:$0xff]  ;;  %v10525_v5 = vld [vmem:[#allocation62_spill] sm:$0xff] }
 0x188   :  { %v1432_v33 = vmul.f32 %v3431_v10, %v6632_v61  ;;  %v1494_v17 = vadd.f32 %v1430_v4, %v1298_v18  ;;  %v1626_v43 = vmul.f32 %v7149_v20, %v3493_v37  ;;  %v7586_v62 = vadd.f32 %v1624_v28, %v1492_v26  ;;  %v10521_v15 = vld [vmem:[#allocation51_spill] sm:$0xff]  ;;  %v3372_v18 = vld [vmem:[%s9730_s0 + $0x1b8] sm:$0xff]  ;;  %v3434_v4 = vld [vmem:[%s9730_s0 + $0x1a2] sm:$0xff] }
 0x189   :  { %v1749_v51 = vadd.f32 %v1748_v46, %v7552_v13  ;;  %v1106_v27 = vadd.f32 %v10522_v41, %v10521_v15  ;;  %v1239_v42 = vmul.f32 %v3370_v2, %v10500_v6  ;;  %v1301_v1 = vadd.f32 %v1237_v58, %v1104_v47  ;;  %v10523_v59 = vld [vmem:[#allocation55_spill] sm:$0xff]  ;;  %v10524_v30 = vld [vmem:[#allocation44_spill] sm:$0xff] }
 0x18a   :  { %v1433_v25 = vmul.f32 %v3432_v22, %v6632_v61  ;;  %v1495_v8 = vadd.f32 %v1431_v48, %v1299_v7  ;;  %v1627_v10 = vmul.f32 %v7149_v20, %v3494_v32  ;;  %v7603_v26 = vadd.f32 %v1625_v45, %v1493_v24  ;;  %v3496_v2 = vld [vmem:[%s9730_s0 + $0x18c] sm:$0xff]  ;;  %v10528_v41 = vld [vmem:[#allocation56_spill] sm:$0xff] }
 0x18b   :  { %v1750_v28 = vadd.f32 %v1749_v51, %v7569_v21  ;;  %v1107_v23 = vadd.f32 %v10524_v30, %v10523_v59  ;;  %v1240_v47 = vmul.f32 %v3371_v35, %v10500_v6  ;;  %v1302_v58 = vadd.f32 %v1238_v50, %v1105_v9  ;;  %v3373_v7 = vld [vmem:[%s9730_s0 + $0x1c8] sm:$0xff]  ;;  %v3435_v48 = vld [vmem:[%s9730_s0 + $0x1b2] sm:$0xff] }
 0x18c   :  { %v1434_v37 = vmul.f32 %v3433_v36, %v6632_v61  ;;  %v1496_v22 = vadd.f32 %v1432_v33, %v1300_v0  ;;  %v1628_v24 = vmul.f32 %v7149_v20, %v3495_v56  ;;  %v7620_v45 = vadd.f32 %v1626_v43, %v1494_v17  ;;  %v10526_v60 = vld [vmem:[#allocation35_spill] sm:$0xff]  ;;  %v3497_v36 = vld [vmem:[%s9730_s0 + $0x19c] sm:$0xff] }
 0x18d   :  { %v1751_v46 = vadd.f32 %v1750_v28, %v7586_v62  ;;  %v1108_v9 = vadd.f32 %v10526_v60, %v10525_v5  ;;  %v1241_v50 = vmul.f32 %v3372_v18, %v10500_v6  ;;  %v1303_v32 = vadd.f32 %v1239_v42, %v1106_v27  ;;  %v3374_v0 = vld [vmem:[%s9730_s0 + $0x1d0] sm:$0xff]  ;;  %v3436_v33 = vld [vmem:[%s9730_s0 + $0x1ba] sm:$0xff]  ;;  %v10533_v5 = vld [vmem:[#allocation34_spill] sm:$0xff] }
 0x18e   :  { %v1435_v35 = vmul.f32 %v3434_v4, %v6632_v61  ;;  %v1497_v17 = vadd.f32 %v1433_v25, %v1301_v1  ;;  %v1629_v43 = vmul.f32 %v7149_v20, %v3496_v2  ;;  %v7637_v51 = vadd.f32 %v1627_v10, %v1495_v8  ;;  %v3498_v4 = vld [vmem:[%s9730_s0 + $0x1a4] sm:$0xff]  ;;  %v10530_v59 = vld [vmem:[#allocation43_spill] sm:$0xff]  ;;  %v10531_v30 = vld [vmem:[#allocation32_spill] sm:$0xff] }
 0x18f   :  { %v1752_v15 = vadd.f32 %v1751_v46, %v7603_v26  ;;  %v1109_v27 = vadd.f32 %v7223_v49, %v10528_v41  ;;  %v1242_v42 = vmul.f32 %v3373_v7, %v10500_v6  ;;  %v1304_v56 = vadd.f32 %v1240_v47, %v1107_v23  ;;  %v3375_v1 = vld [vmem:[%s9730_s0 + $0x240] sm:$0xff]  ;;  %v3437_v25 = vld [vmem:[%s9730_s0 + $0x1ca] sm:$0xff] }
 0x190   :  { %10527 = vst [vmem:[#allocation70_spill] sm:$0xff] %v7637_v51  ;;  %v1436_v18 = vmul.f32 %v3435_v48, %v6632_v61  ;;  %v1498_v8 = vadd.f32 %v1434_v37, %v1302_v58  ;;  %v1630_v49 = vmul.f32 %v7149_v20, %v3497_v36  ;;  %v7654_v10 = vadd.f32 %v1628_v24, %v1496_v22  ;;  %v3499_v48 = vld [vmem:[%s9730_s0 + $0x1b4] sm:$0xff] }
 0x191   :  { %v1753_v28 = vadd.f32 %v1752_v15, %v7620_v45  ;;  %v1110_v23 = vadd.f32 %v10531_v30, %v10530_v59  ;;  %v1243_v47 = vmul.f32 %v3374_v0, %v10500_v6  ;;  %v1305_v2 = vadd.f32 %v1241_v50, %v1108_v9  ;;  %v3438_v58 = vld [vmem:[%s9730_s0 + $0x1d2] sm:$0xff]  ;;  %v3500_v0 = vld [vmem:[%s9730_s0 + $0x1bc] sm:$0xff]  ;;  %v3503_v59 = vld [vmem:[%s9730_s0 + $0x244] sm:$0xff] }
 0x192   :  { %10529 = vst [vmem:[#allocation52_spill] sm:$0xff] %v7654_v10  ;;  %v1437_v7 = vmul.f32 %v3436_v33, %v6632_v61  ;;  %v1499_v37 = vadd.f32 %v1435_v35, %v1303_v32  ;;  %v1631_v22 = vmul.f32 %v7149_v20, %v3498_v4  ;;  %v7668_v24 = vadd.f32 %v1629_v43, %v1497_v17  ;;  %v3439_v32 = vld [vmem:[%s9730_s0 + $0x242] sm:$0xff]  ;;  %v3501_v15 = vld [vmem:[%s9730_s0 + $0x1cc] sm:$0xff] }
 0x193   :  { %v1754_v46 = vadd.f32 %v1753_v28, %v7637_v51  ;;  %v1111_v60 = vadd.f32 %v7264_v38, %v10533_v5  ;;  %v1244_v9 = vmul.f32 %v3375_v1, %v10500_v6  ;;  %v1306_v50 = vadd.f32 %v1242_v42, %v1109_v27  ;;  %v3502_v1 = vld [vmem:[%s9730_s0 + $0x1d4] sm:$0xff] }
 0x194   :  { %10532 = vst [vmem:[#allocation63_spill] sm:$0xff] %v7668_v24  ;;  %v1438_v36 = vmul.f32 %v3437_v25, %v6632_v61  ;;  %v1500_v35 = vadd.f32 %v1436_v18, %v1304_v56  ;;  %v1632_v33 = vmul.f32 %v7149_v20, %v3499_v48  ;;  %v7682_v17 = vadd.f32 %v1630_v49, %v1498_v8 }
 0x195   :  { %v1755_v38 = vadd.f32 %v1754_v46, %v7654_v10  ;;  %v1307_v43 = vadd.f32 %v1243_v47, %v1110_v23  ;;  %v1439_v6 = vmul.f32 %v3438_v58, %v6632_v61  ;;  %v1501_v41 = vadd.f32 %v1437_v7, %v1305_v2  ;;  %v3504_v2 = vld [vmem:[%s9730_s0 + $0x24c] sm:$0xff] }
 0x196   :  { %10534 = vst [vmem:[#allocation65_spill] sm:$0xff] %v7682_v17  ;;  %v1633_v27 = vmul.f32 %v7149_v20, %v3500_v0  ;;  %v7690_v42 = vadd.f32 %v1631_v22, %v1499_v37  ;;  %v1308_v18 = vadd.f32 %v1244_v9, %v1111_v60  ;;  %v1440_v4 = vmul.f32 %v3439_v32, %v6632_v61  ;;  %v3505_v22 = vld [vmem:[%s9730_s0 + $0x25c] sm:$0xff]  ;;  %v3506_v9 = vld [vmem:[%s9730_s0 + $0x264] sm:$0xff]  ;;  %v3507_v32 = vld [vmem:[%s9730_s0 + $0x274] sm:$0xff] }
 0x197   :  { %v1756_v56 = vadd.f32 %v1755_v38, %v7668_v24  ;;  %v1502_v25 = vadd.f32 %v1438_v36, %v1306_v50  ;;  %v1634_v8 = vmul.f32 %v7149_v20, %v3501_v15  ;;  %v7698_v49 = vadd.f32 %v1632_v33, %v1500_v35  ;;  %v10541_v33 = vld [vmem:[#allocation5_spill] sm:$0xff] }
 0x198   :  { %10535 = vst [vmem:[#allocation57_spill] sm:$0xff] %v7690_v42  ;;  %v1503_v30 = vadd.f32 %v1439_v6, %v1307_v43  ;;  %v1635_v23 = vmul.f32 %v7149_v20, %v3502_v1  ;;  %v7705_v47 = vadd.f32 %v1633_v27, %v1501_v41  ;;  %v1504_v7 = vadd.f32 %v1440_v4, %v1308_v18  ;;  %v3508_v6 = vld [vmem:[%s9730_s0 + $0x27c] sm:$0xff]  ;;  %v3509_v18 = vld [vmem:[%s9730_s0 + $0x28c] sm:$0xff] }
 0x199   :  { %10536 = vst [vmem:[#allocation45_spill] sm:$0xff] %v7698_v49  ;;  %v1757_v28 = vadd.f32 %v1756_v56, %v7682_v17  ;;  %v1636_v48 = vmul.f32 %v7149_v20, %v3503_v59  ;;  %v7712_v58 = vadd.f32 %v1634_v8, %v1502_v25  ;;  %v1637_v46 = vmul.f32 %v7149_v20, %v3504_v2  ;;  %v10543_v41 = vld [vmem:[#allocation77_spill] sm:$0xff] }
 0x19a   :  { %10537 = vst [vmem:[#allocation36_spill] sm:$0xff] %v7705_v47  ;;  %v7719_v5 = vadd.f32 %v1635_v23, %v1503_v30  ;;  %v1638_v50 = vmul.f32 %v7149_v20, %v3505_v22  ;;  %v1639_v35 = vmul.f32 %v7149_v20, %v3506_v9  ;;  %v1640_v15 = vmul.f32 %v7149_v20, %v3507_v32  ;;  %v10545_v1 = vld [vmem:[#allocation85_spill] sm:$0xff]  ;;  %v10547_v30 = vld [vmem:[#allocation86_spill] sm:$0xff]  ;;  %v10551_v9 = vld [vmem:[#allocation88_spill] sm:$0xff] }
 0x19b   :  { %v1758_v61 = vadd.f32 %v1757_v28, %v7690_v42  ;;  %10538 = vst [vmem:[#allocation33_spill] sm:$0xff] %v7712_v58  ;;  %v7726_v36 = vadd.f32 %v1636_v48, %v1504_v7  ;;  %v7734_v38 = vadd.f32 %v1637_v46, %v10541_v33  ;;  %v1641_v4 = vmul.f32 %v7149_v20, %v3508_v6  ;;  %v3510_v28 = vld [vmem:[%s9730_s0 + $0x294] sm:$0xff]  ;;  %v3511_v2 = vld [vmem:[%s9730_s0 + $0x2a4] sm:$0xff]  ;;  %v3512_v46 = vld [vmem:[%s9730_s0 + $0x2ac] sm:$0xff] }
 0x19c   :  { %10539 = vst [vmem:[#allocation71_spill] sm:$0xff] %v7719_v5  ;;  %v7742_v27 = vadd.f32 %v1638_v50, %v10543_v41  ;;  %v7750_v25 = vadd.f32 %v1639_v35, %v10545_v1  ;;  %v1642_v59 = vmul.f32 %v7149_v20, %v3509_v18  ;;  %v7758_v23 = vadd.f32 %v1640_v15, %v10547_v30  ;;  %v10549_v48 = vld [vmem:[#allocation87_spill] sm:$0xff]  ;;  %v3513_v32 = vld [vmem:[%s9730_s0 + $0x2bc] sm:$0xff]  ;;  %v3514_v15 = vld [vmem:[%s9730_s0 + $0x2c4] sm:$0xff] }
 0x19d   :  { %v1759_v37 = vadd.f32 %v1758_v61, %v7698_v49  ;;  %10540 = vst [vmem:[#allocation23_spill] sm:$0xff] %v7726_v36  ;;  %10542 = vst [vmem:[#allocation67_spill] sm:$0xff] %v7734_v38  ;;  %v1643_v7 = vmul.f32 %v7149_v20, %v3510_v28  ;;  %v1645_v35 = vmul.f32 %v7149_v20, %v3512_v46  ;;  %v10553_v33 = vld [vmem:[#allocation89_spill] sm:$0xff]  ;;  %v3515_v1 = vld [vmem:[%s9730_s0 + $0x2d4] sm:$0xff] }
 0x19e   :  { %10544 = vst [vmem:[#allocation66_spill] sm:$0xff] %v7742_v27  ;;  %10546 = vst [vmem:[#allocation27_spill] sm:$0xff] %v7750_v25  ;;  %v7774_v50 = vadd.f32 %v1642_v59, %v10551_v9  ;;  %v1646_v41 = vmul.f32 %v7149_v20, %v3513_v32  ;;  %v10557_v28 = vld [vmem:[#allocation91_spill] sm:$0xff]  ;;  %v10561_v9 = vld [vmem:[#allocation93_spill] sm:$0xff] }
 0x19f   :  { %v1760_v60 = vadd.f32 %v1759_v37, %v7705_v47  ;;  %10548 = vst [vmem:[#allocation46_spill] sm:$0xff] %v7758_v23  ;;  %v7766_v37 = vadd.f32 %v1641_v4, %v10549_v48  ;;  %v7798_v59 = vadd.f32 %v1645_v35, %v10557_v28  ;;  %v3517_v46 = vld [vmem:[%s9730_s0 + $0x2ec] sm:$0xff]  ;;  %v3518_v35 = vld [vmem:[%s9730_s0 + $0x2f4] sm:$0xff]  ;;  %v10583_v49 = vld [vmem:[#allocation9_spill] sm:$0xff] }
 0x1a0   :  { %10552 = vst [vmem:[#allocation20_spill] sm:$0xff] %v7774_v50 }
 0x1a1   :  { %v1761_v0 = vadd.f32 %v1760_v60, %v7712_v58  ;;  %10550 = vst [vmem:[#allocation37_spill] sm:$0xff] %v7766_v37  ;;  %v1644_v60 = vmul.f32 %v7149_v20, %v3511_v2  ;;  %10558 = vst [vmem:[#allocation18_spill] sm:$0xff] %v7798_v59  ;;  %v1648_v2 = vmul.f32 %v7149_v20, %v3515_v1  ;;  %v10565_v1 = vld [vmem:[#allocation95_spill] sm:$0xff] }
 0x1a2   :  { %v10582_v58 = vld [vmem:[#allocation19_spill] sm:$0xff] }
 0x1a3   :  { %v1762_v43 = vadd.f32 %v1761_v0, %v7719_v5 }
 0x1a5   :  { %v1763_v56 = vadd.f32 %v1762_v43, %v7726_v36  ;;  %v7782_v43 = vadd.f32 %v1643_v7, %v10553_v33  ;;  %v10559_v7 = vld [vmem:[#allocation92_spill] sm:$0xff]  ;;  %v1650_v33 = vmul.f32 %v7149_v20, %v3517_v46 }
 0x1a6   :  { %v7806_v48 = vadd.f32 %v1646_v41, %v10559_v7  ;;  %v3521_v46 = vld [vmem:[%s9730_s0 + $0x31c] sm:$0xff] }
 0x1a7   :  { %v1764_v8 = vadd.f32 %v1763_v56, %v7734_v38  ;;  %10554 = vst [vmem:[#allocation72_spill] sm:$0xff] %v7782_v43  ;;  %v10555_v56 = vld [vmem:[#allocation90_spill] sm:$0xff] }
 0x1a8   :  { %v7790_v18 = vadd.f32 %v1644_v60, %v10555_v56  ;;  %10560 = vst [vmem:[#allocation75_spill] sm:$0xff] %v7806_v48  ;;  %v3519_v56 = vld [vmem:[%s9730_s0 + $0x304] sm:$0xff] }
 0x1a9   :  { %v1765_v61 = vadd.f32 %v1764_v8, %v7742_v27  ;;  %v1647_v8 = vmul.f32 %v7149_v20, %v3514_v15 }
 0x1aa   :  { %10556 = vst [vmem:[#allocation53_spill] sm:$0xff] %v7790_v18 }
 0x1ab   :  { %v1766_v22 = vadd.f32 %v1765_v61, %v7750_v25  ;;  %v3516_v61 = vld [vmem:[%s9730_s0 + $0x2dc] sm:$0xff] }
 0x1ac   :  { %v1649_v60 = vmul.f32 %v7149_v20, %v3516_v61  ;;  %v1652_v61 = vmul.f32 %v7149_v20, %v3519_v56 }
 0x1ad   :  { %v1767_v0 = vadd.f32 %v1766_v22, %v7758_v23 }
 0x1af   :  { %v1768_v6 = vadd.f32 %v1767_v0, %v7766_v37  ;;  %v7814_v0 = vadd.f32 %v1647_v8, %v10561_v9  ;;  %v7830_v8 = vadd.f32 %v1649_v60, %v10565_v1  ;;  %v10567_v9 = vld [vmem:[#allocation97_spill] sm:$0xff] }
 0x1b1   :  { %v1769_v4 = vadd.f32 %v1768_v6, %v7774_v50  ;;  %10562 = vst [vmem:[#allocation58_spill] sm:$0xff] %v7814_v0  ;;  %v10563_v6 = vld [vmem:[#allocation94_spill] sm:$0xff] }
 0x1b2   :  { %v7822_v15 = vadd.f32 %v1648_v2, %v10563_v6  ;;  %v10566_v2 = vld [vmem:[#allocation96_spill] sm:$0xff]  ;;  %v3522_v6 = vld [vmem:[%s9730_s0 + $0x324] sm:$0xff] }
 0x1b3   :  { %v1770_v30 = vadd.f32 %v1769_v4, %v7782_v43  ;;  %v1651_v4 = vmul.f32 %v7149_v20, %v3518_v35  ;;  %v7838_v7 = vadd.f32 %v1650_v33, %v10566_v2  ;;  %v1654_v33 = vmul.f32 %v7149_v20, %v3521_v46  ;;  %v3524_v46 = vld [vmem:[%s9730_s0 + $0x33c] sm:$0xff]  ;;  %v10575_v50 = vld [vmem:[#allocation10_spill] sm:$0xff] }
 0x1b4   :  { %10564 = vst [vmem:[#allocation47_spill] sm:$0xff] %v7822_v15 }
 0x1b5   :  { %v1771_v22 = vadd.f32 %v1770_v30, %v7790_v18  ;;  %v3520_v30 = vld [vmem:[%s9730_s0 + $0x30c] sm:$0xff] }
 0x1b6   :  { %v1653_v60 = vmul.f32 %v7149_v20, %v3520_v30  ;;  %v10569_v30 = vld [vmem:[#allocation99_spill] sm:$0xff] }
 0x1b7   :  { %v1772_v32 = vadd.f32 %v1771_v22, %v7798_v59  ;;  %v10573_v59 = vld [vmem:[#allocation103_spill] sm:$0xff] }
 0x1b8   :  { %v7862_v2 = vadd.f32 %v1653_v60, %v10569_v30  ;;  %v1657_v60 = vmul.f32 %v7149_v20, %v3524_v46  ;;  %v10571_v30 = vld [vmem:[#allocation101_spill] sm:$0xff] }
 0x1b9   :  { %v1773_v41 = vadd.f32 %v1772_v32, %v7806_v48  ;;  %v7846_v32 = vadd.f32 %v1651_v4, %v10567_v9  ;;  %v1655_v4 = vmul.f32 %v7149_v20, %v3522_v6  ;;  %v10570_v9 = vld [vmem:[#allocation100_spill] sm:$0xff]  ;;  %v3525_v6 = vld [vmem:[%s9730_s0 + $0x34c] sm:$0xff]  ;;  %v3527_v48 = vld [vmem:[%s9730_s0 + $0x364] sm:$0xff] }
 0x1ba   :  { %v1660_v18 = vmul.f32 %v7149_v20, %v3527_v48 }
 0x1bb   :  { %v1774_v28 = vadd.f32 %v1773_v41, %v7814_v0  ;;  %v10568_v41 = vld [vmem:[#allocation98_spill] sm:$0xff]  ;;  %v3526_v0 = vld [vmem:[%s9730_s0 + $0x354] sm:$0xff] }
 0x1bc   :  { %v7854_v56 = vadd.f32 %v1652_v61, %v10568_v41  ;;  %v7870_v41 = vadd.f32 %v1654_v33, %v10570_v9  ;;  %v10572_v33 = vld [vmem:[#allocation102_spill] sm:$0xff]  ;;  %v1659_v46 = vmul.f32 %v7149_v20, %v3526_v0 }
 0x1bd   :  { %v1775_v22 = vadd.f32 %v1774_v28, %v7822_v15  ;;  %v3523_v28 = vld [vmem:[%s9730_s0 + $0x334] sm:$0xff]  ;;  %v1719_v15 = vadd.f32 %v1655_v4, %v10571_v30  ;;  %v1721_v4 = vadd.f32 %v1657_v60, %v10573_v59  ;;  %v3530_v59 = vld [vmem:[%s9730_s0 + $0x384] sm:$0xff] }
 0x1be   :  { %v1656_v61 = vmul.f32 %v7149_v20, %v3523_v28  ;;  %v1658_v28 = vmul.f32 %v7149_v20, %v3525_v6  ;;  %v10574_v6 = vld [vmem:[#allocation104_spill] sm:$0xff]  ;;  %v1723_v0 = vadd.f32 %v1659_v46, %v10575_v50 }
 0x1bf   :  { %v1776_v35 = vadd.f32 %v1775_v22, %v7830_v8  ;;  %v3532_v50 = vld [vmem:[%s9730_s0 + $0x39c] sm:$0xff] }
 0x1c0   :  { %v1720_v9 = vadd.f32 %v1656_v61, %v10572_v33  ;;  %v1722_v43 = vadd.f32 %v1658_v28, %v10574_v6  ;;  %v3531_v28 = vld [vmem:[%s9730_s0 + $0x394] sm:$0xff] }
 0x1c1   :  { %v1777_v1 = vadd.f32 %v1776_v35, %v7838_v7  ;;  %v10577_v6 = vld [vmem:[#allocation12_spill] sm:$0xff]  ;;  %v1664_v46 = vmul.f32 %v7149_v20, %v3531_v28 }
 0x1c3   :  { %v1778_v22 = vadd.f32 %v1777_v1, %v7846_v32 }
 0x1c5   :  { %v1779_v35 = vadd.f32 %v1778_v22, %v7854_v56 }
 0x1c7   :  { %v1780_v1 = vadd.f32 %v1779_v35, %v7862_v2  ;;  %v3528_v35 = vld [vmem:[%s9730_s0 + $0x36c] sm:$0xff] }
 0x1c8   :  { %v1661_v33 = vmul.f32 %v7149_v20, %v3528_v35 }
 0x1c9   :  { %v1781_v22 = vadd.f32 %v1780_v1, %v7870_v41  ;;  %v3529_v1 = vld [vmem:[%s9730_s0 + $0x37c] sm:$0xff] }
 0x1ca   :  { %v1662_v60 = vmul.f32 %v7149_v20, %v3529_v1  ;;  %v1725_v35 = vadd.f32 %v1661_v33, %v10577_v6  ;;  %v10580_v6 = vld [vmem:[#allocation15_spill] sm:$0xff] }
 0x1cb   :  { %v1782_v30 = vadd.f32 %v1781_v22, %v1719_v15  ;;  %v10576_v22 = vld [vmem:[#allocation11_spill] sm:$0xff]  ;;  %v1728_v28 = vadd.f32 %v1664_v46, %v10580_v6 }
 0x1cc   :  { %v1724_v48 = vadd.f32 %v1660_v18, %v10576_v22  ;;  %v1665_v18 = vmul.f32 %v7149_v20, %v3532_v50  ;;  %v10579_v22 = vld [vmem:[#allocation14_spill] sm:$0xff] }
 0x1cd   :  { %v1783_v61 = vadd.f32 %v1782_v30, %v1720_v9  ;;  %v1663_v30 = vmul.f32 %v7149_v20, %v3530_v59 }
 0x1cf   :  { %v1784_v37 = vadd.f32 %v1783_v61, %v1721_v4  ;;  %v10578_v61 = vld [vmem:[#allocation13_spill] sm:$0xff]  ;;  %v1727_v59 = vadd.f32 %v1663_v30, %v10579_v22 }
 0x1d0   :  { %v1726_v1 = vadd.f32 %v1662_v60, %v10578_v61  ;;  %v10581_v60 = vld [vmem:[#allocation16_spill] sm:$0xff] }
 0x1d1   :  { %v1785_v23 = vadd.f32 %v1784_v37, %v1722_v43  ;;  %v3533_v37 = vld [vmem:[%s9730_s0 + $0x3ac] sm:$0xff]  ;;  %v1729_v61 = vadd.f32 %v1665_v18, %v10581_v60 }
 0x1d2   :  { %v1666_v33 = vmul.f32 %v7149_v20, %v3533_v37 }
 0x1d3   :  { %v1786_v25 = vadd.f32 %v1785_v23, %v1723_v0  ;;  %v3534_v23 = vld [vmem:[%s9730_s0 + $0x3b4] sm:$0xff] }
 0x1d4   :  { %v1730_v47 = vadd.f32 %v1666_v33, %v10582_v58 }
 0x1d5   :  { %v1787_v27 = vadd.f32 %v1786_v25, %v1724_v48  ;;  %v1667_v25 = vmul.f32 %v7149_v20, %v3534_v23 }
 0x1d7   :  { %v1788_v38 = vadd.f32 %v1787_v27, %v1725_v35  ;;  %v1731_v30 = vadd.f32 %v1667_v25, %v10583_v49 }
 0x1d9   :  { %v1789_v36 = vadd.f32 %v1788_v38, %v1726_v1 }
 0x1db   :  { %v1790_v5 = vadd.f32 %v1789_v36, %v1727_v59 }
 0x1dd   :  { %v1791_v50 = vadd.f32 %v1790_v5, %v1728_v28 }
 0x1df   :  { %v1792_v27 = vadd.f32 %v1791_v50, %v1729_v61 }
 0x1e1   :  { %v1793_v22 = vadd.f32 %v1792_v27, %v1730_v47 }
 0x1e3   :  { %v1794_v42 = vadd.f32 %v1793_v22, %v1731_v30 }
 0x1e5   :  { %v1795_v17 = vrot.slane %v1794_v42, 4 }
 0x1e7   :  { %v1796_v24 = vadd.f32 %v1795_v17, %v1794_v42 }
 0x1e9   :  { %v1797_v10 = vrot.slane %v1796_v24, 2 }
 0x1eb   :  { %v1798_v37 = vadd.f32 %v1797_v10, %v1796_v24 }
 0x1ed   :  { %v1799_v51 = vrot.slane %v1798_v37, 1 }
 0x1ef   :  { %v1800_v46 = vadd.f32 %v1799_v51, %v1798_v37 }
 0x1f1   :  { %v7929_v38 = vmul.f32 0.001953125, %v1800_v46 }
 0x1f3   :  { %v7933_v20 = vsub.f32 %v7830_v8, %v7929_v38  ;;  %v7937_v58 = vsub.f32 %v7838_v7, %v7929_v38  ;;  %v7941_v49 = vsub.f32 %v7846_v32, %v7929_v38  ;;  %v7945_v17 = vsub.f32 %v7854_v56, %v7929_v38 }
 0x1f4   :  { %v7949_v51 = vsub.f32 %v7862_v2, %v7929_v38  ;;  %v7953_v10 = vsub.f32 %v7870_v41, %v7929_v38  ;;  %v7956_v24 = vsub.f32 %v1719_v15, %v7929_v38  ;;  %v7959_v42 = vsub.f32 %v1720_v9, %v7929_v38 }
 0x1f5   :  { %v7962_v5 = vsub.f32 %v1721_v4, %v7929_v38  ;;  %v7965_v36 = vsub.f32 %v1722_v43, %v7929_v38  ;;  %v7968_v8 = vsub.f32 %v1723_v0, %v7929_v38  ;;  %v7971_v7 = vsub.f32 %v1724_v48, %v7929_v38 }
 0x1f6   :  { %v7974_v32 = vsub.f32 %v1725_v35, %v7929_v38  ;;  %v7977_v15 = vsub.f32 %v1726_v1, %v7929_v38  ;;  %v7980_v56 = vsub.f32 %v1727_v59, %v7929_v38  ;;  %v7983_v2 = vsub.f32 %v1728_v28, %v7929_v38 }
 0x1f7   :  { %10584 = vst [vmem:[#allocation38_spill] sm:$0xff] %v7962_v5  ;;  %v7986_v43 = vsub.f32 %v1729_v61, %v7929_v38  ;;  %v7989_v41 = vsub.f32 %v1730_v47, %v7929_v38  ;;  %v7992_v9 = vsub.f32 %v1731_v30, %v7929_v38  ;;  %v7996_v4 = vsub.f32 %v7259_v39, %v7929_v38 }
 0x1f8   :  { %10585 = vst [vmem:[#allocation76_spill] sm:$0xff] %v7974_v32  ;;  %10586 = vst [vmem:[#allocation73_spill] sm:$0xff] %v7977_v15  ;;  %v8000_v0 = vsub.f32 %v7261_v16, %v7929_v38  ;;  %v8004_v48 = vsub.f32 %v7280_v44, %v7929_v38  ;;  %v8008_v35 = vsub.f32 %v7296_v53, %v7929_v38 }
 0x1f9   :  { %10587 = vst [vmem:[#allocation24_spill] sm:$0xff] %v7980_v56  ;;  %10588 = vst [vmem:[#allocation6_spill] sm:$0xff] %v7983_v2  ;;  %v1866_v47 = vmul.f32 %v7996_v4, %v7996_v4  ;;  %v8016_v39 = vsub.f32 %v7314_v19, %v7929_v38  ;;  %v8022_v44 = vsub.f32 %v7331_v57, %v7929_v38 }
 0x1fa   :  { %10589 = vst [vmem:[#allocation79_spill] sm:$0xff] %v7992_v9  ;;  %v1867_v1 = vmul.f32 %v8000_v0, %v8000_v0  ;;  %v1868_v16 = vmul.f32 %v8004_v48, %v8004_v48  ;;  %v1869_v53 = vmul.f32 %v8008_v35, %v8008_v35  ;;  %v8028_v59 = vsub.f32 %v7348_v11, %v7929_v38 }
 0x1fb   :  { %v1870_v23 = vmul.f32 %v8016_v39, %v8016_v39  ;;  %v8034_v33 = vsub.f32 %v7365_v52, %v7929_v38  ;;  %v1871_v57 = vmul.f32 %v8022_v44, %v8022_v44  ;;  %v8040_v28 = vsub.f32 %v7382_v14, %v7929_v38 }
 0x1fc   :  { %v1930_v18 = vadd.f32 %v1867_v1, %v1866_v47  ;;  %v1872_v11 = vmul.f32 %v8028_v59, %v8028_v59  ;;  %v8046_v60 = vsub.f32 %v7399_v54, %v7929_v38  ;;  %v8052_v50 = vsub.f32 %v7416_v12, %v7929_v38 }
 0x1fd   :  { %v1873_v52 = vmul.f32 %v8034_v33, %v8034_v33  ;;  %v1874_v14 = vmul.f32 %v8040_v28, %v8040_v28  ;;  %v8058_v27 = vsub.f32 %v7433_v55, %v7929_v38  ;;  %v8064_v37 = vsub.f32 %v7450_v3, %v7929_v38 }
 0x1fe   :  { %v1931_v19 = vadd.f32 %v1930_v18, %v1868_v16  ;;  %v1875_v54 = vmul.f32 %v8046_v60, %v8046_v60  ;;  %v1876_v12 = vmul.f32 %v8052_v50, %v8052_v50  ;;  %v8070_v47 = vsub.f32 %v7467_v31, %v7929_v38 }
 0x1ff   :  { %v1877_v55 = vmul.f32 %v8058_v27, %v8058_v27  ;;  %v8076_v16 = vsub.f32 %v7484_v63, %v7929_v38  ;;  %v1878_v3 = vmul.f32 %v8064_v37, %v8064_v37  ;;  %v8082_v18 = vsub.f32 %v7501_v40, %v7929_v38 }
 0x200   :  { %v1932_v6 = vadd.f32 %v1931_v19, %v1869_v53  ;;  %v1879_v31 = vmul.f32 %v8070_v47, %v8070_v47  ;;  %v8088_v19 = vsub.f32 %v7518_v34, %v7929_v38 }
 0x201   :  { %v1880_v63 = vmul.f32 %v8076_v16, %v8076_v16  ;;  %v1881_v40 = vmul.f32 %v8082_v18, %v8082_v18 }
 0x202   :  { %v1933_v25 = vadd.f32 %v1932_v6, %v1870_v23  ;;  %v8094_v6 = vsub.f32 %v7535_v29, %v7929_v38  ;;  %v1882_v34 = vmul.f32 %v8088_v19, %v8088_v19 }
 0x204   :  { %v1934_v61 = vadd.f32 %v1933_v25, %v1871_v57  ;;  %v8100_v25 = vsub.f32 %v7552_v13, %v7929_v38  ;;  %v1883_v29 = vmul.f32 %v8094_v6, %v8094_v6 }
 0x206   :  { %v1935_v30 = vadd.f32 %v1934_v61, %v1872_v11  ;;  %v8106_v61 = vsub.f32 %v7569_v21, %v7929_v38  ;;  %v1884_v13 = vmul.f32 %v8100_v25, %v8100_v25 }
 0x208   :  { %v1936_v22 = vadd.f32 %v1935_v30, %v1873_v52  ;;  %v8112_v30 = vsub.f32 %v7586_v62, %v7929_v38  ;;  %v1885_v21 = vmul.f32 %v8106_v61, %v8106_v61 }
 0x20a   :  { %v1937_v46 = vadd.f32 %v1936_v22, %v1874_v14  ;;  %v8118_v22 = vsub.f32 %v7603_v26, %v7929_v38  ;;  %v1886_v62 = vmul.f32 %v8112_v30, %v8112_v30 }
 0x20c   :  { %v1938_v1 = vadd.f32 %v1937_v46, %v1875_v54  ;;  %v8124_v46 = vsub.f32 %v7620_v45, %v7929_v38  ;;  %v1887_v26 = vmul.f32 %v8118_v22, %v8118_v22 }
 0x20e   :  { %v1939_v53 = vadd.f32 %v1938_v1, %v1876_v12  ;;  %v10590_v1 = vld [vmem:[#allocation70_spill] sm:$0xff]  ;;  %v1888_v45 = vmul.f32 %v8124_v46, %v8124_v46 }
 0x210   :  { %v1940_v23 = vadd.f32 %v1939_v53, %v1877_v55 }
 0x212   :  { %v1941_v57 = vadd.f32 %v1940_v23, %v1878_v3  ;;  %v8130_v3 = vsub.f32 %v10590_v1, %v7929_v38 }
 0x214   :  { %v1942_v11 = vadd.f32 %v1941_v57, %v1879_v31  ;;  %v10591_v31 = vld [vmem:[#allocation52_spill] sm:$0xff]  ;;  %v10592_v57 = vld [vmem:[#allocation63_spill] sm:$0xff] }
 0x215   :  { %v8136_v23 = vsub.f32 %v10591_v31, %v7929_v38  ;;  %v10598_v31 = vld [vmem:[#allocation36_spill] sm:$0xff] }
 0x216   :  { %v1943_v52 = vadd.f32 %v1942_v11, %v1880_v63  ;;  %v1889_v11 = vmul.f32 %v8130_v3, %v8130_v3 }
 0x218   :  { %v1944_v14 = vadd.f32 %v1943_v52, %v1881_v40  ;;  %v8142_v40 = vsub.f32 %v10592_v57, %v7929_v38  ;;  %v10593_v52 = vld [vmem:[#allocation65_spill] sm:$0xff] }
 0x21a   :  { %v1945_v54 = vadd.f32 %v1944_v14, %v1882_v34  ;;  %v1890_v14 = vmul.f32 %v8136_v23, %v8136_v23 }
 0x21c   :  { %v1946_v12 = vadd.f32 %v1945_v54, %v1883_v29  ;;  %v8148_v29 = vsub.f32 %v10593_v52, %v7929_v38  ;;  %v10594_v54 = vld [vmem:[#allocation57_spill] sm:$0xff] }
 0x21e   :  { %v1947_v55 = vadd.f32 %v1946_v12, %v1884_v13  ;;  %v1891_v12 = vmul.f32 %v8142_v40, %v8142_v40 }
 0x220   :  { %v1948_v53 = vadd.f32 %v1947_v55, %v1885_v21  ;;  %v8154_v21 = vsub.f32 %v10594_v54, %v7929_v38  ;;  %v10596_v55 = vld [vmem:[#allocation45_spill] sm:$0xff]  ;;  %v10602_v54 = vld [vmem:[#allocation71_spill] sm:$0xff] }
 0x221   :  { %v8160_v1 = vsub.f32 %v10596_v55, %v7929_v38  ;;  %v8178_v55 = vsub.f32 %v10602_v54, %v7929_v38  ;;  %v10608_v54 = vld [vmem:[#allocation66_spill] sm:$0xff] }
 0x222   :  { %v1949_v63 = vadd.f32 %v1948_v53, %v1886_v62  ;;  %10595 = vst [vmem:[#allocation28_spill] sm:$0xff] %v8154_v21 }
 0x223   :  { %10597 = vst [vmem:[#allocation48_spill] sm:$0xff] %v8160_v1  ;;  %10603 = vst [vmem:[#allocation74_spill] sm:$0xff] %v8178_v55 }
 0x224   :  { %v1950_v34 = vadd.f32 %v1949_v63, %v1887_v26  ;;  %v1892_v26 = vmul.f32 %v8148_v29, %v8148_v29  ;;  %v8166_v63 = vsub.f32 %v10598_v31, %v7929_v38  ;;  %v10604_v31 = vld [vmem:[#allocation23_spill] sm:$0xff] }
 0x226   :  { %v1951_v13 = vadd.f32 %v1950_v34, %v1888_v45  ;;  %10599 = vst [vmem:[#allocation39_spill] sm:$0xff] %v8166_v63  ;;  %v1893_v45 = vmul.f32 %v8154_v21, %v8154_v21  ;;  %v10600_v34 = vld [vmem:[#allocation33_spill] sm:$0xff]  ;;  %v8184_v21 = vsub.f32 %v10604_v31, %v7929_v38  ;;  %v10610_v31 = vld [vmem:[#allocation27_spill] sm:$0xff] }
 0x227   :  { %v8172_v52 = vsub.f32 %v10600_v34, %v7929_v38  ;;  %v10606_v34 = vld [vmem:[#allocation67_spill] sm:$0xff] }
 0x228   :  { %v1952_v62 = vadd.f32 %v1951_v13, %v1889_v11  ;;  %v1894_v11 = vmul.f32 %v8160_v1, %v8160_v1  ;;  %10605 = vst [vmem:[#allocation54_spill] sm:$0xff] %v8184_v21  ;;  %v8190_v1 = vsub.f32 %v10606_v34, %v7929_v38  ;;  %v10612_v34 = vld [vmem:[#allocation46_spill] sm:$0xff] }
 0x229   :  { %10601 = vst [vmem:[#allocation80_spill] sm:$0xff] %v8172_v52 }
 0x22a   :  { %v1953_v53 = vadd.f32 %v1952_v62, %v1890_v14  ;;  %v1895_v14 = vmul.f32 %v8166_v63, %v8166_v63  ;;  %10607 = vst [vmem:[#allocation50_spill] sm:$0xff] %v8190_v1  ;;  %v8196_v63 = vsub.f32 %v10608_v54, %v7929_v38  ;;  %v10614_v54 = vld [vmem:[#allocation37_spill] sm:$0xff] }
 0x22c   :  { %v1954_v57 = vadd.f32 %v1953_v53, %v1891_v12  ;;  %v1896_v12 = vmul.f32 %v8172_v52, %v8172_v52  ;;  %10609 = vst [vmem:[#allocation81_spill] sm:$0xff] %v8196_v63  ;;  %v8202_v52 = vsub.f32 %v10610_v31, %v7929_v38  ;;  %v10616_v31 = vld [vmem:[#allocation20_spill] sm:$0xff] }
 0x22e   :  { %v1955_v13 = vadd.f32 %v1954_v57, %v1892_v26  ;;  %v1897_v26 = vmul.f32 %v8178_v55, %v8178_v55  ;;  %10611 = vst [vmem:[#allocation60_spill] sm:$0xff] %v8202_v52  ;;  %v8208_v55 = vsub.f32 %v10612_v34, %v7929_v38  ;;  %v10618_v34 = vld [vmem:[#allocation72_spill] sm:$0xff] }
 0x230   :  { %v1956_v62 = vadd.f32 %v1955_v13, %v1893_v45  ;;  %v1898_v45 = vmul.f32 %v8184_v21, %v8184_v21  ;;  %10613 = vst [vmem:[#allocation49_spill] sm:$0xff] %v8208_v55  ;;  %v8214_v21 = vsub.f32 %v10614_v54, %v7929_v38  ;;  %v10620_v54 = vld [vmem:[#allocation53_spill] sm:$0xff] }
 0x232   :  { %v1957_v53 = vadd.f32 %v1956_v62, %v1894_v11  ;;  %v1899_v11 = vmul.f32 %v8190_v1, %v8190_v1  ;;  %10615 = vst [vmem:[#allocation40_spill] sm:$0xff] %v8214_v21  ;;  %v8220_v1 = vsub.f32 %v10616_v31, %v7929_v38  ;;  %v10621_v31 = vld [vmem:[#allocation18_spill] sm:$0xff] }
 0x234   :  { %v1958_v57 = vadd.f32 %v1957_v53, %v1895_v14  ;;  %v1900_v14 = vmul.f32 %v8196_v63, %v8196_v63  ;;  %10617 = vst [vmem:[#allocation82_spill] sm:$0xff] %v8220_v1  ;;  %v8226_v63 = vsub.f32 %v10618_v34, %v7929_v38  ;;  %v10623_v34 = vld [vmem:[#allocation75_spill] sm:$0xff] }
 0x236   :  { %v1959_v13 = vadd.f32 %v1958_v57, %v1896_v12  ;;  %v1901_v12 = vmul.f32 %v8202_v52, %v8202_v52  ;;  %10619 = vst [vmem:[#allocation29_spill] sm:$0xff] %v8226_v63  ;;  %v8232_v52 = vsub.f32 %v10620_v54, %v7929_v38  ;;  %v10624_v54 = vld [vmem:[#allocation58_spill] sm:$0xff] }
 0x238   :  { %v1960_v62 = vadd.f32 %v1959_v13, %v1897_v26  ;;  %v1902_v26 = vmul.f32 %v8208_v55, %v8208_v55  ;;  %v8238_v55 = vsub.f32 %v10621_v31, %v7929_v38  ;;  %v10625_v31 = vld [vmem:[#allocation47_spill] sm:$0xff] }
 0x23a   :  { %v1961_v53 = vadd.f32 %v1960_v62, %v1898_v45  ;;  %v1903_v45 = vmul.f32 %v8214_v21, %v8214_v21  ;;  %10622 = vst [vmem:[#allocation25_spill] sm:$0xff] %v8238_v55  ;;  %v8244_v21 = vsub.f32 %v10623_v34, %v7929_v38 }
 0x23c   :  { %v1962_v57 = vadd.f32 %v1961_v53, %v1899_v11  ;;  %v1904_v11 = vmul.f32 %v8220_v1, %v8220_v1  ;;  %v8250_v1 = vsub.f32 %v10624_v54, %v7929_v38 }
 0x23e   :  { %v1963_v13 = vadd.f32 %v1962_v57, %v1900_v14  ;;  %v1905_v14 = vmul.f32 %v8226_v63, %v8226_v63  ;;  %v8256_v63 = vsub.f32 %v10625_v31, %v7929_v38  ;;  %v1909_v34 = vmul.f32 %v8250_v1, %v8250_v1 }
 0x23f   :  { %v1912_v38 = vmul.f32 %v7937_v58, %v7937_v58  ;;  %v1913_v31 = vmul.f32 %v7941_v49, %v7941_v49 }
 0x240   :  { %v1964_v62 = vadd.f32 %v1963_v13, %v1901_v12  ;;  %v1906_v12 = vmul.f32 %v8232_v52, %v8232_v52 }
 0x242   :  { %v1965_v53 = vadd.f32 %v1964_v62, %v1902_v26  ;;  %v1907_v26 = vmul.f32 %v8238_v55, %v8238_v55  ;;  %v1911_v55 = vmul.f32 %v7933_v20, %v7933_v20 }
 0x244   :  { %v1966_v57 = vadd.f32 %v1965_v53, %v1903_v45  ;;  %v1908_v45 = vmul.f32 %v8244_v21, %v8244_v21 }
 0x246   :  { %v1967_v13 = vadd.f32 %v1966_v57, %v1904_v11  ;;  %v1910_v57 = vmul.f32 %v8256_v63, %v8256_v63 }
 0x248   :  { %v1968_v62 = vadd.f32 %v1967_v13, %v1905_v14 }
 0x24a   :  { %v1969_v53 = vadd.f32 %v1968_v62, %v1906_v12  ;;  %v1914_v62 = vmul.f32 %v7945_v17, %v7945_v17 }
 0x24c   :  { %v1970_v11 = vadd.f32 %v1969_v53, %v1907_v26  ;;  %v1915_v53 = vmul.f32 %v7949_v51, %v7949_v51 }
 0x24e   :  { %v1971_v54 = vadd.f32 %v1970_v11, %v1908_v45  ;;  %v1916_v11 = vmul.f32 %v7953_v10, %v7953_v10 }
 0x250   :  { %v1972_v14 = vadd.f32 %v1971_v54, %v1909_v34  ;;  %v1917_v54 = vmul.f32 %v7956_v24, %v7956_v24 }
 0x252   :  { %v1973_v13 = vadd.f32 %v1972_v14, %v1910_v57  ;;  %v1918_v14 = vmul.f32 %v7959_v42, %v7959_v42 }
 0x254   :  { %v1974_v12 = vadd.f32 %v1973_v13, %v1911_v55  ;;  %v1919_v13 = vmul.f32 %v7962_v5, %v7962_v5 }
 0x256   :  { %v1975_v26 = vadd.f32 %v1974_v12, %v1912_v38  ;;  %v1920_v12 = vmul.f32 %v7965_v36, %v7965_v36 }
 0x258   :  { %v1976_v45 = vadd.f32 %v1975_v26, %v1913_v31  ;;  %v1921_v26 = vmul.f32 %v7968_v8, %v7968_v8 }
 0x25a   :  { %v1977_v34 = vadd.f32 %v1976_v45, %v1914_v62  ;;  %v1922_v45 = vmul.f32 %v7971_v7, %v7971_v7 }
 0x25c   :  { %v1978_v57 = vadd.f32 %v1977_v34, %v1915_v53  ;;  %v1923_v34 = vmul.f32 %v7974_v32, %v7974_v32 }
 0x25e   :  { %v1979_v55 = vadd.f32 %v1978_v57, %v1916_v11  ;;  %v1924_v57 = vmul.f32 %v7977_v15, %v7977_v15 }
 0x260   :  { %v1980_v38 = vadd.f32 %v1979_v55, %v1917_v54  ;;  %v1925_v55 = vmul.f32 %v7980_v56, %v7980_v56 }
 0x262   :  { %v1981_v31 = vadd.f32 %v1980_v38, %v1918_v14  ;;  %v1926_v38 = vmul.f32 %v7983_v2, %v7983_v2 }
 0x264   :  { %v1982_v62 = vadd.f32 %v1981_v31, %v1919_v13  ;;  %v1927_v31 = vmul.f32 %v7986_v43, %v7986_v43 }
 0x266   :  { %v1983_v53 = vadd.f32 %v1982_v62, %v1920_v12  ;;  %v1928_v62 = vmul.f32 %v7989_v41, %v7989_v41 }
 0x268   :  { %v1984_v11 = vadd.f32 %v1983_v53, %v1921_v26  ;;  %v1929_v53 = vmul.f32 %v7992_v9, %v7992_v9 }
 0x26a   :  { %v1985_v54 = vadd.f32 %v1984_v11, %v1922_v45 }
 0x26c   :  { %v1986_v14 = vadd.f32 %v1985_v54, %v1923_v34 }
 0x26e   :  { %v1987_v13 = vadd.f32 %v1986_v14, %v1924_v57 }
 0x270   :  { %v1988_v12 = vadd.f32 %v1987_v13, %v1925_v55  ;;  %v2000_v55 = vld [vmem:[%s9732_s2] sm:$0x1] }
 0x272   :  { %v1989_v26 = vadd.f32 %v1988_v12, %v1926_v38  ;;  %v10626_v12 = vld [vmem:[#allocation7_spill] sm:$0xff] }
 0x274   :  { %v1990_v45 = vadd.f32 %v1989_v26, %v1927_v31 }
 0x276   :  { %v1991_v11 = vadd.f32 %v1990_v45, %v1928_v62 }
 0x278   :  { %v1992_v15 = vadd.f32 %v1991_v11, %v1929_v53 }
 0x27a   :  { %v1993_v56 = vrot.slane %v1992_v15, 4 }
 0x27c   :  { %v1994_v34 = vadd.f32 %v1993_v56, %v1992_v15  ;;  %v8311_v15 = vld [vmem:[%s9733_s3] ss:$0 sm:$0xff] }
 0x27e   :  { %v1995_v54 = vrot.slane %v1994_v34, 2 }
 0x280   :  { %v1996_v5 = vadd.f32 %v1995_v54, %v1994_v34 }
 0x282   :  { %v1997_v2 = vrot.slane %v1996_v5, 1 }
 0x284   :  { %v1998_v57 = vadd.f32 %v1997_v2, %v1996_v5 }
 0x286   :  { %v1999_v14 = vmul.f32 0.001953125, %v1998_v57 }
 0x288   :  { %v2001_v32 = vadd.f32 1e-05, %v1999_v14 }
 0x28a   :  { %3693 = vrsqrt.f32 %v2001_v32 }
 0x294   :  { %v3694_v38 = vpop.eup %3693 }
 0x295   :  { %v2003_v13 = vmul.f32 %v3694_v38, %v2000_v55 }
 0x297   :  { %v8306_v9 = vrot.slane %v2003_v13, %v10626_v12 }
 0x299   :  { %v2010_v5 = vmul.f32 %v8306_v9, %v7996_v4  ;;  %v2011_v32 = vmul.f32 %v8306_v9, %v8000_v0  ;;  %v2012_v56 = vmul.f32 %v8306_v9, %v8004_v48  ;;  %v2013_v2 = vmul.f32 %v8306_v9, %v8008_v35 }
 0x29a   :  { %v2014_v31 = vmul.f32 %v8306_v9, %v8016_v39  ;;  %v2015_v62 = vmul.f32 %v8306_v9, %v8022_v44  ;;  %v2016_v26 = vmul.f32 %v8306_v9, %v8028_v59  ;;  %v2017_v4 = vmul.f32 %v8306_v9, %v8034_v33 }
 0x29b   :  { %v2081_v0 = vadd.f32 %v8311_v15, %v2010_v5  ;;  %v2082_v53 = vadd.f32 %v8311_v15, %v2011_v32  ;;  %v2083_v48 = vadd.f32 %v8311_v15, %v2012_v56  ;;  %v2084_v35 = vadd.f32 %v8311_v15, %v2013_v2 }
 0x29c   :  { %v2085_v45 = vadd.f32 %v8311_v15, %v2014_v31  ;;  %v2086_v39 = vadd.f32 %v8311_v15, %v2015_v62  ;;  %v2087_v44 = vadd.f32 %v8311_v15, %v2016_v26  ;;  %v2088_v11 = vadd.f32 %v8311_v15, %v2017_v4 }
 0x29d   :  { %v2145_v59 = vmax.f32 %v2081_v0, 0.0  ;;  %v2146_v34 = vmax.f32 %v2082_v53, 0.0  ;;  %v2147_v54 = vmax.f32 %v2083_v48, 0.0  ;;  %v2148_v33 = vmax.f32 %v2084_v35, 0.0 }
 0x29e   :  { %v2149_v57 = vmax.f32 %v2085_v45, 0.0  ;;  %v2150_v14 = vmax.f32 %v2086_v39, 0.0  ;;  %v2018_v13 = vmul.f32 %v8306_v9, %v8040_v28  ;;  %v2019_v5 = vmul.f32 %v8306_v9, %v8046_v60 }
 0x29f   :  { %v2209_v55 = vpack.c.bf16 %v2146_v34, %v2145_v59  ;;  %v2210_v38 = vpack.c.bf16 %v2148_v33, %v2147_v54  ;;  %v2020_v56 = vmul.f32 %v8306_v9, %v8052_v50  ;;  %v2021_v2 = vmul.f32 %v8306_v9, %v8058_v27 }
 0x2a0   :  { %v2211_v32 = vpack.c.bf16 %v2150_v14, %v2149_v57  ;;  %v2151_v31 = vmax.f32 %v2087_v44, 0.0  ;;  %v2152_v62 = vmax.f32 %v2088_v11, 0.0  ;;  %v2089_v26 = vadd.f32 %v8311_v15, %v2018_v13 }
 0x2a1   :  { %3602 = vmatprep.mubr.bf16.mxu0 %v2209_v55  ;;  %v2090_v4 = vadd.f32 %v8311_v15, %v2019_v5  ;;  %v2091_v28 = vadd.f32 %v8311_v15, %v2020_v56  ;;  %v2022_v60 = vmul.f32 %v8306_v9, %v8064_v37  ;;  %v2023_v0 = vmul.f32 %v8306_v9, %v8070_v47 }
 0x2a2   :  { %3603 = vmatmul.mubr.bf16.vlgmr.msra.gmra.mrb[0].mxu0 %v2210_v38  ;;  %v2153_v50 = vmax.f32 %v2089_v26, 0.0  ;;  %v2092_v27 = vadd.f32 %v8311_v15, %v2021_v2  ;;  %v2024_v48 = vmul.f32 %v8306_v9, %v8076_v16  ;;  %v2025_v35 = vmul.f32 %v8306_v9, %v8082_v18 }
 0x2a3   :  { %3606 = vmatprep.mubr.bf16.mxu0 %v2211_v32  ;;  %v2154_v53 = vmax.f32 %v2090_v4, 0.0  ;;  %v2212_v45 = vpack.c.bf16 %v2152_v62, %v2151_v31  ;;  %v2026_v39 = vmul.f32 %v8306_v9, %v8088_v19  ;;  %v2155_v44 = vmax.f32 %v2091_v28, 0.0 }
 0x2a4   :  { %v2093_v37 = vadd.f32 %v8311_v15, %v2022_v60  ;;  %v2094_v47 = vadd.f32 %v8311_v15, %v2023_v0  ;;  %v2027_v11 = vmul.f32 %v8306_v9, %v8094_v6  ;;  %v2156_v34 = vmax.f32 %v2092_v27, 0.0 }
 0x2a5   :  { %v2213_v59 = vpack.c.bf16 %v2154_v53, %v2153_v50  ;;  %v2028_v16 = vmul.f32 %v8306_v9, %v8100_v25  ;;  %v2029_v18 = vmul.f32 %v8306_v9, %v8106_v61  ;;  %v2095_v54 = vadd.f32 %v8311_v15, %v2024_v48  ;;  %v10627_v48 = vld [vmem:[#allocation28_spill] sm:$0xff] }
 0x2a6   :  { %v2096_v19 = vadd.f32 %v8311_v15, %v2025_v35  ;;  %v2030_v33 = vmul.f32 %v8306_v9, %v8112_v30  ;;  %v2031_v57 = vmul.f32 %v8306_v9, %v8118_v22  ;;  %v2097_v6 = vadd.f32 %v8311_v15, %v2026_v39 }
 0x2a7   :  { %v2098_v14 = vadd.f32 %v8311_v15, %v2027_v11  ;;  %v2099_v55 = vadd.f32 %v8311_v15, %v2028_v16  ;;  %v2100_v25 = vadd.f32 %v8311_v15, %v2029_v18  ;;  %v2032_v13 = vmul.f32 %v8306_v9, %v8124_v46 }
 0x2a8   :  { %v2101_v61 = vadd.f32 %v8311_v15, %v2030_v33  ;;  %v2102_v38 = vadd.f32 %v8311_v15, %v2031_v57  ;;  %v2157_v30 = vmax.f32 %v2093_v37, 0.0  ;;  %v2158_v5 = vmax.f32 %v2094_v47, 0.0 }
 0x2a9   :  { %v2033_v22 = vmul.f32 %v8306_v9, %v8130_v3  ;;  %v2034_v32 = vmul.f32 %v8306_v9, %v8136_v23  ;;  %v2214_v56 = vpack.c.bf16 %v2156_v34, %v2155_v44  ;;  %v2159_v2 = vmax.f32 %v2095_v54, 0.0  ;;  %v10628_v44 = vld [vmem:[#allocation48_spill] sm:$0xff]  ;;  %v10629_v34 = vld [vmem:[#allocation54_spill] sm:$0xff] }
 0x2aa   :  { %3607 = vmatmul.mubr.bf16.gmra.mrb[4].mxu0 %v2212_v45  ;;  %v2160_v31 = vmax.f32 %v2096_v19, 0.0  ;;  %v2161_v62 = vmax.f32 %v2097_v6, 0.0  ;;  %v2162_v26 = vmax.f32 %v2098_v14, 0.0  ;;  %v2163_v4 = vmax.f32 %v2099_v55, 0.0  ;;  %v10630_v19 = vld [vmem:[#allocation39_spill] sm:$0xff]  ;;  %v10631_v6 = vld [vmem:[#allocation80_spill] sm:$0xff] }
 0x2ab   :  { %3610 = vmatprep.mubr.bf16.mxu0 %v2213_v59  ;;  %v2035_v28 = vmul.f32 %v8306_v9, %v8142_v40  ;;  %v2164_v60 = vmax.f32 %v2100_v25, 0.0  ;;  %v2165_v46 = vmax.f32 %v2101_v61, 0.0  ;;  %v2166_v0 = vmax.f32 %v2102_v38, 0.0  ;;  %v10632_v55 = vld [vmem:[#allocation50_spill] sm:$0xff] }
 0x2ac   :  { %v8388_v50 = vadd.f32 %v8311_v15, %v2032_v13  ;;  %v2215_v53 = vpack.c.bf16 %v2158_v5, %v2157_v30  ;;  %v8391_v3 = vadd.f32 %v8311_v15, %v2033_v22  ;;  %v8394_v23 = vadd.f32 %v8311_v15, %v2034_v32  ;;  %v10633_v30 = vld [vmem:[#allocation81_spill] sm:$0xff]  ;;  %v10634_v22 = vld [vmem:[#allocation60_spill] sm:$0xff] }
 0x2ad   :  { %v2036_v27 = vmul.f32 %v8306_v9, %v8148_v29  ;;  %v2037_v35 = vmul.f32 %v8306_v9, %v10627_v48  ;;  %v2216_v40 = vpack.c.bf16 %v2160_v31, %v2159_v2  ;;  %v2217_v45 = vpack.c.bf16 %v2162_v26, %v2161_v62  ;;  %v10635_v31 = vld [vmem:[#allocation49_spill] sm:$0xff]  ;;  %v10636_v26 = vld [vmem:[#allocation40_spill] sm:$0xff] }
 0x2ae   :  { %v8401_v39 = vadd.f32 %v8311_v15, %v2035_v28  ;;  %v2038_v37 = vmul.f32 %v8306_v9, %v10628_v44  ;;  %v8405_v47 = vpack.c.bf16 %v2164_v60, %v2163_v4  ;;  %v8407_v11 = vpack.c.bf16 %v2166_v0, %v2165_v46  ;;  %v10637_v0 = vld [vmem:[#allocation82_spill] sm:$0xff]  ;;  %v10638_v44 = vld [vmem:[#allocation29_spill] sm:$0xff] }
 0x2af   :  { %v2167_v59 = vmax.f32 %v8388_v50, 0.0  ;;  %v2042_v29 = vmul.f32 %v8306_v9, %v10629_v34  ;;  %v2168_v16 = vmax.f32 %v8391_v3, 0.0  ;;  %v2169_v18 = vmax.f32 %v8394_v23, 0.0 }
 0x2b0   :  { %v8415_v54 = vadd.f32 %v8311_v15, %v2036_v27  ;;  %v2039_v33 = vmul.f32 %v8306_v9, %v10630_v19  ;;  %v8420_v57 = vadd.f32 %v8311_v15, %v2037_v35  ;;  %v8424_v14 = vmul.f32 %v8306_v9, %v10631_v6 }
 0x2b1   :  { %v2043_v25 = vmul.f32 %v8306_v9, %v10632_v55  ;;  %v2113_v61 = vadd.f32 %v8311_v15, %v2042_v29  ;;  %v2170_v38 = vmax.f32 %v8401_v39, 0.0  ;;  %v8431_v13 = vadd.f32 %v8311_v15, %v2038_v37 }
 0x2b2   :  { %3611 = vmatmul.mubr.bf16.gmra.mrb[8].mxu0 %v2214_v56  ;;  %v2044_v5 = vmul.f32 %v8306_v9, %v10633_v30  ;;  %v2045_v32 = vmul.f32 %v8306_v9, %v10634_v22  ;;  %v2046_v62 = vmul.f32 %v8306_v9, %v10635_v31  ;;  %v2047_v4 = vmul.f32 %v8306_v9, %v10636_v26  ;;  %v10639_v30 = vld [vmem:[#allocation74_spill] sm:$0xff] }
 0x2b3   :  { %3614 = vmatprep.mubr.bf16.mxu0 %v2215_v53  ;;  %v2114_v56 = vadd.f32 %v8311_v15, %v2043_v25  ;;  %v2177_v2 = vmax.f32 %v2113_v61, 0.0  ;;  %v8443_v28 = vadd.f32 %v8311_v15, %v2039_v33  ;;  %v2048_v53 = vmul.f32 %v8306_v9, %v10637_v0 }
 0x2b4   :  { %v2115_v60 = vadd.f32 %v8311_v15, %v2044_v5  ;;  %v2116_v46 = vadd.f32 %v8311_v15, %v2045_v32  ;;  %v2117_v48 = vadd.f32 %v8311_v15, %v2046_v62  ;;  %v2118_v35 = vadd.f32 %v8311_v15, %v2047_v4  ;;  %v10640_v32 = vld [vmem:[#allocation25_spill] sm:$0xff] }
 0x2b5   :  { %v2178_v27 = vmax.f32 %v2114_v56, 0.0  ;;  %v2049_v37 = vmul.f32 %v8306_v9, %v10638_v44  ;;  %v2119_v19 = vadd.f32 %v8311_v15, %v2048_v53  ;;  %v2050_v33 = vmul.f32 %v8306_v9, %v8232_v52 }
 0x2b6   :  { %v2179_v34 = vmax.f32 %v2115_v60, 0.0  ;;  %v2180_v29 = vmax.f32 %v2116_v46, 0.0  ;;  %v2181_v55 = vmax.f32 %v2117_v48, 0.0  ;;  %v2182_v25 = vmax.f32 %v2118_v35, 0.0 }
 0x2b7   :  { %v2225_v6 = vpack.c.bf16 %v2178_v27, %v2177_v2  ;;  %v2120_v61 = vadd.f32 %v8311_v15, %v2049_v37  ;;  %v2041_v5 = vmul.f32 %v8306_v9, %v10639_v30  ;;  %v2051_v56 = vmul.f32 %v8306_v9, %v10640_v32  ;;  %v10641_v32 = vld [vmem:[#allocation76_spill] sm:$0xff] }
 0x2b8   :  { %v2226_v22 = vpack.c.bf16 %v2180_v29, %v2179_v34  ;;  %v2121_v31 = vadd.f32 %v8311_v15, %v2050_v33  ;;  %v2227_v62 = vpack.c.bf16 %v2182_v25, %v2181_v55  ;;  %v2183_v26 = vmax.f32 %v2119_v19, 0.0 }
 0x2b9   :  { %3634 = vmatprep.mubr.bf16.mxu1 %v2225_v6  ;;  %v2052_v52 = vmul.f32 %v8306_v9, %v8244_v21  ;;  %v2122_v2 = vadd.f32 %v8311_v15, %v2051_v56  ;;  %v2054_v4 = vmul.f32 %v8306_v9, %v8256_v63  ;;  %v2055_v60 = vmul.f32 %v8306_v9, %v7933_v20 }
 0x2ba   :  { %3615 = vmatmul.mubr.bf16.gmra.mrb[12].mxu0 %v2216_v40  ;;  %v2053_v40 = vmul.f32 %v8306_v9, %v8250_v1  ;;  %3635 = vmatmul.mubr.bf16.vlgmr.msra.gmra.mrb[0].mxu1 %v2226_v22  ;;  %v2185_v46 = vmax.f32 %v2121_v31, 0.0  ;;  %v2056_v21 = vmul.f32 %v8306_v9, %v7937_v58  ;;  %v2057_v63 = vmul.f32 %v8306_v9, %v7941_v49  ;;  %v10642_v31 = vld [vmem:[#allocation38_spill] sm:$0xff] }
 0x2bb   :  { %3618 = vmatprep.mubr.bf16.mxu0 %v2217_v45  ;;  %v2184_v45 = vmax.f32 %v2120_v61, 0.0  ;;  %3638 = vmatprep.mubr.bf16.mxu1 %v2227_v62  ;;  %v2123_v0 = vadd.f32 %v8311_v15, %v2052_v52  ;;  %v2186_v1 = vmax.f32 %v2122_v2, 0.0  ;;  %v2125_v27 = vadd.f32 %v8311_v15, %v2054_v4  ;;  %v10645_v2 = vld [vmem:[#allocation6_spill] sm:$0xff] }
 0x2bc   :  { %v2124_v53 = vadd.f32 %v8311_v15, %v2053_v40  ;;  %v2126_v48 = vadd.f32 %v8311_v15, %v2055_v60  ;;  %v2171_v35 = vmax.f32 %v8415_v54, 0.0  ;;  %v2172_v20 = vmax.f32 %v8420_v57, 0.0 }
 0x2bd   :  { %v2173_v44 = vmax.f32 %v8431_v13, 0.0  ;;  %v2058_v37 = vmul.f32 %v8306_v9, %v7945_v17  ;;  %v2174_v34 = vmax.f32 %v8443_v28, 0.0  ;;  %v2228_v58 = vpack.c.bf16 %v2184_v45, %v2183_v26  ;;  %v10643_v26 = vld [vmem:[#allocation73_spill] sm:$0xff] }
 0x2be   :  { %v2187_v29 = vmax.f32 %v2123_v0, 0.0  ;;  %v2188_v19 = vmax.f32 %v2124_v53, 0.0  ;;  %v2229_v33 = vpack.c.bf16 %v2186_v1, %v2185_v46  ;;  %v2189_v6 = vmax.f32 %v2125_v27, 0.0 }
 0x2bf   :  { %v2190_v55 = vmax.f32 %v2126_v48, 0.0  ;;  %v2127_v49 = vadd.f32 %v8311_v15, %v2056_v21  ;;  %v2220_v54 = vpack.c.bf16 %v2168_v16, %v2167_v59  ;;  %v2128_v17 = vadd.f32 %v8311_v15, %v2057_v63  ;;  %v10646_v63 = vld [vmem:[#allocation79_spill] sm:$0xff] }
 0x2c0   :  { %v2221_v57 = vpack.c.bf16 %v2170_v38, %v2169_v18  ;;  %v2059_v13 = vmul.f32 %v8306_v9, %v7949_v51  ;;  %v2222_v50 = vpack.c.bf16 %v2172_v20, %v2171_v35  ;;  %v2223_v28 = vpack.c.bf16 %v2174_v34, %v2173_v44 }
 0x2c1   :  { %v8505_v3 = vadd.f32 %v8311_v15, %v2041_v5  ;;  %v2064_v23 = vmul.f32 %v8306_v9, %v7965_v36  ;;  %v2230_v39 = vpack.c.bf16 %v2188_v19, %v2187_v29  ;;  %v2231_v59 = vpack.c.bf16 %v2190_v55, %v2189_v6 }
 0x2c2   :  { %3619 = vmatmul.mubr.bf16.gmra.mrb[16].mxu0 %v8405_v47  ;;  %v8499_v47 = vadd.f32 %v8311_v15, %v8424_v14  ;;  %3639 = vmatmul.mubr.bf16.gmra.mrb[4].mxu1 %v2228_v58  ;;  %v2191_v16 = vmax.f32 %v2127_v49, 0.0  ;;  %v2065_v18 = vmul.f32 %v8306_v9, %v7968_v8  ;;  %v2192_v14 = vmax.f32 %v2128_v17, 0.0 }
 0x2c3   :  { %3622 = vmatprep.mubr.bf16.mxu0 %v8407_v11  ;;  %v2129_v11 = vadd.f32 %v8311_v15, %v2058_v37  ;;  %3642 = vmatprep.mubr.bf16.mxu1 %v2229_v33  ;;  %v2060_v51 = vmul.f32 %v8306_v9, %v7953_v10  ;;  %v2135_v38 = vadd.f32 %v8311_v15, %v2064_v23 }
 0x2c4   :  { %v2066_v25 = vmul.f32 %v8306_v9, %v7971_v7  ;;  %v2130_v61 = vadd.f32 %v8311_v15, %v2059_v13  ;;  %v2061_v36 = vmul.f32 %v8306_v9, %v7956_v24  ;;  %v2136_v5 = vadd.f32 %v8311_v15, %v2065_v18  ;;  %v10644_v24 = vld [vmem:[#allocation24_spill] sm:$0xff] }
 0x2c5   :  { %v2193_v30 = vmax.f32 %v2129_v11, 0.0  ;;  %v2062_v8 = vmul.f32 %v8306_v9, %v7959_v42  ;;  %v2199_v22 = vmax.f32 %v2135_v38, 0.0  ;;  %v2067_v10 = vmul.f32 %v8306_v9, %v10641_v32 }
 0x2c6   :  { %v2137_v56 = vadd.f32 %v8311_v15, %v2066_v25  ;;  %v2063_v7 = vmul.f32 %v8306_v9, %v10642_v31  ;;  %v2200_v62 = vmax.f32 %v2136_v5, 0.0  ;;  %v2068_v52 = vmul.f32 %v8306_v9, %v10643_v26 }
 0x2c7   :  { %v2069_v40 = vmul.f32 %v8306_v9, %v10644_v24  ;;  %v2138_v42 = vadd.f32 %v8311_v15, %v2067_v10  ;;  %v2070_v4 = vmul.f32 %v8306_v9, %v10645_v2  ;;  %v2071_v60 = vmul.f32 %v8306_v9, %v7986_v43 }
 0x2c8   :  { %v2201_v45 = vmax.f32 %v2137_v56, 0.0  ;;  %v2236_v46 = vpack.c.bf16 %v2200_v62, %v2199_v22  ;;  %v2139_v0 = vadd.f32 %v8311_v15, %v2068_v52  ;;  %v2072_v21 = vmul.f32 %v8306_v9, %v7989_v41 }
 0x2c9   :  { %v2140_v53 = vadd.f32 %v8311_v15, %v2069_v40  ;;  %v2202_v1 = vmax.f32 %v2138_v42, 0.0  ;;  %v2141_v27 = vadd.f32 %v8311_v15, %v2070_v4  ;;  %v2142_v48 = vadd.f32 %v8311_v15, %v2071_v60 }
 0x2ca   :  { %3623 = vmatmul.mubr.bf16.gmra.mrb[20].mxu0 %v2220_v54  ;;  %3643 = vmatmul.mubr.bf16.gmra.mrb[8].mxu1 %v2230_v39  ;;  %v2073_v35 = vmul.f32 %v8306_v9, %v10646_v63  ;;  %v2194_v20 = vmax.f32 %v2130_v61, 0.0  ;;  %v2203_v43 = vmax.f32 %v2139_v0, 0.0  ;;  %v2143_v37 = vadd.f32 %v8311_v15, %v2072_v21 }
 0x2cb   :  { %3626 = vmatprep.mubr.bf16.mxu0 %v2221_v57  ;;  %3646 = vmatprep.mubr.bf16.mxu1 %v2231_v59  ;;  %v2204_v44 = vmax.f32 %v2140_v53, 0.0  ;;  %v2237_v34 = vpack.c.bf16 %v2202_v1, %v2201_v45  ;;  %v2205_v58 = vmax.f32 %v2141_v27, 0.0  ;;  %v2206_v29 = vmax.f32 %v2142_v48, 0.0 }
 0x2cc   :  { %v2144_v41 = vadd.f32 %v8311_v15, %v2073_v35  ;;  %v2175_v19 = vmax.f32 %v8499_v47, 0.0  ;;  %v2232_v33 = vpack.c.bf16 %v2192_v14, %v2191_v16  ;;  %v2207_v55 = vmax.f32 %v2143_v37, 0.0 }
 0x2cd   :  { %v2238_v6 = vpack.c.bf16 %v2204_v44, %v2203_v43  ;;  %v2131_v49 = vadd.f32 %v8311_v15, %v2060_v51  ;;  %v2132_v9 = vadd.f32 %v8311_v15, %v2061_v36  ;;  %v2239_v54 = vpack.c.bf16 %v2206_v29, %v2205_v58 }
 0x2ce   :  { %v2208_v17 = vmax.f32 %v2144_v41, 0.0  ;;  %v2176_v57 = vmax.f32 %v8505_v3, 0.0  ;;  %v2233_v13 = vpack.c.bf16 %v2194_v20, %v2193_v30  ;;  %v2133_v11 = vadd.f32 %v8311_v15, %v2062_v8 }
 0x2cf   :  { %v2134_v23 = vadd.f32 %v8311_v15, %v2063_v7  ;;  %v2195_v47 = vmax.f32 %v2131_v49, 0.0  ;;  %v2196_v59 = vmax.f32 %v2132_v9, 0.0 }
 0x2d0   :  { %v2240_v39 = vpack.c.bf16 %v2208_v17, %v2207_v55  ;;  %v2224_v16 = vpack.c.bf16 %v2176_v57, %v2175_v19  ;;  %v2197_v18 = vmax.f32 %v2133_v11, 0.0 }
 0x2d1   :  { %v2198_v14 = vmax.f32 %v2134_v23, 0.0  ;;  %v2234_v51 = vpack.c.bf16 %v2196_v59, %v2195_v47 }
 0x2d2   :  { %3627 = vmatmul.mubr.bf16.gmra.mrb[24].mxu0 %v2222_v50  ;;  %3647 = vmatmul.mubr.bf16.gmra.mrb[12].mxu1 %v2232_v33 }
 0x2d3   :  { %3630 = vmatprep.mubr.bf16.mxu0 %v2223_v28  ;;  %3650 = vmatprep.mubr.bf16.mxu1 %v2233_v13  ;;  %v2235_v38 = vpack.c.bf16 %v2198_v14, %v2197_v18 }
 0x2da   :  { %3631 = vmatmul.mubr.bf16.gmra.mrb[28].mxu0 %v2224_v16  ;;  %3651 = vmatmul.mubr.bf16.gmra.mrb[16].mxu1 %v2234_v51 }
 0x2db   :  { %3654 = vmatprep.mubr.bf16.mxu1 %v2235_v38 }
 0x2e2   :  { %3655 = vmatmul.mubr.bf16.gmra.mrb[20].mxu1 %v2236_v46 }
 0x2e3   :  { %3658 = vmatprep.mubr.bf16.mxu1 %v2237_v34 }
 0x2ea   :  { %3659 = vmatmul.mubr.bf16.gmra.mrb[24].mxu1 %v2238_v6 }
 0x2eb   :  { %3662 = vmatprep.mubr.bf16.mxu1 %v2239_v54 }
 0x2f2   :  { %3663 = vmatmul.mubr.bf16.gmra.mrb[28].mxu1 %v2240_v39 }
 0x375   :  { %v8552_v15 = vpop.f32.mrb[0].mxu0 }
 0x376   :  { %v8554_v50 = vpop.f32.mrb[1].mxu0 }
 0x377   :  { %v8556_v28 = vpop.f32.mrb[2].mxu0 }
 0x378   :  { %v8558_v3 = vpop.f32.mrb[3].mxu0 }
 0x379   :  { %v2594_v25 = vadd.f32 %v8558_v3, %v8554_v50 }
 0x37b   :  { %v2595_v61 = vadd.f32 %v8552_v15, %v2594_v25 }
 0x37d   :  { %v8563_v30 = vpop.f32.mrb[4].mxu0  ;;  %v2596_v36 = vadd.f32 %v8556_v28, %v2595_v61 }
 0x37e   :  { %v8566_v5 = vpop.f32.mrb[5].mxu0 }
 0x37f   :  { %v2597_v8 = vadd.f32 %v2596_v36, %v8566_v5  ;;  %v8569_v22 = vpop.f32.mrb[6].mxu0 }
 0x380   :  { %v8571_v32 = vpop.f32.mrb[7].mxu0 }
 0x381   :  { %v2598_v10 = vadd.f32 %v2597_v8, %v8571_v32 }
 0x383   :  { %v2599_v56 = vadd.f32 %v8563_v30, %v2598_v10 }
 0x385   :  { %v8575_v31 = vpop.f32.mrb[8].mxu0  ;;  %v2600_v7 = vadd.f32 %v8569_v22, %v2599_v56 }
 0x386   :  { %v8578_v62 = vpop.f32.mrb[9].mxu0 }
 0x387   :  { %v2601_v26 = vadd.f32 %v2600_v7, %v8578_v62  ;;  %v8581_v52 = vpop.f32.mrb[10].mxu0 }
 0x388   :  { %v8583_v24 = vpop.f32.mrb[11].mxu0 }
 0x389   :  { %v2602_v40 = vadd.f32 %v2601_v26, %v8583_v24 }
 0x38b   :  { %v2603_v42 = vadd.f32 %v8575_v31, %v2602_v40 }
 0x38d   :  { %v8587_v45 = vpop.f32.mrb[12].mxu0  ;;  %v2604_v2 = vadd.f32 %v8581_v52, %v2603_v42  ;;  %v8597_v53 = vpop.f32.mrb[0].mxu1 }
 0x38e   :  { %v8590_v4 = vpop.f32.mrb[13].mxu0  ;;  %10647 = vst [vmem:[#allocation21_spill] sm:$0xff] %v8597_v53  ;;  %v8600_v1 = vpop.f32.mrb[1].mxu1 }
 0x38f   :  { %v2605_v60 = vadd.f32 %v2604_v2, %v8590_v4  ;;  %v8593_v46 = vpop.f32.mrb[14].mxu0  ;;  %10648 = vst [vmem:[#allocation83_spill] sm:$0xff] %v8600_v1  ;;  %v8602_v27 = vpop.f32.mrb[2].mxu1 }
 0x390   :  { %v8595_v0 = vpop.f32.mrb[15].mxu0  ;;  %v8605_v63 = vpop.f32.mrb[3].mxu1 }
 0x391   :  { %v2606_v21 = vadd.f32 %v2605_v60, %v8595_v0  ;;  %10649 = vst [vmem:[#allocation61_spill] sm:$0xff] %v8605_v63 }
 0x393   :  { %v2607_v48 = vadd.f32 %v8587_v45, %v2606_v21 }
 0x395   :  { %v8607_v35 = vpop.f32.mrb[16].mxu0  ;;  %v2608_v20 = vadd.f32 %v8593_v46, %v2607_v48  ;;  %v8617_v58 = vpop.f32.mrb[4].mxu1 }
 0x396   :  { %v8610_v43 = vpop.f32.mrb[17].mxu0  ;;  %10650 = vst [vmem:[#allocation42_spill] sm:$0xff] %v8617_v58  ;;  %v8620_v41 = vpop.f32.mrb[5].mxu1 }
 0x397   :  { %v2609_v44 = vadd.f32 %v2608_v20, %v8610_v43  ;;  %v8613_v37 = vpop.f32.mrb[18].mxu0  ;;  %10651 = vst [vmem:[#allocation78_spill] sm:$0xff] %v8620_v41  ;;  %v8622_v19 = vpop.f32.mrb[6].mxu1 }
 0x398   :  { %v8615_v34 = vpop.f32.mrb[19].mxu0  ;;  %10652 = vst [vmem:[#allocation8_spill] sm:$0xff] %v8622_v19  ;;  %v8625_v6 = vpop.f32.mrb[7].mxu1 }
 0x399   :  { %v2610_v29 = vadd.f32 %v2609_v44, %v8615_v34  ;;  %10653 = vst [vmem:[#allocation31_spill] sm:$0xff] %v8625_v6 }
 0x39b   :  { %v2611_v33 = vadd.f32 %v8607_v35, %v2610_v29 }
 0x39d   :  { %v8627_v55 = vpop.f32.mrb[20].mxu0  ;;  %v2612_v49 = vadd.f32 %v8613_v37, %v2611_v33  ;;  %v8637_v13 = vpop.f32.mrb[8].mxu1 }
 0x39e   :  { %v8630_v9 = vpop.f32.mrb[21].mxu0  ;;  %10654 = vst [vmem:[#allocation84_spill] sm:$0xff] %v8637_v13  ;;  %v8640_v23 = vpop.f32.mrb[9].mxu1 }
 0x39f   :  { %v2613_v54 = vadd.f32 %v2612_v49, %v8630_v9  ;;  %v8633_v17 = vpop.f32.mrb[22].mxu0  ;;  %10655 = vst [vmem:[#allocation41_spill] sm:$0xff] %v8640_v23  ;;  %v8642_v39 = vpop.f32.mrb[10].mxu1 }
 0x3a0   :  { %v8635_v57 = vpop.f32.mrb[23].mxu0  ;;  %v8645_v59 = vpop.f32.mrb[11].mxu1 }
 0x3a1   :  { %v2614_v11 = vadd.f32 %v2613_v54, %v8635_v57  ;;  %10656 = vst [vmem:[#allocation69_spill] sm:$0xff] %v8645_v59 }
 0x3a3   :  { %v2615_v47 = vadd.f32 %v8627_v55, %v2614_v11 }
 0x3a5   :  { %v8647_v16 = vpop.f32.mrb[24].mxu0  ;;  %v2616_v18 = vadd.f32 %v8633_v17, %v2615_v47  ;;  %v8657_v61 = vpop.f32.mrb[12].mxu1 }
 0x3a6   :  { %v8650_v14 = vpop.f32.mrb[25].mxu0  ;;  %v8660_v8 = vpop.f32.mrb[13].mxu1 }
 0x3a7   :  { %v2617_v51 = vadd.f32 %v2616_v18, %v8650_v14  ;;  %v8653_v38 = vpop.f32.mrb[26].mxu0  ;;  %v8662_v10 = vpop.f32.mrb[14].mxu1 }
 0x3a8   :  { %v8655_v25 = vpop.f32.mrb[27].mxu0  ;;  %v8665_v7 = vpop.f32.mrb[15].mxu1 }
 0x3a9   :  { %v2618_v36 = vadd.f32 %v2617_v51, %v8655_v25 }
 0x3ab   :  { %v2619_v56 = vadd.f32 %v8647_v16, %v2618_v36 }
 0x3ad   :  { %v8667_v26 = vpop.f32.mrb[28].mxu0  ;;  %v2620_v40 = vadd.f32 %v8653_v38, %v2619_v56  ;;  %v8677_v48 = vpop.f32.mrb[16].mxu1 }
 0x3ae   :  { %v8670_v42 = vpop.f32.mrb[29].mxu0  ;;  %v8680_v44 = vpop.f32.mrb[17].mxu1 }
 0x3af   :  { %v2621_v2 = vadd.f32 %v2620_v40, %v8670_v42  ;;  %v8673_v60 = vpop.f32.mrb[30].mxu0  ;;  %v8682_v29 = vpop.f32.mrb[18].mxu1 }
 0x3b0   :  { %10657 = vst [vmem:[#allocation17_spill] sm:$0xff] %v8673_v60  ;;  %v8675_v21 = vpop.f32.mrb[31].mxu0  ;;  %v8685_v49 = vpop.f32.mrb[19].mxu1 }
 0x3b1   :  { %v2622_v20 = vadd.f32 %v2621_v2, %v8675_v21 }
 0x3b3   :  { %v2623_v33 = vadd.f32 %v8667_v26, %v2622_v20 }
 0x3b5   :  { %v2624_v54 = vadd.f32 %v8673_v60, %v2623_v33  ;;  %v8689_v47 = vpop.f32.mrb[20].mxu1 }
 0x3b6   :  { %10658 = vst [vmem:[#allocation22_spill] sm:$0xff] %v8689_v47  ;;  %v8692_v51 = vpop.f32.mrb[21].mxu1 }
 0x3b7   :  { %v2625_v11 = vadd.f32 %v2624_v54, %v8600_v1  ;;  %v8694_v36 = vpop.f32.mrb[22].mxu1 }
 0x3b8   :  { %10659 = vst [vmem:[#allocation30_spill] sm:$0xff] %v8694_v36  ;;  %v8697_v40 = vpop.f32.mrb[23].mxu1 }
 0x3b9   :  { %v2626_v18 = vadd.f32 %v2625_v11, %v8605_v63  ;;  %10660 = vst [vmem:[#allocation59_spill] sm:$0xff] %v8697_v40 }
 0x3bb   :  { %v2627_v56 = vadd.f32 %v8597_v53, %v2626_v18 }
 0x3bd   :  { %v2628_v2 = vadd.f32 %v8602_v27, %v2627_v56  ;;  %v8701_v12 = vpop.f32.mrb[24].mxu1 }
 0x3be   :  { %v8704_v54 = vpop.f32.mrb[25].mxu1 }
 0x3bf   :  { %v2629_v20 = vadd.f32 %v2628_v2, %v8620_v41  ;;  %10661 = vst [vmem:[#allocation68_spill] sm:$0xff] %v8704_v54  ;;  %v8706_v1 = vpop.f32.mrb[26].mxu1 }
 0x3c0   :  { %v8709_v63 = vpop.f32.mrb[27].mxu1 }
 0x3c1   :  { %v2630_v33 = vadd.f32 %v2629_v20, %v8625_v6 }
 0x3c3   :  { %v2631_v11 = vadd.f32 %v8617_v58, %v2630_v33 }
 0x3c5   :  { %v2632_v18 = vadd.f32 %v8622_v19, %v2631_v11  ;;  %v8713_v60 = vpop.f32.mrb[28].mxu1 }
 0x3c6   :  { %v8716_v2 = vpop.f32.mrb[29].mxu1 }
 0x3c7   :  { %v2633_v53 = vadd.f32 %v2632_v18, %v8640_v23  ;;  %v8718_v41 = vpop.f32.mrb[30].mxu1 }
 0x3c8   :  { %v8721_v6 = vpop.f32.mrb[31].mxu1 }
 0x3c9   :  { %v2634_v56 = vadd.f32 %v2633_v53, %v8645_v59 }
 0x3cb   :  { %v2635_v20 = vadd.f32 %v8637_v13, %v2634_v56 }
 0x3cd   :  { %v2636_v33 = vadd.f32 %v8642_v39, %v2635_v20 }
 0x3cf   :  { %v2637_v58 = vadd.f32 %v2636_v33, %v8660_v8 }
 0x3d1   :  { %v2638_v11 = vadd.f32 %v2637_v58, %v8665_v7 }
 0x3d3   :  { %v2639_v18 = vadd.f32 %v8657_v61, %v2638_v11 }
 0x3d5   :  { %v2640_v23 = vadd.f32 %v8662_v10, %v2639_v18 }
 0x3d7   :  { %v2641_v53 = vadd.f32 %v2640_v23, %v8680_v44 }
 0x3d9   :  { %v2642_v59 = vadd.f32 %v2641_v53, %v8685_v49 }
 0x3db   :  { %v2643_v19 = vadd.f32 %v8677_v48, %v2642_v59 }
 0x3dd   :  { %v2644_v56 = vadd.f32 %v8682_v29, %v2643_v19 }
 0x3df   :  { %v2645_v13 = vadd.f32 %v2644_v56, %v8692_v51 }
 0x3e1   :  { %v2646_v20 = vadd.f32 %v2645_v13, %v8697_v40 }
 0x3e3   :  { %v2647_v33 = vadd.f32 %v8689_v47, %v2646_v20 }
 0x3e5   :  { %v2648_v58 = vadd.f32 %v8694_v36, %v2647_v33 }
 0x3e7   :  { %v2649_v11 = vadd.f32 %v2648_v58, %v8704_v54 }
 0x3e9   :  { %v2650_v18 = vadd.f32 %v2649_v11, %v8709_v63 }
 0x3eb   :  { %v2651_v23 = vadd.f32 %v8701_v12, %v2650_v18 }
 0x3ed   :  { %v2652_v53 = vadd.f32 %v8706_v1, %v2651_v23 }
 0x3ef   :  { %v2653_v59 = vadd.f32 %v2652_v53, %v8716_v2  ;;  %v10668_v53 = vld [vmem:[#allocation83_spill] sm:$0xff] }
 0x3f1   :  { %v2654_v19 = vadd.f32 %v2653_v59, %v8721_v6  ;;  %v10669_v59 = vld [vmem:[#allocation61_spill] sm:$0xff] }
 0x3f3   :  { %v2655_v56 = vadd.f32 %v8713_v60, %v2654_v19  ;;  %v10670_v19 = vld [vmem:[#allocation21_spill] sm:$0xff] }
 0x3f5   :  { %v2656_v13 = vadd.f32 %v8718_v41, %v2655_v56  ;;  %v10672_v56 = vld [vmem:[#allocation78_spill] sm:$0xff] }
 0x3f7   :  { %v2657_v40 = vrot.slane %v2656_v13, 4 }
 0x3f9   :  { %v2658_v20 = vadd.f32 %v2657_v40, %v2656_v13 }
 0x3fb   :  { %v2659_v47 = vrot.slane %v2658_v20, 2 }
 0x3fd   :  { %v2660_v33 = vadd.f32 %v2659_v47, %v2658_v20  ;;  %v10674_v20 = vld [vmem:[#allocation31_spill] sm:$0xff] }
 0x3ff   :  { %v2661_v36 = vrot.slane %v2660_v33, 1 }
 0x401   :  { %v2662_v58 = vadd.f32 %v2661_v36, %v2660_v33  ;;  %v10666_v36 = vld [vmem:[#allocation17_spill] sm:$0xff] }
 0x403   :  { %v8744_v54 = vmul.f32 0.001953125, %v2662_v58  ;;  %v10675_v58 = vld [vmem:[#allocation42_spill] sm:$0xff] }
 0x405   :  { %v8748_v11 = vsub.f32 %v8554_v50, %v8744_v54  ;;  %v8752_v18 = vsub.f32 %v8558_v3, %v8744_v54  ;;  %v8756_v23 = vsub.f32 %v8552_v15, %v8744_v54  ;;  %v8760_v40 = vsub.f32 %v8556_v28, %v8744_v54 }
 0x406   :  { %v8764_v47 = vsub.f32 %v8566_v5, %v8744_v54  ;;  %v8768_v50 = vsub.f32 %v8571_v32, %v8744_v54  ;;  %v8772_v3 = vsub.f32 %v8563_v30, %v8744_v54  ;;  %v8776_v15 = vsub.f32 %v8569_v22, %v8744_v54 }
 0x407   :  { %10662 = vst [vmem:[#allocation64_spill] sm:$0xff] %v8748_v11  ;;  %10663 = vst [vmem:[#allocation51_spill] sm:$0xff] %v8752_v18  ;;  %v8780_v28 = vsub.f32 %v8578_v62, %v8744_v54  ;;  %v8784_v5 = vsub.f32 %v8583_v24, %v8744_v54  ;;  %v8788_v32 = vsub.f32 %v8575_v31, %v8744_v54 }
 0x408   :  { %10664 = vst [vmem:[#allocation26_spill] sm:$0xff] %v8756_v23  ;;  %v8792_v30 = vsub.f32 %v8581_v52, %v8744_v54  ;;  %v8796_v22 = vsub.f32 %v8590_v4, %v8744_v54  ;;  %v8800_v62 = vsub.f32 %v8595_v0, %v8744_v54  ;;  %v8804_v24 = vsub.f32 %v8587_v45, %v8744_v54 }
 0x409   :  { %v8808_v31 = vsub.f32 %v8593_v46, %v8744_v54  ;;  %v8812_v52 = vsub.f32 %v8610_v43, %v8744_v54  ;;  %v8816_v4 = vsub.f32 %v8615_v34, %v8744_v54  ;;  %v8820_v0 = vsub.f32 %v8607_v35, %v8744_v54 }
 0x40a   :  { %v8824_v45 = vsub.f32 %v8613_v37, %v8744_v54  ;;  %v8828_v46 = vsub.f32 %v8630_v9, %v8744_v54  ;;  %v8832_v43 = vsub.f32 %v8635_v57, %v8744_v54  ;;  %v8836_v34 = vsub.f32 %v8627_v55, %v8744_v54 }
 0x40b   :  { %v8840_v35 = vsub.f32 %v8633_v17, %v8744_v54  ;;  %v8844_v37 = vsub.f32 %v8650_v14, %v8744_v54  ;;  %v8848_v9 = vsub.f32 %v8655_v25, %v8744_v54  ;;  %v8852_v57 = vsub.f32 %v8647_v16, %v8744_v54 }
 0x40c   :  { %v8856_v55 = vsub.f32 %v8653_v38, %v8744_v54  ;;  %v8860_v17 = vsub.f32 %v8670_v42, %v8744_v54  ;;  %v8864_v14 = vsub.f32 %v8675_v21, %v8744_v54  ;;  %v8868_v25 = vsub.f32 %v8667_v26, %v8744_v54 }
 0x40d   :  { %v8872_v16 = vsub.f32 %v10666_v36, %v8744_v54  ;;  %v8876_v38 = vsub.f32 %v10668_v53, %v8744_v54  ;;  %v8880_v42 = vsub.f32 %v10669_v59, %v8744_v54  ;;  %v8884_v21 = vsub.f32 %v10670_v19, %v8744_v54  ;;  %v10676_v53 = vld [vmem:[#allocation8_spill] sm:$0xff]  ;;  %v10677_v19 = vld [vmem:[#allocation41_spill] sm:$0xff] }
 0x40e   :  { %10665 = vst [vmem:[#allocation55_spill] sm:$0xff] %v8868_v25  ;;  %v8888_v26 = vsub.f32 %v8602_v27, %v8744_v54  ;;  %v8892_v13 = vsub.f32 %v10672_v56, %v8744_v54  ;;  %v8896_v33 = vsub.f32 %v10674_v20, %v8744_v54  ;;  %v8900_v36 = vsub.f32 %v10675_v58, %v8744_v54 }
 0x40f   :  { %10667 = vst [vmem:[#allocation44_spill] sm:$0xff] %v8872_v16  ;;  %v8904_v59 = vsub.f32 %v10676_v53, %v8744_v54  ;;  %v8908_v27 = vsub.f32 %v10677_v19, %v8744_v54  ;;  %v8920_v58 = vsub.f32 %v8642_v39, %v8744_v54  ;;  %v8924_v53 = vsub.f32 %v8660_v8, %v8744_v54 }
 0x410   :  { %10671 = vst [vmem:[#allocation62_spill] sm:$0xff] %v8888_v26  ;;  %10673 = vst [vmem:[#allocation35_spill] sm:$0xff] %v8892_v13  ;;  %v10678_v26 = vld [vmem:[#allocation69_spill] sm:$0xff]  ;;  %v10679_v13 = vld [vmem:[#allocation84_spill] sm:$0xff]  ;;  %v8928_v19 = vsub.f32 %v8665_v7, %v8744_v54  ;;  %v8940_v39 = vsub.f32 %v8680_v44, %v8744_v54  ;;  %v8944_v8 = vsub.f32 %v8685_v49, %v8744_v54 }
 0x411   :  { %v8912_v56 = vsub.f32 %v10678_v26, %v8744_v54  ;;  %v8916_v20 = vsub.f32 %v10679_v13, %v8744_v54  ;;  %10681 = vst [vmem:[#allocation43_spill] sm:$0xff] %v8920_v58  ;;  %10682 = vst [vmem:[#allocation32_spill] sm:$0xff] %v8924_v53  ;;  %v8932_v26 = vsub.f32 %v8657_v61, %v8744_v54 }
 0x412   :  { %10683 = vst [vmem:[#allocation34_spill] sm:$0xff] %v8928_v19  ;;  %v8936_v13 = vsub.f32 %v8662_v10, %v8744_v54  ;;  %10685 = vst [vmem:[#allocation77_spill] sm:$0xff] %v8940_v39  ;;  %v8948_v7 = vsub.f32 %v8677_v48, %v8744_v54  ;;  %v8952_v61 = vsub.f32 %v8682_v29, %v8744_v54  ;;  %v10690_v39 = vld [vmem:[#allocation22_spill] sm:$0xff] }
 0x413   :  { %10680 = vst [vmem:[#allocation56_spill] sm:$0xff] %v8916_v20  ;;  %10686 = vst [vmem:[#allocation85_spill] sm:$0xff] %v8944_v8  ;;  %v8956_v10 = vsub.f32 %v8692_v51, %v8744_v54  ;;  %v8964_v49 = vsub.f32 %v10690_v39, %v8744_v54  ;;  %v10692_v8 = vld [vmem:[#allocation30_spill] sm:$0xff]  ;;  %v8976_v51 = vsub.f32 %v8709_v63, %v8744_v54 }
 0x414   :  { %10684 = vst [vmem:[#allocation5_spill] sm:$0xff] %v8936_v13  ;;  %10687 = vst [vmem:[#allocation86_spill] sm:$0xff] %v8948_v7  ;;  %v10688_v13 = vld [vmem:[#allocation59_spill] sm:$0xff]  ;;  %v8968_v48 = vsub.f32 %v10692_v8, %v8744_v54  ;;  %v10694_v7 = vld [vmem:[#allocation68_spill] sm:$0xff]  ;;  %v8984_v39 = vsub.f32 %v8706_v1, %v8744_v54  ;;  %v8988_v8 = vsub.f32 %v8716_v2, %v8744_v54 }
 0x415   :  { %v8960_v44 = vsub.f32 %v10688_v13, %v8744_v54  ;;  %10691 = vst [vmem:[#allocation88_spill] sm:$0xff] %v8964_v49  ;;  %v8972_v29 = vsub.f32 %v10694_v7, %v8744_v54  ;;  %10696 = vst [vmem:[#allocation91_spill] sm:$0xff] %v8976_v51  ;;  %v8980_v13 = vsub.f32 %v8701_v12, %v8744_v54 }
 0x416   :  { %10693 = vst [vmem:[#allocation89_spill] sm:$0xff] %v8968_v48  ;;  %10698 = vst [vmem:[#allocation93_spill] sm:$0xff] %v8984_v39  ;;  %v8992_v7 = vsub.f32 %v8721_v6, %v8744_v54  ;;  %v8996_v63 = vsub.f32 %v8713_v60, %v8744_v54  ;;  %v9000_v12 = vsub.f32 %v8718_v41, %v8744_v54 }
 0x417   :  { %10689 = vst [vmem:[#allocation87_spill] sm:$0xff] %v8960_v44  ;;  %10695 = vst [vmem:[#allocation90_spill] sm:$0xff] %v8972_v29  ;;  %v2728_v1 = vmul.f32 %v8748_v11, %v8748_v11  ;;  %v2729_v39 = vmul.f32 %v8752_v18, %v8752_v18  ;;  %v2730_v2 = vmul.f32 %v8756_v23, %v8756_v23 }
 0x418   :  { %10697 = vst [vmem:[#allocation92_spill] sm:$0xff] %v8980_v13  ;;  %10699 = vst [vmem:[#allocation94_spill] sm:$0xff] %v8988_v8  ;;  %v2731_v6 = vmul.f32 %v8760_v40, %v8760_v40  ;;  %v2732_v60 = vmul.f32 %v8764_v47, %v8764_v47  ;;  %v2733_v41 = vmul.f32 %v8768_v50, %v8768_v50 }
 0x419   :  { %10700 = vst [vmem:[#allocation95_spill] sm:$0xff] %v8992_v7  ;;  %10701 = vst [vmem:[#allocation96_spill] sm:$0xff] %v8996_v63  ;;  %v2792_v8 = vadd.f32 %v2729_v39, %v2728_v1  ;;  %v2734_v11 = vmul.f32 %v8772_v3, %v8772_v3  ;;  %v2735_v23 = vmul.f32 %v8776_v15, %v8776_v15 }
 0x41a   :  { %v2736_v1 = vmul.f32 %v8780_v28, %v8780_v28 }
 0x41b   :  { %v2793_v7 = vadd.f32 %v2792_v8, %v2730_v2  ;;  %v2737_v2 = vmul.f32 %v8784_v5, %v8784_v5 }
 0x41d   :  { %v2794_v63 = vadd.f32 %v2793_v7, %v2731_v6  ;;  %v2738_v6 = vmul.f32 %v8788_v32, %v8788_v32 }
 0x41f   :  { %v2795_v54 = vadd.f32 %v2794_v63, %v2732_v60  ;;  %v2739_v60 = vmul.f32 %v8792_v30, %v8792_v30 }
 0x421   :  { %v2796_v18 = vadd.f32 %v2795_v54, %v2733_v41  ;;  %v2740_v54 = vmul.f32 %v8796_v22, %v8796_v22 }
 0x423   :  { %v2797_v39 = vadd.f32 %v2796_v18, %v2734_v11  ;;  %v2741_v18 = vmul.f32 %v8800_v62, %v8800_v62 }
 0x425   :  { %v2798_v8 = vadd.f32 %v2797_v39, %v2735_v23  ;;  %v2742_v39 = vmul.f32 %v8804_v24, %v8804_v24 }
 0x427   :  { %v2799_v7 = vadd.f32 %v2798_v8, %v2736_v1  ;;  %v2743_v8 = vmul.f32 %v8808_v31, %v8808_v31 }
 0x429   :  { %v2800_v63 = vadd.f32 %v2799_v7, %v2737_v2  ;;  %v2744_v7 = vmul.f32 %v8812_v52, %v8812_v52 }
 0x42b   :  { %v2801_v41 = vadd.f32 %v2800_v63, %v2738_v6  ;;  %v2745_v63 = vmul.f32 %v8816_v4, %v8816_v4 }
 0x42d   :  { %v2802_v11 = vadd.f32 %v2801_v41, %v2739_v60  ;;  %v2746_v41 = vmul.f32 %v8820_v0, %v8820_v0 }
 0x42f   :  { %v2803_v23 = vadd.f32 %v2802_v11, %v2740_v54  ;;  %v2747_v11 = vmul.f32 %v8824_v45, %v8824_v45 }
 0x431   :  { %v2804_v1 = vadd.f32 %v2803_v23, %v2741_v18  ;;  %v2748_v23 = vmul.f32 %v8828_v46, %v8828_v46 }
 0x433   :  { %v2805_v2 = vadd.f32 %v2804_v1, %v2742_v39  ;;  %v2749_v1 = vmul.f32 %v8832_v43, %v8832_v43 }
 0x435   :  { %v2806_v6 = vadd.f32 %v2805_v2, %v2743_v8  ;;  %v2750_v2 = vmul.f32 %v8836_v34, %v8836_v34 }
 0x437   :  { %v2807_v60 = vadd.f32 %v2806_v6, %v2744_v7  ;;  %v2751_v6 = vmul.f32 %v8840_v35, %v8840_v35 }
 0x439   :  { %v2808_v54 = vadd.f32 %v2807_v60, %v2745_v63  ;;  %v2752_v60 = vmul.f32 %v8844_v37, %v8844_v37 }
 0x43b   :  { %v2809_v18 = vadd.f32 %v2808_v54, %v2746_v41  ;;  %v2753_v54 = vmul.f32 %v8848_v9, %v8848_v9 }
 0x43d   :  { %v2810_v39 = vadd.f32 %v2809_v18, %v2747_v11  ;;  %v2754_v18 = vmul.f32 %v8852_v57, %v8852_v57 }
 0x43f   :  { %v2811_v8 = vadd.f32 %v2810_v39, %v2748_v23  ;;  %v2755_v39 = vmul.f32 %v8856_v55, %v8856_v55 }
 0x441   :  { %v2812_v7 = vadd.f32 %v2811_v8, %v2749_v1  ;;  %v2756_v8 = vmul.f32 %v8860_v17, %v8860_v17 }
 0x443   :  { %v2813_v63 = vadd.f32 %v2812_v7, %v2750_v2  ;;  %v2757_v7 = vmul.f32 %v8864_v14, %v8864_v14 }
 0x445   :  { %v2814_v41 = vadd.f32 %v2813_v63, %v2751_v6  ;;  %v2758_v63 = vmul.f32 %v8868_v25, %v8868_v25 }
 0x447   :  { %v2815_v11 = vadd.f32 %v2814_v41, %v2752_v60  ;;  %v2759_v41 = vmul.f32 %v8872_v16, %v8872_v16 }
 0x449   :  { %v2816_v23 = vadd.f32 %v2815_v11, %v2753_v54  ;;  %v2760_v11 = vmul.f32 %v8876_v38, %v8876_v38 }
 0x44b   :  { %v2817_v1 = vadd.f32 %v2816_v23, %v2754_v18  ;;  %v2761_v23 = vmul.f32 %v8880_v42, %v8880_v42 }
 0x44d   :  { %v2818_v2 = vadd.f32 %v2817_v1, %v2755_v39  ;;  %v2762_v1 = vmul.f32 %v8884_v21, %v8884_v21 }
 0x44f   :  { %v2819_v6 = vadd.f32 %v2818_v2, %v2756_v8  ;;  %v10702_v2 = vld [vmem:[#allocation62_spill] sm:$0xff] }
 0x450   :  { %v2763_v25 = vmul.f32 %v10702_v2, %v10702_v2 }
 0x451   :  { %v2820_v60 = vadd.f32 %v2819_v6, %v2757_v7  ;;  %v10703_v6 = vld [vmem:[#allocation35_spill] sm:$0xff] }
 0x452   :  { %v2764_v16 = vmul.f32 %v10703_v6, %v10703_v6 }
 0x453   :  { %v2821_v54 = vadd.f32 %v2820_v60, %v2758_v63  ;;  %v2765_v60 = vmul.f32 %v8896_v33, %v8896_v33 }
 0x455   :  { %v2822_v18 = vadd.f32 %v2821_v54, %v2759_v41  ;;  %v2766_v54 = vmul.f32 %v8900_v36, %v8900_v36 }
 0x457   :  { %v2823_v39 = vadd.f32 %v2822_v18, %v2760_v11  ;;  %v2767_v18 = vmul.f32 %v8904_v59, %v8904_v59 }
 0x459   :  { %v2824_v8 = vadd.f32 %v2823_v39, %v2761_v23  ;;  %v2768_v39 = vmul.f32 %v8908_v27, %v8908_v27 }
 0x45b   :  { %v2825_v7 = vadd.f32 %v2824_v8, %v2762_v1  ;;  %v2769_v8 = vmul.f32 %v8912_v56, %v8912_v56 }
 0x45d   :  { %v2826_v63 = vadd.f32 %v2825_v7, %v2763_v25  ;;  %v2770_v7 = vmul.f32 %v8916_v20, %v8916_v20 }
 0x45f   :  { %v2827_v41 = vadd.f32 %v2826_v63, %v2764_v16  ;;  %v2771_v63 = vmul.f32 %v8920_v58, %v8920_v58 }
 0x461   :  { %v2828_v11 = vadd.f32 %v2827_v41, %v2765_v60  ;;  %v2772_v41 = vmul.f32 %v8924_v53, %v8924_v53 }
 0x463   :  { %v2829_v23 = vadd.f32 %v2828_v11, %v2766_v54  ;;  %v2773_v11 = vmul.f32 %v8928_v19, %v8928_v19 }
 0x465   :  { %v2830_v1 = vadd.f32 %v2829_v23, %v2767_v18  ;;  %v2774_v23 = vmul.f32 %v8932_v26, %v8932_v26 }
 0x467   :  { %v2831_v25 = vadd.f32 %v2830_v1, %v2768_v39  ;;  %v10704_v1 = vld [vmem:[#allocation5_spill] sm:$0xff] }
 0x468   :  { %v2775_v20 = vmul.f32 %v10704_v1, %v10704_v1 }
 0x469   :  { %v2832_v16 = vadd.f32 %v2831_v25, %v2769_v8  ;;  %v10705_v25 = vld [vmem:[#allocation77_spill] sm:$0xff] }
 0x46a   :  { %v2776_v58 = vmul.f32 %v10705_v25, %v10705_v25 }
 0x46b   :  { %v2833_v60 = vadd.f32 %v2832_v16, %v2770_v7  ;;  %v10706_v16 = vld [vmem:[#allocation85_spill] sm:$0xff] }
 0x46c   :  { %v2777_v53 = vmul.f32 %v10706_v16, %v10706_v16 }
 0x46d   :  { %v2834_v54 = vadd.f32 %v2833_v60, %v2771_v63  ;;  %v10707_v60 = vld [vmem:[#allocation86_spill] sm:$0xff] }
 0x46e   :  { %v2778_v19 = vmul.f32 %v10707_v60, %v10707_v60 }
 0x46f   :  { %v2835_v18 = vadd.f32 %v2834_v54, %v2772_v41  ;;  %v2779_v54 = vmul.f32 %v8952_v61, %v8952_v61 }
 0x471   :  { %v2836_v39 = vadd.f32 %v2835_v18, %v2773_v11  ;;  %v2780_v18 = vmul.f32 %v8956_v10, %v8956_v10 }
 0x473   :  { %v2837_v8 = vadd.f32 %v2836_v39, %v2774_v23  ;;  %v2781_v39 = vmul.f32 %v8960_v44, %v8960_v44 }
 0x475   :  { %v2838_v7 = vadd.f32 %v2837_v8, %v2775_v20  ;;  %v2782_v8 = vmul.f32 %v8964_v49, %v8964_v49 }
 0x477   :  { %v2839_v63 = vadd.f32 %v2838_v7, %v2776_v58  ;;  %v2783_v7 = vmul.f32 %v8968_v48, %v8968_v48 }
 0x479   :  { %v2840_v41 = vadd.f32 %v2839_v63, %v2777_v53  ;;  %v2784_v63 = vmul.f32 %v8972_v29, %v8972_v29 }
 0x47b   :  { %v2841_v11 = vadd.f32 %v2840_v41, %v2778_v19  ;;  %v2785_v41 = vmul.f32 %v8976_v51, %v8976_v51 }
 0x47d   :  { %v2842_v23 = vadd.f32 %v2841_v11, %v2779_v54  ;;  %v2786_v11 = vmul.f32 %v8980_v13, %v8980_v13 }
 0x47f   :  { %v2843_v20 = vadd.f32 %v2842_v23, %v2780_v18  ;;  %v10708_v23 = vld [vmem:[#allocation93_spill] sm:$0xff] }
 0x480   :  { %v2787_v49 = vmul.f32 %v10708_v23, %v10708_v23 }
 0x481   :  { %v2844_v58 = vadd.f32 %v2843_v20, %v2781_v39  ;;  %v10709_v20 = vld [vmem:[#allocation94_spill] sm:$0xff] }
 0x482   :  { %v2788_v48 = vmul.f32 %v10709_v20, %v10709_v20 }
 0x483   :  { %v2845_v53 = vadd.f32 %v2844_v58, %v2782_v8  ;;  %v10710_v58 = vld [vmem:[#allocation95_spill] sm:$0xff] }
 0x484   :  { %v2789_v29 = vmul.f32 %v10710_v58, %v10710_v58 }
 0x485   :  { %v2846_v19 = vadd.f32 %v2845_v53, %v2783_v7  ;;  %v10711_v53 = vld [vmem:[#allocation96_spill] sm:$0xff] }
 0x486   :  { %v2790_v51 = vmul.f32 %v10711_v53, %v10711_v53 }
 0x487   :  { %v2847_v54 = vadd.f32 %v2846_v19, %v2784_v63  ;;  %v2791_v19 = vmul.f32 %v9000_v12, %v9000_v12 }
 0x489   :  { %v2848_v18 = vadd.f32 %v2847_v54, %v2785_v41 }
 0x48b   :  { %v2849_v39 = vadd.f32 %v2848_v18, %v2786_v11 }
 0x48d   :  { %v2850_v8 = vadd.f32 %v2849_v39, %v2787_v49 }
 0x48f   :  { %v2851_v7 = vadd.f32 %v2850_v8, %v2788_v48  ;;  %v2862_v48 = vld [vmem:[%s9735_s5] sm:$0x1]  ;;  %s3722_s5 = smov [#allocation2]  }
 0x491   :  { %v2852_v63 = vadd.f32 %v2851_v7, %v2789_v29  ;;  %v10712_v7 = vld [vmem:[#allocation7_spill] sm:$0xff] }
 0x493   :  { %v2853_v41 = vadd.f32 %v2852_v63, %v2790_v51  ;;  %v9139_v51 = vld [vmem:[%s9736_s6] ss:$0 sm:$0xff]  ;;  %s3140_s6 = sshll.u32 %s3722_s5, 4  ;;  %s9707_s6 = int_to_ptr.vmem [resolvable:$true] %s3140_s6 }
 0x494   :  { %s3698_s17 = scalar_lea.vmem %s9707_s6, 8192  ;;  %p3703_p1 = scmp.lt.s32.totalorder %s9707_s6, %s9707_s6 }
 0x495   :  { %v2854_v54 = vadd.f32 %v2853_v41, %v2791_v19  ;;  %v10715_v19 = vld [vmem:[#allocation26_spill] sm:$0xff]  ;;  %p3699_p0 = scmp.ne.s32.totalorder %s9707_s6, %s3698_s17  ;;  %p3704_p2 = scmp.lt.s32.totalorder %s3698_s17, %s3698_s17 }
 0x497   :  { %v2855_v13 = vrot.slane %v2854_v54, 4  ;;  %p3705_p3 = por %p3704_p2, %p3703_p1 }
 0x499   :  { %v2856_v23 = vadd.f32 %v2855_v13, %v2854_v54  ;;  %v10713_v13 = vld [vmem:[#allocation64_spill] sm:$0xff]  ;;  %p3706_p4 = pnand %p3705_p3, %p3699_p0 }
 0x49b   :  { %v2857_v11 = vrot.slane %v2856_v23, 2 }
 0x49d   :  { %v2858_v18 = vadd.f32 %v2857_v11, %v2856_v23 }
 0x49f   :  { %v2859_v44 = vrot.slane %v2858_v18, 1 }
 0x4a1   :  { %v2860_v20 = vadd.f32 %v2859_v44, %v2858_v18 }
 0x4a3   :  { %v2861_v49 = vmul.f32 0.001953125, %v2860_v20  ;;  %v10714_v20 = vld [vmem:[#allocation51_spill] sm:$0xff] }
 0x4a5   :  { %v2863_v39 = vadd.f32 1e-05, %v2861_v49 }
 0x4a7   :  { %3695 = vrsqrt.f32 %v2863_v39 }
 0x4b1   :  { %v3696_v8 = vpop.eup %3695 }
 0x4b2   :  { %v2865_v29 = vmul.f32 %v3696_v8, %v2862_v48  ;;  %v10716_v8 = vld [vmem:[#allocation55_spill] sm:$0xff] }
 0x4b4   :  { %v9134_v53 = vrot.slane %v2865_v29, %v10712_v7  ;;  %v10717_v29 = vld [vmem:[#allocation44_spill] sm:$0xff] }
 0x4b6   :  { %v2933_v44 = vmul.f32 %v9134_v53, %v10710_v58  ;;  %v9145_v23 = vmul.f32 %v9134_v53, %v10713_v13  ;;  %v9149_v63 = vmul.f32 %v9134_v53, %v10714_v20  ;;  %v9153_v41 = vmul.f32 %v9134_v53, %v10715_v19  ;;  %v10718_v13 = vld [vmem:[#allocation56_spill] sm:$0xff]  ;;  %v10719_v20 = vld [vmem:[#allocation43_spill] sm:$0xff] }
 0x4b7   :  { %v9157_v54 = vmul.f32 %v9134_v53, %v8760_v40  ;;  %v9161_v11 = vmul.f32 %v9134_v53, %v8764_v47  ;;  %v9165_v58 = vmul.f32 %v9134_v53, %v8768_v50  ;;  %v9169_v18 = vmul.f32 %v9134_v53, %v8772_v3  ;;  %v10720_v19 = vld [vmem:[#allocation32_spill] sm:$0xff] }
 0x4b8   :  { %v3004_v49 = vadd.f32 %v9139_v51, %v2933_v44  ;;  %v9174_v39 = vmul.f32 %v9134_v53, %v8776_v15  ;;  %v9178_v40 = vmul.f32 %v9134_v53, %v8780_v28  ;;  %v9182_v47 = vmul.f32 %v9134_v53, %v8784_v5 }
 0x4b9   :  { %v9186_v50 = vmul.f32 %v9134_v53, %v8788_v32  ;;  %v9190_v3 = vmul.f32 %v9134_v53, %v8792_v30  ;;  %v9194_v15 = vmul.f32 %v9134_v53, %v8796_v22  ;;  %v9198_v28 = vmul.f32 %v9134_v53, %v8800_v62 }
 0x4ba   :  { %v3068_v48 = vmax.f32 %v3004_v49, 0.0  ;;  %v9202_v5 = vmul.f32 %v9134_v53, %v8804_v24  ;;  %v9206_v32 = vmul.f32 %v9134_v53, %v8808_v31  ;;  %v9210_v30 = vmul.f32 %v9134_v53, %v8812_v52  ;;  %v10721_v49 = vld [vmem:[#allocation34_spill] sm:$0xff] }
 0x4bb   :  { %v9214_v22 = vmul.f32 %v9134_v53, %v8816_v4  ;;  %v9218_v62 = vmul.f32 %v9134_v53, %v8820_v0  ;;  %v9222_v24 = vmul.f32 %v9134_v53, %v8824_v45  ;;  %v9226_v31 = vmul.f32 %v9134_v53, %v8828_v46 }
 0x4bc   :  { %3132 = vst [vmem:[#allocation2 + $0x1e8] sm:$0xff] %v3068_v48  ;;  %v9230_v52 = vmul.f32 %v9134_v53, %v8832_v43  ;;  %v9234_v4 = vmul.f32 %v9134_v53, %v8836_v34  ;;  %v9238_v0 = vmul.f32 %v9134_v53, %v8840_v35  ;;  %v9242_v45 = vmul.f32 %v9134_v53, %v8844_v37 }
 0x4bd   :  { %v9246_v46 = vmul.f32 %v9134_v53, %v8848_v9  ;;  %v9250_v43 = vmul.f32 %v9134_v53, %v8852_v57  ;;  %v9254_v34 = vmul.f32 %v9134_v53, %v8856_v55  ;;  %v9258_v35 = vmul.f32 %v9134_v53, %v8860_v17 }
 0x4be   :  { %v9262_v37 = vmul.f32 %v9134_v53, %v8864_v14  ;;  %v9266_v9 = vmul.f32 %v9134_v53, %v10716_v8  ;;  %v9270_v57 = vmul.f32 %v9134_v53, %v10717_v29  ;;  %v9274_v55 = vmul.f32 %v9134_v53, %v8876_v38 }
 0x4bf   :  { %v9278_v17 = vmul.f32 %v9134_v53, %v8880_v42  ;;  %v9282_v14 = vmul.f32 %v9134_v53, %v8884_v21  ;;  %v9286_v7 = vmul.f32 %v9134_v53, %v10702_v2  ;;  %v9290_v44 = vmul.f32 %v9134_v53, %v10703_v6 }
 0x4c0   :  { %v9294_v38 = vmul.f32 %v9134_v53, %v8896_v33  ;;  %v9298_v42 = vmul.f32 %v9134_v53, %v8900_v36  ;;  %v9302_v21 = vmul.f32 %v9134_v53, %v8904_v59  ;;  %v9306_v2 = vmul.f32 %v9134_v53, %v8908_v27 }
 0x4c1   :  { %v9310_v6 = vmul.f32 %v9134_v53, %v8912_v56  ;;  %v9314_v33 = vmul.f32 %v9134_v53, %v10718_v13  ;;  %v9318_v36 = vmul.f32 %v9134_v53, %v10719_v20  ;;  %v9322_v59 = vmul.f32 %v9134_v53, %v10720_v19  ;;  %v10725_v20 = vld [vmem:[#allocation87_spill] sm:$0xff]  ;;  %v10727_v19 = vld [vmem:[#allocation88_spill] sm:$0xff] }
 0x4c2   :  { %v9326_v27 = vmul.f32 %v9134_v53, %v10721_v49  ;;  %v9330_v56 = vmul.f32 %v9134_v53, %v8932_v26  ;;  %v9334_v48 = vmul.f32 %v9134_v53, %v10704_v1  ;;  %v9338_v8 = vmul.f32 %v9134_v53, %v10705_v25  ;;  %v10729_v49 = vld [vmem:[#allocation89_spill] sm:$0xff] }
 0x4c3   :  { %v9342_v29 = vmul.f32 %v9134_v53, %v10706_v16  ;;  %v9346_v13 = vmul.f32 %v9134_v53, %v10707_v60  ;;  %v9350_v26 = vmul.f32 %v9134_v53, %v8952_v61  ;;  %v9354_v1 = vmul.f32 %v9134_v53, %v8956_v10 }
 0x4c4   :  { %v9358_v25 = vmul.f32 %v9134_v53, %v10725_v20  ;;  %v9362_v16 = vmul.f32 %v9134_v53, %v10727_v19  ;;  %v9366_v60 = vmul.f32 %v9134_v53, %v10729_v49 }
 0x4c5   :  { %10722 = vst [vmem:[#allocation97_spill] sm:$0xff] %v9346_v13  ;;  %10723 = vst [vmem:[#allocation98_spill] sm:$0xff] %v9350_v26  ;;  %v10731_v13 = vld [vmem:[#allocation90_spill] sm:$0xff]  ;;  %v10732_v26 = vld [vmem:[#allocation91_spill] sm:$0xff] }
 0x4c6   :  { %10724 = vst [vmem:[#allocation99_spill] sm:$0xff] %v9354_v1  ;;  %10726 = vst [vmem:[#allocation100_spill] sm:$0xff] %v9358_v25  ;;  %v9370_v61 = vmul.f32 %v9134_v53, %v10731_v13  ;;  %v9374_v10 = vmul.f32 %v9134_v53, %v10732_v26  ;;  %v10733_v1 = vld [vmem:[#allocation92_spill] sm:$0xff]  ;;  %v10734_v25 = vld [vmem:[#allocation93_spill] sm:$0xff]  ;;  %v9394_v26 = vmul.f32 %v9134_v53, %v9000_v12 }
 0x4c7   :  { %10728 = vst [vmem:[#allocation101_spill] sm:$0xff] %v9362_v16  ;;  %10730 = vst [vmem:[#allocation102_spill] sm:$0xff] %v9366_v60  ;;  %v9378_v20 = vmul.f32 %v9134_v53, %v10733_v1  ;;  %v9382_v19 = vmul.f32 %v9134_v53, %v10734_v25  ;;  %v10735_v16 = vld [vmem:[#allocation94_spill] sm:$0xff]  ;;  %v10736_v60 = vld [vmem:[#allocation96_spill] sm:$0xff]  ;;  %v9398_v1 = vadd.f32 %v9139_v51, %v9145_v23 }
 0x4c8   :  { %v9386_v49 = vmul.f32 %v9134_v53, %v10735_v16  ;;  %v9390_v13 = vmul.f32 %v9134_v53, %v10736_v60  ;;  %v9402_v25 = vadd.f32 %v9139_v51, %v9149_v63  ;;  %v9406_v16 = vadd.f32 %v9139_v51, %v9153_v41 }
 0x4c9   :  { %v9410_v60 = vadd.f32 %v9139_v51, %v9157_v54  ;;  %v9414_v12 = vadd.f32 %v9139_v51, %v9161_v11  ;;  %v9418_v53 = vadd.f32 %v9139_v51, %v9165_v58  ;;  %v9422_v23 = vadd.f32 %v9139_v51, %v9169_v18 }
 0x4ca   :  { %v9426_v63 = vadd.f32 %v9139_v51, %v9174_v39  ;;  %v9430_v41 = vadd.f32 %v9139_v51, %v9178_v40  ;;  %v9434_v54 = vadd.f32 %v9139_v51, %v9182_v47  ;;  %v9438_v11 = vadd.f32 %v9139_v51, %v9186_v50 }
 0x4cb   :  { %v9442_v58 = vadd.f32 %v9139_v51, %v9190_v3  ;;  %v9446_v18 = vadd.f32 %v9139_v51, %v9194_v15  ;;  %v9450_v39 = vadd.f32 %v9139_v51, %v9198_v28  ;;  %v9454_v40 = vadd.f32 %v9139_v51, %v9202_v5 }
 0x4cc   :  { %v9458_v47 = vadd.f32 %v9139_v51, %v9206_v32  ;;  %v9462_v50 = vadd.f32 %v9139_v51, %v9210_v30  ;;  %v9466_v3 = vadd.f32 %v9139_v51, %v9214_v22  ;;  %v9470_v15 = vadd.f32 %v9139_v51, %v9218_v62 }
 0x4cd   :  { %v9474_v28 = vadd.f32 %v9139_v51, %v9222_v24  ;;  %v9478_v5 = vadd.f32 %v9139_v51, %v9226_v31  ;;  %v9482_v32 = vadd.f32 %v9139_v51, %v9230_v52  ;;  %v9486_v30 = vadd.f32 %v9139_v51, %v9234_v4 }
 0x4ce   :  { %v9490_v22 = vadd.f32 %v9139_v51, %v9238_v0  ;;  %v9494_v62 = vadd.f32 %v9139_v51, %v9242_v45  ;;  %v9498_v24 = vadd.f32 %v9139_v51, %v9246_v46  ;;  %v9502_v31 = vadd.f32 %v9139_v51, %v9250_v43 }
 0x4cf   :  { %v9506_v52 = vadd.f32 %v9139_v51, %v9254_v34  ;;  %v9510_v4 = vadd.f32 %v9139_v51, %v9258_v35  ;;  %v9514_v0 = vadd.f32 %v9139_v51, %v9262_v37  ;;  %v9518_v45 = vadd.f32 %v9139_v51, %v9266_v9 }
 0x4d0   :  { %v9522_v46 = vadd.f32 %v9139_v51, %v9270_v57  ;;  %v9526_v43 = vadd.f32 %v9139_v51, %v9274_v55  ;;  %v9530_v34 = vadd.f32 %v9139_v51, %v9278_v17  ;;  %v9534_v35 = vadd.f32 %v9139_v51, %v9282_v14 }
 0x4d1   :  { %v9538_v37 = vadd.f32 %v9139_v51, %v9286_v7  ;;  %v9542_v9 = vadd.f32 %v9139_v51, %v9290_v44  ;;  %v9546_v57 = vadd.f32 %v9139_v51, %v9294_v38  ;;  %v9550_v55 = vadd.f32 %v9139_v51, %v9298_v42 }
 0x4d2   :  { %v9554_v17 = vadd.f32 %v9139_v51, %v9302_v21  ;;  %v9558_v14 = vadd.f32 %v9139_v51, %v9306_v2  ;;  %v9562_v7 = vadd.f32 %v9139_v51, %v9310_v6  ;;  %v9566_v44 = vadd.f32 %v9139_v51, %v9314_v33 }
 0x4d3   :  { %v9570_v38 = vadd.f32 %v9139_v51, %v9318_v36  ;;  %v9574_v42 = vadd.f32 %v9139_v51, %v9322_v59  ;;  %v9578_v21 = vadd.f32 %v9139_v51, %v9326_v27  ;;  %v9582_v2 = vadd.f32 %v9139_v51, %v9330_v56  ;;  %v10742_v59 = vld [vmem:[#allocation97_spill] sm:$0xff] }
 0x4d4   :  { %v9586_v6 = vadd.f32 %v9139_v51, %v9334_v48  ;;  %v9590_v33 = vadd.f32 %v9139_v51, %v9338_v8  ;;  %v9594_v36 = vadd.f32 %v9139_v51, %v9342_v29  ;;  %v9598_v27 = vadd.f32 %v9139_v51, %v10742_v59 }
 0x4d5   :  { %10737 = vst [vmem:[#allocation103_spill] sm:$0xff] %v9578_v21  ;;  %10738 = vst [vmem:[#allocation104_spill] sm:$0xff] %v9582_v2  ;;  %v10743_v21 = vld [vmem:[#allocation98_spill] sm:$0xff]  ;;  %v10744_v2 = vld [vmem:[#allocation99_spill] sm:$0xff] }
 0x4d6   :  { %10739 = vst [vmem:[#allocation10_spill] sm:$0xff] %v9586_v6  ;;  %10740 = vst [vmem:[#allocation11_spill] sm:$0xff] %v9590_v33  ;;  %v9602_v56 = vadd.f32 %v9139_v51, %v10743_v21  ;;  %v9606_v48 = vadd.f32 %v9139_v51, %v10744_v2  ;;  %v10745_v6 = vld [vmem:[#allocation100_spill] sm:$0xff]  ;;  %v10746_v33 = vld [vmem:[#allocation101_spill] sm:$0xff]  ;;  %v9622_v21 = vadd.f32 %v9139_v51, %v9370_v61 }
 0x4d7   :  { %10741 = vst [vmem:[#allocation12_spill] sm:$0xff] %v9594_v36  ;;  %v9610_v8 = vadd.f32 %v9139_v51, %v10745_v6  ;;  %v9614_v29 = vadd.f32 %v9139_v51, %v10746_v33  ;;  %v10747_v36 = vld [vmem:[#allocation102_spill] sm:$0xff]  ;;  %v9626_v2 = vadd.f32 %v9139_v51, %v9374_v10  ;;  %v9630_v6 = vadd.f32 %v9139_v51, %v9378_v20 }
 0x4d8   :  { %v9618_v59 = vadd.f32 %v9139_v51, %v10747_v36  ;;  %v9634_v33 = vadd.f32 %v9139_v51, %v9382_v19  ;;  %v9638_v36 = vadd.f32 %v9139_v51, %v9386_v49  ;;  %v9642_v61 = vadd.f32 %v9139_v51, %v9390_v13 }
 0x4d9   :  { %10748 = vst [vmem:[#allocation13_spill] sm:$0xff] %v9626_v2  ;;  %10749 = vst [vmem:[#allocation14_spill] sm:$0xff] %v9630_v6  ;;  %v9646_v10 = vadd.f32 %v9139_v51, %v9394_v26  ;;  %v3007_v2 = vmax.f32 %v9398_v1, 0.0  ;;  %v3008_v20 = vmax.f32 %v9402_v25, 0.0  ;;  %v3009_v6 = vmax.f32 %v9406_v16, 0.0 }
 0x4da   :  { %10750 = vst [vmem:[#allocation15_spill] sm:$0xff] %v9634_v33  ;;  %10751 = vst [vmem:[#allocation16_spill] sm:$0xff] %v9638_v36  ;;  %v3010_v19 = vmax.f32 %v9410_v60, 0.0  ;;  %v3011_v33 = vmax.f32 %v9414_v12, 0.0  ;;  %v3012_v49 = vmax.f32 %v9418_v53, 0.0  ;;  %v3013_v36 = vmax.f32 %v9422_v23, 0.0 }
 0x4db   :  { %10752 = vst [vmem:[#allocation19_spill] sm:$0xff] %v9642_v61  ;;  %v3014_v13 = vmax.f32 %v9426_v63, 0.0  ;;  %v3015_v61 = vmax.f32 %v9430_v41, 0.0  ;;  %v3016_v51 = vmax.f32 %v9434_v54, 0.0  ;;  %v3017_v26 = vmax.f32 %v9438_v11, 0.0  ;;  %3071 = vst [vmem:[#allocation2] sm:$0xff] %v3007_v2 }
 0x4dc   :  { %3072 = vst [vmem:[#allocation2 + $0x8] sm:$0xff] %v3008_v20  ;;  %3073 = vst [vmem:[#allocation2 + $0x10] sm:$0xff] %v3009_v6  ;;  %v3018_v1 = vmax.f32 %v9442_v58, 0.0  ;;  %v3019_v25 = vmax.f32 %v9446_v18, 0.0  ;;  %v3020_v16 = vmax.f32 %v9450_v39, 0.0  ;;  %v3021_v60 = vmax.f32 %v9454_v40, 0.0 }
 0x4dd   :  { %3074 = vst [vmem:[#allocation2 + $0x18] sm:$0xff] %v3010_v19  ;;  %3075 = vst [vmem:[#allocation2 + $0x20] sm:$0xff] %v3011_v33  ;;  %v3022_v12 = vmax.f32 %v9458_v47, 0.0  ;;  %v3023_v53 = vmax.f32 %v9462_v50, 0.0  ;;  %v3024_v23 = vmax.f32 %v9466_v3, 0.0  ;;  %v3025_v63 = vmax.f32 %v9470_v15, 0.0 }
 0x4de   :  { %3076 = vst [vmem:[#allocation2 + $0x28] sm:$0xff] %v3012_v49  ;;  %3077 = vst [vmem:[#allocation2 + $0x30] sm:$0xff] %v3013_v36  ;;  %v3026_v41 = vmax.f32 %v9474_v28, 0.0  ;;  %v3027_v54 = vmax.f32 %v9478_v5, 0.0  ;;  %v3028_v11 = vmax.f32 %v9482_v32, 0.0  ;;  %v3029_v58 = vmax.f32 %v9486_v30, 0.0 }
 0x4df   :  { %3078 = vst [vmem:[#allocation2 + $0x38] sm:$0xff] %v3014_v13  ;;  %3079 = vst [vmem:[#allocation2 + $0x40] sm:$0xff] %v3015_v61  ;;  %v3030_v18 = vmax.f32 %v9490_v22, 0.0  ;;  %v3031_v39 = vmax.f32 %v9494_v62, 0.0  ;;  %v3032_v40 = vmax.f32 %v9498_v24, 0.0  ;;  %v3033_v47 = vmax.f32 %v9502_v31, 0.0 }
 0x4e0   :  { %3080 = vst [vmem:[#allocation2 + $0x48] sm:$0xff] %v3016_v51  ;;  %3081 = vst [vmem:[#allocation2 + $0x50] sm:$0xff] %v3017_v26  ;;  %v3034_v50 = vmax.f32 %v9506_v52, 0.0  ;;  %v3035_v3 = vmax.f32 %v9510_v4, 0.0  ;;  %v3036_v15 = vmax.f32 %v9514_v0, 0.0  ;;  %v3037_v28 = vmax.f32 %v9518_v45, 0.0 }
 0x4e1   :  { %3082 = vst [vmem:[#allocation2 + $0x58] sm:$0xff] %v3018_v1  ;;  %3083 = vst [vmem:[#allocation2 + $0x60] sm:$0xff] %v3019_v25  ;;  %v3038_v5 = vmax.f32 %v9522_v46, 0.0  ;;  %v3039_v32 = vmax.f32 %v9526_v43, 0.0  ;;  %v3040_v30 = vmax.f32 %v9530_v34, 0.0  ;;  %v3041_v22 = vmax.f32 %v9534_v35, 0.0 }
 0x4e2   :  { %3084 = vst [vmem:[#allocation2 + $0x68] sm:$0xff] %v3020_v16  ;;  %3085 = vst [vmem:[#allocation2 + $0x70] sm:$0xff] %v3021_v60  ;;  %v3042_v62 = vmax.f32 %v9538_v37, 0.0  ;;  %v3043_v24 = vmax.f32 %v9542_v9, 0.0  ;;  %v3044_v31 = vmax.f32 %v9546_v57, 0.0  ;;  %v3045_v52 = vmax.f32 %v9550_v55, 0.0 }
 0x4e3   :  { %3086 = vst [vmem:[#allocation2 + $0x78] sm:$0xff] %v3022_v12  ;;  %3087 = vst [vmem:[#allocation2 + $0x80] sm:$0xff] %v3023_v53  ;;  %v3046_v4 = vmax.f32 %v9554_v17, 0.0  ;;  %v3047_v0 = vmax.f32 %v9558_v14, 0.0  ;;  %v3048_v45 = vmax.f32 %v9562_v7, 0.0  ;;  %v3049_v46 = vmax.f32 %v9566_v44, 0.0 }
 0x4e4   :  { %3088 = vst [vmem:[#allocation2 + $0x88] sm:$0xff] %v3024_v23  ;;  %3089 = vst [vmem:[#allocation2 + $0x90] sm:$0xff] %v3025_v63  ;;  %v3050_v43 = vmax.f32 %v9570_v38, 0.0  ;;  %v3051_v34 = vmax.f32 %v9574_v42, 0.0  ;;  %v10753_v35 = vld [vmem:[#allocation103_spill] sm:$0xff]  ;;  %v10754_v9 = vld [vmem:[#allocation104_spill] sm:$0xff] }
 0x4e5   :  { %3090 = vst [vmem:[#allocation2 + $0x98] sm:$0xff] %v3026_v41  ;;  %3091 = vst [vmem:[#allocation2 + $0xa0] sm:$0xff] %v3027_v54  ;;  %v3052_v37 = vmax.f32 %v10753_v35, 0.0  ;;  %v3053_v57 = vmax.f32 %v10754_v9, 0.0  ;;  %v10755_v55 = vld [vmem:[#allocation10_spill] sm:$0xff]  ;;  %v10756_v14 = vld [vmem:[#allocation11_spill] sm:$0xff] }
 0x4e6   :  { %3092 = vst [vmem:[#allocation2 + $0xa8] sm:$0xff] %v3028_v11  ;;  %3093 = vst [vmem:[#allocation2 + $0xb0] sm:$0xff] %v3029_v58  ;;  %v3054_v17 = vmax.f32 %v10755_v55, 0.0  ;;  %v3055_v7 = vmax.f32 %v10756_v14, 0.0  ;;  %v10757_v44 = vld [vmem:[#allocation12_spill] sm:$0xff]  ;;  %v3057_v38 = vmax.f32 %v9598_v27, 0.0 }
 0x4e7   :  { %3094 = vst [vmem:[#allocation2 + $0xb8] sm:$0xff] %v3030_v18  ;;  %3095 = vst [vmem:[#allocation2 + $0xc0] sm:$0xff] %v3031_v39  ;;  %v3056_v2 = vmax.f32 %v10757_v44, 0.0  ;;  %v3058_v42 = vmax.f32 %v9602_v56, 0.0  ;;  %v3059_v6 = vmax.f32 %v9606_v48, 0.0  ;;  %v3060_v33 = vmax.f32 %v9610_v8, 0.0 }
 0x4e8   :  { %3096 = vst [vmem:[#allocation2 + $0xc8] sm:$0xff] %v3032_v40  ;;  %3097 = vst [vmem:[#allocation2 + $0xd0] sm:$0xff] %v3033_v47  ;;  %v3061_v36 = vmax.f32 %v9614_v29, 0.0  ;;  %v3062_v61 = vmax.f32 %v9618_v59, 0.0  ;;  %v3063_v27 = vmax.f32 %v9622_v21, 0.0  ;;  %v10758_v20 = vld [vmem:[#allocation13_spill] sm:$0xff] }
 0x4e9   :  { %3098 = vst [vmem:[#allocation2 + $0xd8] sm:$0xff] %v3034_v50  ;;  %3099 = vst [vmem:[#allocation2 + $0xe0] sm:$0xff] %v3035_v3  ;;  %v3064_v19 = vmax.f32 %v10758_v20, 0.0  ;;  %v10759_v49 = vld [vmem:[#allocation14_spill] sm:$0xff]  ;;  %v10760_v56 = vld [vmem:[#allocation15_spill] sm:$0xff]  ;;  %v3070_v21 = vmax.f32 %v9646_v10, 0.0 }
 0x4ea   :  { %3100 = vst [vmem:[#allocation2 + $0xe8] sm:$0xff] %v3036_v15  ;;  %3101 = vst [vmem:[#allocation2 + $0xf0] sm:$0xff] %v3037_v28  ;;  %v3065_v13 = vmax.f32 %v10759_v49, 0.0  ;;  %v3066_v48 = vmax.f32 %v10760_v56, 0.0  ;;  %v10761_v8 = vld [vmem:[#allocation16_spill] sm:$0xff]  ;;  %v10762_v51 = vld [vmem:[#allocation19_spill] sm:$0xff] }
 0x4eb   :  { %3102 = vst [vmem:[#allocation2 + $0xf8] sm:$0xff] %v3038_v5  ;;  %3103 = vst [vmem:[#allocation2 + $0x100] sm:$0xff] %v3039_v32  ;;  %v3067_v29 = vmax.f32 %v10761_v8, 0.0  ;;  %v3069_v59 = vmax.f32 %v10762_v51, 0.0 }
 0x4ec   :  { %3104 = vst [vmem:[#allocation2 + $0x108] sm:$0xff] %v3040_v30  ;;  %3105 = vst [vmem:[#allocation2 + $0x110] sm:$0xff] %v3041_v22 }
 0x4ed   :  { %3106 = vst [vmem:[#allocation2 + $0x118] sm:$0xff] %v3042_v62  ;;  %3107 = vst [vmem:[#allocation2 + $0x120] sm:$0xff] %v3043_v24 }
 0x4ee   :  { %3108 = vst [vmem:[#allocation2 + $0x128] sm:$0xff] %v3044_v31  ;;  %3109 = vst [vmem:[#allocation2 + $0x130] sm:$0xff] %v3045_v52 }
 0x4ef   :  { %3110 = vst [vmem:[#allocation2 + $0x138] sm:$0xff] %v3046_v4  ;;  %3111 = vst [vmem:[#allocation2 + $0x140] sm:$0xff] %v3047_v0 }
 0x4f0   :  { %3112 = vst [vmem:[#allocation2 + $0x148] sm:$0xff] %v3048_v45  ;;  %3113 = vst [vmem:[#allocation2 + $0x150] sm:$0xff] %v3049_v46 }
 0x4f1   :  { %3114 = vst [vmem:[#allocation2 + $0x158] sm:$0xff] %v3050_v43  ;;  %3115 = vst [vmem:[#allocation2 + $0x160] sm:$0xff] %v3051_v34 }
 0x4f2   :  { %3116 = vst [vmem:[#allocation2 + $0x168] sm:$0xff] %v3052_v37  ;;  %3117 = vst [vmem:[#allocation2 + $0x170] sm:$0xff] %v3053_v57 }
 0x4f3   :  { %3118 = vst [vmem:[#allocation2 + $0x178] sm:$0xff] %v3054_v17  ;;  %3119 = vst [vmem:[#allocation2 + $0x180] sm:$0xff] %v3055_v7 }
 0x4f4   :  { %3120 = vst [vmem:[#allocation2 + $0x188] sm:$0xff] %v3056_v2  ;;  %3121 = vst [vmem:[#allocation2 + $0x190] sm:$0xff] %v3057_v38 }
 0x4f5   :  { %3122 = vst [vmem:[#allocation2 + $0x198] sm:$0xff] %v3058_v42  ;;  %3123 = vst [vmem:[#allocation2 + $0x1a0] sm:$0xff] %v3059_v6 }
 0x4f6   :  { %3124 = vst [vmem:[#allocation2 + $0x1a8] sm:$0xff] %v3060_v33  ;;  %3125 = vst [vmem:[#allocation2 + $0x1b0] sm:$0xff] %v3061_v36 }
 0x4f7   :  { %3126 = vst [vmem:[#allocation2 + $0x1b8] sm:$0xff] %v3062_v61  ;;  %3127 = vst [vmem:[#allocation2 + $0x1c0] sm:$0xff] %v3063_v27 }
 0x4f8   :  { %3128 = vst [vmem:[#allocation2 + $0x1c8] sm:$0xff] %v3064_v19  ;;  %3129 = vst [vmem:[#allocation2 + $0x1d0] sm:$0xff] %v3065_v13 }
 0x4f9   :  { %3130 = vst [vmem:[#allocation2 + $0x1d8] sm:$0xff] %v3066_v48  ;;  %3131 = vst [vmem:[#allocation2 + $0x1e0] sm:$0xff] %v3067_v29 }
 0x4fa   :  { %3133 = vst [vmem:[#allocation2 + $0x1f0] sm:$0xff] %v3069_v59  ;;  %3134 = vst [vmem:[#allocation2 + $0x1f8] sm:$0xff] %v3070_v21 }
 0x4fb   :  { %3709 = shalt.err (!%p3706_p4)
}
 0x4fc   :  { %s3710_s19 = scalar_lea.hbm %s9737_s7, 8192 }
 0x4fd   :  { %p3711_p5 = scmp.ne.s32.totalorder %s9737_s7, %s3710_s19  ;;  %p3714_p6 = scmp.lt.u32.totalorder %s3710_s19, %s9737_s7 }
 0x4ff   :  { %p3716_p7 = pnand %p3714_p6, %p3711_p5 }
 0x501   :  { %3719 = shalt.err (!%p3716_p7)
}
 0x502   :  { %s3723_s24 = smov 128   ;;  %s3724_s25 = smov 8  }
 0x503   :  { %3146 = dma.vmem_to_hbm [thread:$0]  %s9707_s6, 8192, %s9737_s7, [#allocation3], %s3723_s24, %s3723_s24, %s3724_s25  }
 0x504   :  { %3720 = dma.done.wait [#allocation3], 8192  }
 0x505   :  { %3721 = vsyncadd [#allocation3], 4294959104 }
 0x506   :  { %3150 = vsyncpa [#allocation3], 1 }

</bundles_post_ra>
